<compile_context>
chip_gen: v5e
topology: v5e:2x2
jax: 0.10.0
libtpu: 0.0.40
codegen_flags: <defaults>
</compile_context>

<pallas_src>
import functools

import jax
import jax.numpy as jnp
from jax.experimental import pallas as pl
from jax.experimental.pallas import tpu as pltpu

TP_MAX = 256   # max row tile (N*Ho*Wo dimension); sweep 256-1024 at real sizes
LANE = 128     # pad Cout to a multiple of this -> lane-dense (unmasked) stores


def _round_up(x, m):
    return ((x + m - 1) // m) * m


def _row_tiling(P):
    """Return (padded row count, row tile). Tiny layers pad to 16 rows only."""
    p16 = _round_up(P, 16)          # 16 = bf16 sublane packing; cheap for tiny layers
    if p16 <= TP_MAX:
        return p16, p16             # single grid step
    return _round_up(P, TP_MAX), TP_MAX


# ---------------------------------------------------------------------------
# Pallas kernels
# ---------------------------------------------------------------------------
def _pconv_kernel(xm_ref, msum_ref, w_ref, b_ref, y_ref, s1_ref, s2_ref):
    """Partial convolution on one tile of im2col rows + fused BN partial stats.

    xm_ref  : (tp, K)    bf16  im2col patches of (x * m)
    msum_ref: (tp, 1)    f32   mask_conv(m) = 3x3 sum-pool of channel-summed mask
    w_ref   : (K, Cpad)  bf16  conv weight, zero-padded to 128 output lanes
    b_ref   : (1, Cpad)  f32   conv bias (zero in padded channels)
    y_ref   : (tp, Cpad) f32   y = where(m_sum > 0, conv(x*m)+b, 0)
    s1_ref  : (8, Cpad)  f32   per-channel sum of y over this tile's rows
    s2_ref  : (8, Cpad)  f32   per-channel sum of y*y over this tile's rows
    """
    h = jnp.dot(xm_ref[...], w_ref[...], preferred_element_type=jnp.float32)
    h = h + b_ref[...]
    # Reference renormalisation divides by masked_fill_(m_sum > 0, 1.0) == 1.0
    # at every valid pixel, so only the zero-fill remains.
    valid = (msum_ref[...] > 0.0).astype(jnp.float32)          # (tp, 1)
    y = h * valid                                              # masked_fill(zero, 0)
    y_ref[...] = y

    # Fused per-channel partial sums for training-mode BatchNorm (saves an HBM
    # re-read of y). Padded rows/channels are exactly zero, so they contribute 0.
    s1_ref[...] = jnp.broadcast_to(jnp.sum(y, axis=0, keepdims=True), s1_ref.shape)
    s2_ref[...] = jnp.broadcast_to(jnp.sum(y * y, axis=0, keepdims=True), s2_ref.shape)


def _bn_act_kernel(h_ref, scale_ref, shift_ref, o_ref, *, act):
    """Elementwise BN-apply + activation on one lane-dense tile (all f32)."""
    y = h_ref[...] * scale_ref[...] + shift_ref[...]
    if act == "relu":
        y = jnp.maximum(y, 0.0)
    elif act == "leaky":
        y = jnp.where(y >= 0.0, y, 0.01 * y)   # nn.LeakyReLU default slope
    o_ref[...] = y


# ---------------------------------------------------------------------------
# JAX glue (patch extraction, padding)
# ---------------------------------------------------------------------------
def _extract_patches(x, stride):
    """x: (N, H, W, C) -> (N*Ho*Wo, 9*C) patches for a 3x3 conv with padding 1."""
    N, H, W, C = x.shape
    k, pad = 3, 1
    xp = jnp.pad(x, ((0, 0), (pad, pad), (pad, pad), (0, 0)))
    Ho = (H + 2 * pad - k) // stride + 1
    Wo = (W + 2 * pad - k) // stride + 1
    pieces = []
    for kh in range(k):
        for kw in range(k):
            pieces.append(
                xp[:, kh:kh + stride * (Ho - 1) + 1:stride,
                      kw:kw + stride * (Wo - 1) + 1:stride, :]
            )
    p = jnp.stack(pieces, axis=3)                   # (N, Ho, Wo, 9, C)
    return p.reshape(N * Ho * Wo, k * k * C), Ho, Wo


# ---------------------------------------------------------------------------
# One conv_module: pconv + BatchNorm2d (training-mode batch stats) + activation
# ---------------------------------------------------------------------------
def conv_module_forward(params, x, m, stride, act):
    """x, m: (N, H, W, Cin). Returns (y (N,Ho,Wo,Cout), m_out (N,Ho,Wo,Cout))."""
    N, H, W, Cin = x.shape
    w, b = params["w"], params["b"]
    Cout = w.shape[0]
    Cpad = _round_up(Cout, LANE)

    # --- patch prep (JAX glue) ---
    # TODO(synk): at realistic H/W, replace the HBM-materialised im2col (and the
    # separate x*m pass) with 9 accumulating shifted-window matmuls inside the
    # kernel so each input pixel is read ~once instead of ~9-18x.
    xm_p, Ho, Wo = _extract_patches(x * m, stride)                 # (P, K)
    K = xm_p.shape[1]

    # mask_conv(m): all-ones 3x3 conv over all input channels == 3x3 sum-pool of
    # the channel-summed mask (identical for every output channel).
    ms_p, _, _ = _extract_patches(jnp.sum(m, axis=-1, keepdims=True), stride)
    m_sum = jnp.sum(ms_p, axis=-1, keepdims=True)                  # (P, 1)

    P = xm_p.shape[0]
    Ppad, tp = _row_tiling(P)
    n_tiles = Ppad // tp

    xm_pad = jnp.pad(xm_p, ((0, Ppad - P), (0, 0))).astype(jnp.bfloat16)
    msum_pad = jnp.pad(m_sum, ((0, Ppad - P), (0, 0)))             # padded rows -> 0

    w_mat = jnp.transpose(w, (2, 3, 1, 0)).reshape(K, Cout)        # (kh,kw,cin) x cout
    w_mat = jnp.pad(w_mat, ((0, 0), (0, Cpad - Cout))).astype(jnp.bfloat16)
    b_row = jnp.pad(b.reshape(1, Cout), ((0, 0), (0, Cpad - Cout)))

    y_pad, s1, s2 = pl.pallas_call(
        _pconv_kernel,
        out_shape=(
            jax.ShapeDtypeStruct((Ppad, Cpad), jnp.float32),
            jax.ShapeDtypeStruct((n_tiles * 8, Cpad), jnp.float32),
            jax.ShapeDtypeStruct((n_tiles * 8, Cpad), jnp.float32),
        ),
        grid=(n_tiles,),
        in_specs=[
            pl.BlockSpec((tp, K), lambda i: (i, 0)),
            pl.BlockSpec((tp, 1), lambda i: (i, 0)),
            pl.BlockSpec((K, Cpad), lambda i: (0, 0)),
            pl.BlockSpec((1, Cpad), lambda i: (0, 0)),
        ],
        out_specs=(
            pl.BlockSpec((tp, Cpad), lambda i: (i, 0)),
            pl.BlockSpec((8, Cpad), lambda i: (i, 0)),
            pl.BlockSpec((8, Cpad), lambda i: (i, 0)),
        ),
        compiler_params=pltpu.CompilerParams(dimension_semantics=("parallel",)),
    )(xm_pad, msum_pad, w_mat, b_row)

    # --- BatchNorm statistics from the fused partial sums (training-mode) ---
    col_sum = jnp.sum(s1.reshape(n_tiles, 8, Cpad)[:, 0, :Cout], axis=0)
    col_sqs = jnp.sum(s2.reshape(n_tiles, 8, Cpad)[:, 0, :Cout], axis=0)
    mean = col_sum / P
    var = jnp.maximum(col_sqs / P - mean * mean, 0.0)   # biased batch variance
    scale = params["gamma"] / jnp.sqrt(var + 1e-5)
    shift = params["beta"] - mean * scale
    scale = jnp.pad(scale.reshape(1, Cout), ((0, 0), (0, Cpad - Cout)))
    shift = jnp.pad(shift.reshape(1, Cout), ((0, 0), (0, Cpad - Cout)))

    # --- BN apply + activation on the lane-dense padded buffer (no reshape) ---
    out_pad = pl.pallas_call(
        functools.partial(_bn_act_kernel, act=act),
        out_shape=jax.ShapeDtypeStruct((Ppad, Cpad), jnp.float32),
        grid=(n_tiles,),
        in_specs=[
            pl.BlockSpec((tp, Cpad), lambda i: (i, 0)),
            pl.BlockSpec((1, Cpad), lambda i: (0, 0)),
            pl.BlockSpec((1, Cpad), lambda i: (0, 0)),
        ],
        out_specs=pl.BlockSpec((tp, Cpad), lambda i: (i, 0)),
        compiler_params=pltpu.CompilerParams(dimension_semantics=("parallel",)),
    )(y_pad, scale, shift)

    y = out_pad[:P, :Cout].reshape(N, Ho, Wo, Cout)

    # Updated mask: masked_fill_(m_sum > 0, 1.0) == (m_sum > 0) for 0/1 masks.
    # Broadcast lazily to Cout channels (all identical, like the reference).
    m_single = (m_sum > 0.0).astype(jnp.float32).reshape(N, Ho, Wo, 1)
    m_out = jnp.broadcast_to(m_single, (N, Ho, Wo, Cout))
    return y, m_out


def upsample2x(x):
    return jnp.repeat(jnp.repeat(x, 2, axis=1), 2, axis=2)


# ---------------------------------------------------------------------------
# pconv_net
# ---------------------------------------------------------------------------
def init_params(key, in_features, out_features, base_channel):
    bc = base_channel
    cfg = {
        "encoder1": (in_features, bc),
        "encoder2": (bc, bc * 2),
        "encoder3": (bc * 2, bc * 4),
        "encoder4": (bc * 4, bc * 8),
        "decoder4": (bc * 8 + bc * 4, bc * 4),
        "decoder3": (bc * 4 + bc * 2, bc * 2),
        "decoder2": (bc * 2 + bc, bc),
        "decoder1": (bc + in_features, out_features),
    }
    params = {}
    for name, (cin, cout) in cfg.items():
        key, k1, k2 = jax.random.split(key, 3)
        params[name] = {
            "w": jax.random.normal(k1, (cout, cin, 3, 3), jnp.float32) * 0.1,
            "b": jax.random.normal(k2, (cout,), jnp.float32) * 0.1,
            "gamma": jnp.ones((cout,), jnp.float32),
            "beta": jnp.zeros((cout,), jnp.float32),
        }
    return params


def pconv_net_forward(params, x, m):
    """x, m: (N, H, W, in_features). Returns (N, H, W, out_features)."""
    out = {0: (x, m)}
    enc_cfg = [("encoder1", 2), ("encoder2", 2), ("encoder3", 2), ("encoder4", 2)]
    for i, (name, stride) in enumerate(enc_cfg, start=1):
        out[i] = conv_module_forward(params[name], *out[i - 1], stride=stride, act="relu")

    h, m_out = out[4]
    dec_cfg = {4: ("decoder4", "leaky"), 3: ("decoder3", "leaky"),
               2: ("decoder2", "leaky"), 1: ("decoder1", None)}
    for i in range(4, 0, -1):
        h = upsample2x(h)
        m_out = upsample2x(m_out)
        h_enc, m_enc = out[i - 1]
        h = jnp.concatenate([h, h_enc], axis=-1)
        m_out = jnp.concatenate([m_out, m_enc], axis=-1)
        name, act = dec_cfg[i]
        h, m_out = conv_module_forward(params[name], h, m_out, stride=1, act=act)
    return h


# ---------------------------------------------------------------------------
if __name__ == "__main__":
    key = jax.random.PRNGKey(0)
    k_param, k_x, k_m = jax.random.split(key, 3)

    N, H, W = 2, 16, 16
    in_features, out_features, base_channel = 4, 3, 8

    params = init_params(k_param, in_features, out_features, base_channel)

    x = jax.random.normal(k_x, (N, H, W, in_features), jnp.float32)
    m = (jax.random.uniform(k_m, (N, H, W, in_features)) > 0.3).astype(jnp.float32)

    fwd = jax.jit(pconv_net_forward)
    y = fwd(params, x, m)
    jax.block_until_ready(y)

    assert y.shape == (N, H, W, out_features)
    assert bool(jnp.all(jnp.isfinite(y)))
    print("KERNEL_OK")
</pallas_src>

<mosaic_0001>
module attributes {stable_mosaic.version = 11 : i64} {
  func.func @_bn_act_kernel(%arg0: i32, %arg1: memref<128x128xf32, #tpu.memory_space<vmem>>, %arg2: memref<1x128xf32, #tpu.memory_space<vmem>>, %arg3: memref<1x128xf32, #tpu.memory_space<vmem>>, %arg4: memref<128x128xf32, #tpu.memory_space<vmem>>) attributes {dimension_semantics = [#tpu.dimension_semantics<parallel>], iteration_bounds = array<i64: 1>, scalar_prefetch = 0 : i64, scratch_operands = 0 : i64, tpu.core_type = #tpu.core_type<tc>, window_params = [{transform_indices = @transform_0, window_bounds = array<i64: 128, 128>}, {pipeline_mode = #tpu.pipeline_mode<synchronous>, transform_indices = @transform_1, window_bounds = array<i64: 1, 128>}, {pipeline_mode = #tpu.pipeline_mode<synchronous>, transform_indices = @transform_2, window_bounds = array<i64: 1, 128>}, {transform_indices = @transform_3, window_bounds = array<i64: 128, 128>}]} {
    %c0 = arith.constant 0 : index
    %c0_0 = arith.constant 0 : index
    %0 = vector.load %arg1[%c0, %c0_0] : memref<128x128xf32, #tpu.memory_space<vmem>>, vector<128x128xf32>
    %c0_1 = arith.constant 0 : index
    %c0_2 = arith.constant 0 : index
    %1 = vector.load %arg2[%c0_1, %c0_2] : memref<1x128xf32, #tpu.memory_space<vmem>>, vector<1x128xf32>
    %2 = vector.broadcast %1 : vector<1x128xf32> to vector<128x128xf32>
    %3 = arith.mulf %0, %2 : vector<128x128xf32>
    %c0_3 = arith.constant 0 : index
    %c0_4 = arith.constant 0 : index
    %4 = vector.load %arg3[%c0_3, %c0_4] : memref<1x128xf32, #tpu.memory_space<vmem>>, vector<1x128xf32>
    %5 = vector.broadcast %4 : vector<1x128xf32> to vector<128x128xf32>
    %6 = arith.addf %3, %5 : vector<128x128xf32>
    %cst = arith.constant 0.000000e+00 : f32
    %7 = vector.broadcast %cst : f32 to vector<128x128xf32>
    %8 = arith.maximumf %6, %7 : vector<128x128xf32>
    %c0_5 = arith.constant 0 : index
    %c0_6 = arith.constant 0 : index
    %9 = vector.load %arg4[%c0_5, %c0_6] : memref<128x128xf32, #tpu.memory_space<vmem>>, vector<128x128xf32>
    tpu.vector_store %arg4[%c0_5, %c0_6], %8 {strides = array<i32>} : memref<128x128xf32, #tpu.memory_space<vmem>>, vector<128x128xf32>,
    return
  }
  func.func @transform_0(%arg0: i32) -> (i32, i32) {
    %c0_i32 = arith.constant 0 : i32
    %c0_i32_0 = arith.constant 0 : i32
    return %arg0, %c0_i32 : i32, i32
  }
  func.func @transform_1(%arg0: i32) -> (i32, i32) {
    %c0_i32 = arith.constant 0 : i32
    %c0_i32_0 = arith.constant 0 : i32
    %c0_i32_1 = arith.constant 0 : i32
    return %c0_i32, %c0_i32_0 : i32, i32
  }
  func.func @transform_2(%arg0: i32) -> (i32, i32) {
    %c0_i32 = arith.constant 0 : i32
    %c0_i32_0 = arith.constant 0 : i32
    %c0_i32_1 = arith.constant 0 : i32
    return %c0_i32, %c0_i32_0 : i32, i32
  }
  func.func @transform_3(%arg0: i32) -> (i32, i32) {
    %c0_i32 = arith.constant 0 : i32
    %c0_i32_0 = arith.constant 0 : i32
    return %arg0, %c0_i32 : i32, i32
  }
}

module attributes {stable_mosaic.version = 11 : i64} {
  func.func @_pconv_kernel(%arg0: i32, %arg1: memref<128x36xbf16, #tpu.memory_space<vmem>>, %arg2: memref<128x1xf32, #tpu.memory_space<vmem>>, %arg3: memref<36x128xbf16, #tpu.memory_space<vmem>>, %arg4: memref<1x128xf32, #tpu.memory_space<vmem>>, %arg5: memref<128x128xf32, #tpu.memory_space<vmem>>, %arg6: memref<8x128xf32, #tpu.memory_space<vmem>>, %arg7: memref<8x128xf32, #tpu.memory_space<vmem>>) attributes {dimension_semantics = [#tpu.dimension_semantics<parallel>], iteration_bounds = array<i64: 1>, scalar_prefetch = 0 : i64, scratch_operands = 0 : i64, tpu.core_type = #tpu.core_type<tc>, window_params = [{transform_indices = @transform_0, window_bounds = array<i64: 128, 36>}, {transform_indices = @transform_1, window_bounds = array<i64: 128, 1>}, {pipeline_mode = #tpu.pipeline_mode<synchronous>, transform_indices = @transform_2, window_bounds = array<i64: 36, 128>}, {pipeline_mode = #tpu.pipeline_mode<synchronous>, transform_indices = @transform_3, window_bounds = array<i64: 1, 128>}, {transform_indices = @transform_4, window_bounds = array<i64: 128, 128>}, {transform_indices = @transform_5, window_bounds = array<i64: 8, 128>}, {transform_indices = @transform_6, window_bounds = array<i64: 8, 128>}]} {
    %c0 = arith.constant 0 : index
    %c0_0 = arith.constant 0 : index
    %0 = vector.load %arg1[%c0, %c0_0] : memref<128x36xbf16, #tpu.memory_space<vmem>>, vector<128x36xbf16>
    %c0_1 = arith.constant 0 : index
    %c0_2 = arith.constant 0 : index
    %1 = vector.load %arg3[%c0_1, %c0_2] : memref<36x128xbf16, #tpu.memory_space<vmem>>, vector<36x128xbf16>
    %cst = arith.constant dense<0.000000e+00> : vector<128x128xf32>
    %2 = tpu.matmul %0, %1, %cst {dimension_numbers = #tpu.dot_dimension_numbers<[1], [0], [0], [1], [0, 0, 1, 1], [], []>} : vector<128x36xbf16>, vector<36x128xbf16>, vector<128x128xf32> -> vector<128x128xf32>
    %c0_3 = arith.constant 0 : index
    %c0_4 = arith.constant 0 : index
    %3 = vector.load %arg4[%c0_3, %c0_4] : memref<1x128xf32, #tpu.memory_space<vmem>>, vector<1x128xf32>
    %4 = vector.broadcast %3 : vector<1x128xf32> to vector<128x128xf32>
    %5 = arith.addf %2, %4 : vector<128x128xf32>
    %c0_5 = arith.constant 0 : index
    %c0_6 = arith.constant 0 : index
    %6 = vector.load %arg2[%c0_5, %c0_6] : memref<128x1xf32, #tpu.memory_space<vmem>>, vector<128x1xf32>
    %cst_7 = arith.constant 0.000000e+00 : f32
    %7 = vector.broadcast %cst_7 : f32 to vector<128x1xf32>
    %8 = arith.cmpf ogt, %6, %7 : vector<128x1xf32>
    %9 = arith.extui %8 : vector<128x1xi1> to vector<128x1xi32>
    %10 = arith.sitofp %9 : vector<128x1xi32> to vector<128x1xf32>
    %11 = vector.broadcast %10 : vector<128x1xf32> to vector<128x128xf32>
    %12 = arith.mulf %5, %11 : vector<128x128xf32>
    %c0_8 = arith.constant 0 : index
    %c0_9 = arith.constant 0 : index
    %13 = vector.load %arg5[%c0_8, %c0_9] : memref<128x128xf32, #tpu.memory_space<vmem>>, vector<128x128xf32>
    tpu.vector_store %arg5[%c0_8, %c0_9], %12 {strides = array<i32>} : memref<128x128xf32, #tpu.memory_space<vmem>>, vector<128x128xf32>,
    %cst_10 = arith.constant dense<0.000000e+00> : vector<128xf32>
    %14 = vector.multi_reduction <add>, %12, %cst_10 [0] : vector<128x128xf32> to vector<128xf32>
    %15 = vector.shape_cast %14 : vector<128xf32> to vector<1x128xf32>
    %16 = vector.shape_cast %15 : vector<1x128xf32> to vector<1x128xf32>
    %17 = vector.broadcast %16 : vector<1x128xf32> to vector<8x128xf32>
    %c0_11 = arith.constant 0 : index
    %c0_12 = arith.constant 0 : index
    %18 = vector.load %arg6[%c0_11, %c0_12] : memref<8x128xf32, #tpu.memory_space<vmem>>, vector<8x128xf32>
    tpu.vector_store %arg6[%c0_11, %c0_12], %17 {strides = array<i32>} : memref<8x128xf32, #tpu.memory_space<vmem>>, vector<8x128xf32>,
    %19 = arith.mulf %12, %12 : vector<128x128xf32>
    %cst_13 = arith.constant dense<0.000000e+00> : vector<128xf32>
    %20 = vector.multi_reduction <add>, %19, %cst_13 [0] : vector<128x128xf32> to vector<128xf32>
    %21 = vector.shape_cast %20 : vector<128xf32> to vector<1x128xf32>
    %22 = vector.shape_cast %21 : vector<1x128xf32> to vector<1x128xf32>
    %23 = vector.broadcast %22 : vector<1x128xf32> to vector<8x128xf32>
    %c0_14 = arith.constant 0 : index
    %c0_15 = arith.constant 0 : index
    %24 = vector.load %arg7[%c0_14, %c0_15] : memref<8x128xf32, #tpu.memory_space<vmem>>, vector<8x128xf32>
    tpu.vector_store %arg7[%c0_14, %c0_15], %23 {strides = array<i32>} : memref<8x128xf32, #tpu.memory_space<vmem>>, vector<8x128xf32>,
    return
  }
  func.func @transform_0(%arg0: i32) -> (i32, i32) {
    %c0_i32 = arith.constant 0 : i32
    %c0_i32_0 = arith.constant 0 : i32
    return %arg0, %c0_i32 : i32, i32
  }
  func.func @transform_1(%arg0: i32) -> (i32, i32) {
    %c0_i32 = arith.constant 0 : i32
    %c0_i32_0 = arith.constant 0 : i32
    return %arg0, %c0_i32 : i32, i32
  }
  func.func @transform_2(%arg0: i32) -> (i32, i32) {
    %c0_i32 = arith.constant 0 : i32
    %c0_i32_0 = arith.constant 0 : i32
    %c0_i32_1 = arith.constant 0 : i32
    return %c0_i32, %c0_i32_0 : i32, i32
  }
  func.func @transform_3(%arg0: i32) -> (i32, i32) {
    %c0_i32 = arith.constant 0 : i32
    %c0_i32_0 = arith.constant 0 : i32
    %c0_i32_1 = arith.constant 0 : i32
    return %c0_i32, %c0_i32_0 : i32, i32
  }
  func.func @transform_4(%arg0: i32) -> (i32, i32) {
    %c0_i32 = arith.constant 0 : i32
    %c0_i32_0 = arith.constant 0 : i32
    return %arg0, %c0_i32 : i32, i32
  }
  func.func @transform_5(%arg0: i32) -> (i32, i32) {
    %c0_i32 = arith.constant 0 : i32
    %c0_i32_0 = arith.constant 0 : i32
    return %arg0, %c0_i32 : i32, i32
  }
  func.func @transform_6(%arg0: i32) -> (i32, i32) {
    %c0_i32 = arith.constant 0 : i32
    %c0_i32_0 = arith.constant 0 : i32
    return %arg0, %c0_i32 : i32, i32
  }
}

module attributes {stable_mosaic.version = 11 : i64} {
  func.func @_bn_act_kernel(%arg0: i32, %arg1: memref<32x128xf32, #tpu.memory_space<vmem>>, %arg2: memref<1x128xf32, #tpu.memory_space<vmem>>, %arg3: memref<1x128xf32, #tpu.memory_space<vmem>>, %arg4: memref<32x128xf32, #tpu.memory_space<vmem>>) attributes {dimension_semantics = [#tpu.dimension_semantics<parallel>], iteration_bounds = array<i64: 1>, scalar_prefetch = 0 : i64, scratch_operands = 0 : i64, tpu.core_type = #tpu.core_type<tc>, window_params = [{transform_indices = @transform_0, window_bounds = array<i64: 32, 128>}, {pipeline_mode = #tpu.pipeline_mode<synchronous>, transform_indices = @transform_1, window_bounds = array<i64: 1, 128>}, {pipeline_mode = #tpu.pipeline_mode<synchronous>, transform_indices = @transform_2, window_bounds = array<i64: 1, 128>}, {transform_indices = @transform_3, window_bounds = array<i64: 32, 128>}]} {
    %c0 = arith.constant 0 : index
    %c0_0 = arith.constant 0 : index
    %0 = vector.load %arg1[%c0, %c0_0] : memref<32x128xf32, #tpu.memory_space<vmem>>, vector<32x128xf32>
    %c0_1 = arith.constant 0 : index
    %c0_2 = arith.constant 0 : index
    %1 = vector.load %arg2[%c0_1, %c0_2] : memref<1x128xf32, #tpu.memory_space<vmem>>, vector<1x128xf32>
    %2 = vector.broadcast %1 : vector<1x128xf32> to vector<32x128xf32>
    %3 = arith.mulf %0, %2 : vector<32x128xf32>
    %c0_3 = arith.constant 0 : index
    %c0_4 = arith.constant 0 : index
    %4 = vector.load %arg3[%c0_3, %c0_4] : memref<1x128xf32, #tpu.memory_space<vmem>>, vector<1x128xf32>
    %5 = vector.broadcast %4 : vector<1x128xf32> to vector<32x128xf32>
    %6 = arith.addf %3, %5 : vector<32x128xf32>
    %cst = arith.constant 0.000000e+00 : f32
    %7 = vector.broadcast %cst : f32 to vector<32x128xf32>
    %8 = arith.maximumf %6, %7 : vector<32x128xf32>
    %c0_5 = arith.constant 0 : index
    %c0_6 = arith.constant 0 : index
    %9 = vector.load %arg4[%c0_5, %c0_6] : memref<32x128xf32, #tpu.memory_space<vmem>>, vector<32x128xf32>
    tpu.vector_store %arg4[%c0_5, %c0_6], %8 {strides = array<i32>} : memref<32x128xf32, #tpu.memory_space<vmem>>, vector<32x128xf32>,
    return
  }
  func.func @transform_0(%arg0: i32) -> (i32, i32) {
    %c0_i32 = arith.constant 0 : i32
    %c0_i32_0 = arith.constant 0 : i32
    return %arg0, %c0_i32 : i32, i32
  }
  func.func @transform_1(%arg0: i32) -> (i32, i32) {
    %c0_i32 = arith.constant 0 : i32
    %c0_i32_0 = arith.constant 0 : i32
    %c0_i32_1 = arith.constant 0 : i32
    return %c0_i32, %c0_i32_0 : i32, i32
  }
  func.func @transform_2(%arg0: i32) -> (i32, i32) {
    %c0_i32 = arith.constant 0 : i32
    %c0_i32_0 = arith.constant 0 : i32
    %c0_i32_1 = arith.constant 0 : i32
    return %c0_i32, %c0_i32_0 : i32, i32
  }
  func.func @transform_3(%arg0: i32) -> (i32, i32) {
    %c0_i32 = arith.constant 0 : i32
    %c0_i32_0 = arith.constant 0 : i32
    return %arg0, %c0_i32 : i32, i32
  }
}

module attributes {stable_mosaic.version = 11 : i64} {
  func.func @_pconv_kernel(%arg0: i32, %arg1: memref<32x72xbf16, #tpu.memory_space<vmem>>, %arg2: memref<32x1xf32, #tpu.memory_space<vmem>>, %arg3: memref<72x128xbf16, #tpu.memory_space<vmem>>, %arg4: memref<1x128xf32, #tpu.memory_space<vmem>>, %arg5: memref<32x128xf32, #tpu.memory_space<vmem>>, %arg6: memref<8x128xf32, #tpu.memory_space<vmem>>, %arg7: memref<8x128xf32, #tpu.memory_space<vmem>>) attributes {dimension_semantics = [#tpu.dimension_semantics<parallel>], iteration_bounds = array<i64: 1>, scalar_prefetch = 0 : i64, scratch_operands = 0 : i64, tpu.core_type = #tpu.core_type<tc>, window_params = [{transform_indices = @transform_0, window_bounds = array<i64: 32, 72>}, {transform_indices = @transform_1, window_bounds = array<i64: 32, 1>}, {pipeline_mode = #tpu.pipeline_mode<synchronous>, transform_indices = @transform_2, window_bounds = array<i64: 72, 128>}, {pipeline_mode = #tpu.pipeline_mode<synchronous>, transform_indices = @transform_3, window_bounds = array<i64: 1, 128>}, {transform_indices = @transform_4, window_bounds = array<i64: 32, 128>}, {transform_indices = @transform_5, window_bounds = array<i64: 8, 128>}, {transform_indices = @transform_6, window_bounds = array<i64: 8, 128>}]} {
    %c0 = arith.constant 0 : index
    %c0_0 = arith.constant 0 : index
    %0 = vector.load %arg1[%c0, %c0_0] : memref<32x72xbf16, #tpu.memory_space<vmem>>, vector<32x72xbf16>
    %c0_1 = arith.constant 0 : index
    %c0_2 = arith.constant 0 : index
    %1 = vector.load %arg3[%c0_1, %c0_2] : memref<72x128xbf16, #tpu.memory_space<vmem>>, vector<72x128xbf16>
    %cst = arith.constant dense<0.000000e+00> : vector<32x128xf32>
    %2 = tpu.matmul %0, %1, %cst {dimension_numbers = #tpu.dot_dimension_numbers<[1], [0], [0], [1], [0, 0, 1, 1], [], []>} : vector<32x72xbf16>, vector<72x128xbf16>, vector<32x128xf32> -> vector<32x128xf32>
    %c0_3 = arith.constant 0 : index
    %c0_4 = arith.constant 0 : index
    %3 = vector.load %arg4[%c0_3, %c0_4] : memref<1x128xf32, #tpu.memory_space<vmem>>, vector<1x128xf32>
    %4 = vector.broadcast %3 : vector<1x128xf32> to vector<32x128xf32>
    %5 = arith.addf %2, %4 : vector<32x128xf32>
    %c0_5 = arith.constant 0 : index
    %c0_6 = arith.constant 0 : index
    %6 = vector.load %arg2[%c0_5, %c0_6] : memref<32x1xf32, #tpu.memory_space<vmem>>, vector<32x1xf32>
    %cst_7 = arith.constant 0.000000e+00 : f32
    %7 = vector.broadcast %cst_7 : f32 to vector<32x1xf32>
    %8 = arith.cmpf ogt, %6, %7 : vector<32x1xf32>
    %9 = arith.extui %8 : vector<32x1xi1> to vector<32x1xi32>
    %10 = arith.sitofp %9 : vector<32x1xi32> to vector<32x1xf32>
    %11 = vector.broadcast %10 : vector<32x1xf32> to vector<32x128xf32>
    %12 = arith.mulf %5, %11 : vector<32x128xf32>
    %c0_8 = arith.constant 0 : index
    %c0_9 = arith.constant 0 : index
    %13 = vector.load %arg5[%c0_8, %c0_9] : memref<32x128xf32, #tpu.memory_space<vmem>>, vector<32x128xf32>
    tpu.vector_store %arg5[%c0_8, %c0_9], %12 {strides = array<i32>} : memref<32x128xf32, #tpu.memory_space<vmem>>, vector<32x128xf32>,
    %cst_10 = arith.constant dense<0.000000e+00> : vector<128xf32>
    %14 = vector.multi_reduction <add>, %12, %cst_10 [0] : vector<32x128xf32> to vector<128xf32>
    %15 = vector.shape_cast %14 : vector<128xf32> to vector<1x128xf32>
    %16 = vector.shape_cast %15 : vector<1x128xf32> to vector<1x128xf32>
    %17 = vector.broadcast %16 : vector<1x128xf32> to vector<8x128xf32>
    %c0_11 = arith.constant 0 : index
    %c0_12 = arith.constant 0 : index
    %18 = vector.load %arg6[%c0_11, %c0_12] : memref<8x128xf32, #tpu.memory_space<vmem>>, vector<8x128xf32>
    tpu.vector_store %arg6[%c0_11, %c0_12], %17 {strides = array<i32>} : memref<8x128xf32, #tpu.memory_space<vmem>>, vector<8x128xf32>,
    %19 = arith.mulf %12, %12 : vector<32x128xf32>
    %cst_13 = arith.constant dense<0.000000e+00> : vector<128xf32>
    %20 = vector.multi_reduction <add>, %19, %cst_13 [0] : vector<32x128xf32> to vector<128xf32>
    %21 = vector.shape_cast %20 : vector<128xf32> to vector<1x128xf32>
    %22 = vector.shape_cast %21 : vector<1x128xf32> to vector<1x128xf32>
    %23 = vector.broadcast %22 : vector<1x128xf32> to vector<8x128xf32>
    %c0_14 = arith.constant 0 : index
    %c0_15 = arith.constant 0 : index
    %24 = vector.load %arg7[%c0_14, %c0_15] : memref<8x128xf32, #tpu.memory_space<vmem>>, vector<8x128xf32>
    tpu.vector_store %arg7[%c0_14, %c0_15], %23 {strides = array<i32>} : memref<8x128xf32, #tpu.memory_space<vmem>>, vector<8x128xf32>,
    return
  }
  func.func @transform_0(%arg0: i32) -> (i32, i32) {
    %c0_i32 = arith.constant 0 : i32
    %c0_i32_0 = arith.constant 0 : i32
    return %arg0, %c0_i32 : i32, i32
  }
  func.func @transform_1(%arg0: i32) -> (i32, i32) {
    %c0_i32 = arith.constant 0 : i32
    %c0_i32_0 = arith.constant 0 : i32
    return %arg0, %c0_i32 : i32, i32
  }
  func.func @transform_2(%arg0: i32) -> (i32, i32) {
    %c0_i32 = arith.constant 0 : i32
    %c0_i32_0 = arith.constant 0 : i32
    %c0_i32_1 = arith.constant 0 : i32
    return %c0_i32, %c0_i32_0 : i32, i32
  }
  func.func @transform_3(%arg0: i32) -> (i32, i32) {
    %c0_i32 = arith.constant 0 : i32
    %c0_i32_0 = arith.constant 0 : i32
    %c0_i32_1 = arith.constant 0 : i32
    return %c0_i32, %c0_i32_0 : i32, i32
  }
  func.func @transform_4(%arg0: i32) -> (i32, i32) {
    %c0_i32 = arith.constant 0 : i32
    %c0_i32_0 = arith.constant 0 : i32
    return %arg0, %c0_i32 : i32, i32
  }
  func.func @transform_5(%arg0: i32) -> (i32, i32) {
    %c0_i32 = arith.constant 0 : i32
    %c0_i32_0 = arith.constant 0 : i32
    return %arg0, %c0_i32 : i32, i32
  }
  func.func @transform_6(%arg0: i32) -> (i32, i32) {
    %c0_i32 = arith.constant 0 : i32
    %c0_i32_0 = arith.constant 0 : i32
    return %arg0, %c0_i32 : i32, i32
  }
}

module attributes {stable_mosaic.version = 11 : i64} {
  func.func @_pconv_kernel(%arg0: i32, %arg1: memref<16x144xbf16, #tpu.memory_space<vmem>>, %arg2: memref<16x1xf32, #tpu.memory_space<vmem>>, %arg3: memref<144x128xbf16, #tpu.memory_space<vmem>>, %arg4: memref<1x128xf32, #tpu.memory_space<vmem>>, %arg5: memref<16x128xf32, #tpu.memory_space<vmem>>, %arg6: memref<8x128xf32, #tpu.memory_space<vmem>>, %arg7: memref<8x128xf32, #tpu.memory_space<vmem>>) attributes {dimension_semantics = [#tpu.dimension_semantics<parallel>], iteration_bounds = array<i64: 1>, scalar_prefetch = 0 : i64, scratch_operands = 0 : i64, tpu.core_type = #tpu.core_type<tc>, window_params = [{transform_indices = @transform_0, window_bounds = array<i64: 16, 144>}, {transform_indices = @transform_1, window_bounds = array<i64: 16, 1>}, {pipeline_mode = #tpu.pipeline_mode<synchronous>, transform_indices = @transform_2, window_bounds = array<i64: 144, 128>}, {pipeline_mode = #tpu.pipeline_mode<synchronous>, transform_indices = @transform_3, window_bounds = array<i64: 1, 128>}, {transform_indices = @transform_4, window_bounds = array<i64: 16, 128>}, {transform_indices = @transform_5, window_bounds = array<i64: 8, 128>}, {transform_indices = @transform_6, window_bounds = array<i64: 8, 128>}]} {
    %c0 = arith.constant 0 : index
    %c0_0 = arith.constant 0 : index
    %0 = vector.load %arg1[%c0, %c0_0] : memref<16x144xbf16, #tpu.memory_space<vmem>>, vector<16x144xbf16>
    %c0_1 = arith.constant 0 : index
    %c0_2 = arith.constant 0 : index
    %1 = vector.load %arg3[%c0_1, %c0_2] : memref<144x128xbf16, #tpu.memory_space<vmem>>, vector<144x128xbf16>
    %cst = arith.constant dense<0.000000e+00> : vector<16x128xf32>
    %2 = tpu.matmul %0, %1, %cst {dimension_numbers = #tpu.dot_dimension_numbers<[1], [0], [0], [1], [0, 0, 1, 1], [], []>} : vector<16x144xbf16>, vector<144x128xbf16>, vector<16x128xf32> -> vector<16x128xf32>
    %c0_3 = arith.constant 0 : index
    %c0_4 = arith.constant 0 : index
    %3 = vector.load %arg4[%c0_3, %c0_4] : memref<1x128xf32, #tpu.memory_space<vmem>>, vector<1x128xf32>
    %4 = vector.broadcast %3 : vector<1x128xf32> to vector<16x128xf32>
    %5 = arith.addf %2, %4 : vector<16x128xf32>
    %c0_5 = arith.constant 0 : index
    %c0_6 = arith.constant 0 : index
    %6 = vector.load %arg2[%c0_5, %c0_6] : memref<16x1xf32, #tpu.memory_space<vmem>>, vector<16x1xf32>
    %cst_7 = arith.constant 0.000000e+00 : f32
    %7 = vector.broadcast %cst_7 : f32 to vector<16x1xf32>
    %8 = arith.cmpf ogt, %6, %7 : vector<16x1xf32>
    %9 = arith.extui %8 : vector<16x1xi1> to vector<16x1xi32>
    %10 = arith.sitofp %9 : vector<16x1xi32> to vector<16x1xf32>
    %11 = vector.broadcast %10 : vector<16x1xf32> to vector<16x128xf32>
    %12 = arith.mulf %5, %11 : vector<16x128xf32>
    %c0_8 = arith.constant 0 : index
    %c0_9 = arith.constant 0 : index
    %13 = vector.load %arg5[%c0_8, %c0_9] : memref<16x128xf32, #tpu.memory_space<vmem>>, vector<16x128xf32>
    tpu.vector_store %arg5[%c0_8, %c0_9], %12 {strides = array<i32>} : memref<16x128xf32, #tpu.memory_space<vmem>>, vector<16x128xf32>,
    %cst_10 = arith.constant dense<0.000000e+00> : vector<128xf32>
    %14 = vector.multi_reduction <add>, %12, %cst_10 [0] : vector<16x128xf32> to vector<128xf32>
    %15 = vector.shape_cast %14 : vector<128xf32> to vector<1x128xf32>
    %16 = vector.shape_cast %15 : vector<1x128xf32> to vector<1x128xf32>
    %17 = vector.broadcast %16 : vector<1x128xf32> to vector<8x128xf32>
    %c0_11 = arith.constant 0 : index
    %c0_12 = arith.constant 0 : index
    %18 = vector.load %arg6[%c0_11, %c0_12] : memref<8x128xf32, #tpu.memory_space<vmem>>, vector<8x128xf32>
    tpu.vector_store %arg6[%c0_11, %c0_12], %17 {strides = array<i32>} : memref<8x128xf32, #tpu.memory_space<vmem>>, vector<8x128xf32>,
    %19 = arith.mulf %12, %12 : vector<16x128xf32>
    %cst_13 = arith.constant dense<0.000000e+00> : vector<128xf32>
    %20 = vector.multi_reduction <add>, %19, %cst_13 [0] : vector<16x128xf32> to vector<128xf32>
    %21 = vector.shape_cast %20 : vector<128xf32> to vector<1x128xf32>
    %22 = vector.shape_cast %21 : vector<1x128xf32> to vector<1x128xf32>
    %23 = vector.broadcast %22 : vector<1x128xf32> to vector<8x128xf32>
    %c0_14 = arith.constant 0 : index
    %c0_15 = arith.constant 0 : index
    %24 = vector.load %arg7[%c0_14, %c0_15] : memref<8x128xf32, #tpu.memory_space<vmem>>, vector<8x128xf32>
    tpu.vector_store %arg7[%c0_14, %c0_15], %23 {strides = array<i32>} : memref<8x128xf32, #tpu.memory_space<vmem>>, vector<8x128xf32>,
    return
  }
  func.func @transform_0(%arg0: i32) -> (i32, i32) {
    %c0_i32 = arith.constant 0 : i32
    %c0_i32_0 = arith.constant 0 : i32
    return %arg0, %c0_i32 : i32, i32
  }
  func.func @transform_1(%arg0: i32) -> (i32, i32) {
    %c0_i32 = arith.constant 0 : i32
    %c0_i32_0 = arith.constant 0 : i32
    return %arg0, %c0_i32 : i32, i32
  }
  func.func @transform_2(%arg0: i32) -> (i32, i32) {
    %c0_i32 = arith.constant 0 : i32
    %c0_i32_0 = arith.constant 0 : i32
    %c0_i32_1 = arith.constant 0 : i32
    return %c0_i32, %c0_i32_0 : i32, i32
  }
  func.func @transform_3(%arg0: i32) -> (i32, i32) {
    %c0_i32 = arith.constant 0 : i32
    %c0_i32_0 = arith.constant 0 : i32
    %c0_i32_1 = arith.constant 0 : i32
    return %c0_i32, %c0_i32_0 : i32, i32
  }
  func.func @transform_4(%arg0: i32) -> (i32, i32) {
    %c0_i32 = arith.constant 0 : i32
    %c0_i32_0 = arith.constant 0 : i32
    return %arg0, %c0_i32 : i32, i32
  }
  func.func @transform_5(%arg0: i32) -> (i32, i32) {
    %c0_i32 = arith.constant 0 : i32
    %c0_i32_0 = arith.constant 0 : i32
    return %arg0, %c0_i32 : i32, i32
  }
  func.func @transform_6(%arg0: i32) -> (i32, i32) {
    %c0_i32 = arith.constant 0 : i32
    %c0_i32_0 = arith.constant 0 : i32
    return %arg0, %c0_i32 : i32, i32
  }
}

module attributes {stable_mosaic.version = 11 : i64} {
  func.func @_bn_act_kernel(%arg0: i32, %arg1: memref<16x128xf32, #tpu.memory_space<vmem>>, %arg2: memref<1x128xf32, #tpu.memory_space<vmem>>, %arg3: memref<1x128xf32, #tpu.memory_space<vmem>>, %arg4: memref<16x128xf32, #tpu.memory_space<vmem>>) attributes {dimension_semantics = [#tpu.dimension_semantics<parallel>], iteration_bounds = array<i64: 1>, scalar_prefetch = 0 : i64, scratch_operands = 0 : i64, tpu.core_type = #tpu.core_type<tc>, window_params = [{transform_indices = @transform_0, window_bounds = array<i64: 16, 128>}, {pipeline_mode = #tpu.pipeline_mode<synchronous>, transform_indices = @transform_1, window_bounds = array<i64: 1, 128>}, {pipeline_mode = #tpu.pipeline_mode<synchronous>, transform_indices = @transform_2, window_bounds = array<i64: 1, 128>}, {transform_indices = @transform_3, window_bounds = array<i64: 16, 128>}]} {
    %c0 = arith.constant 0 : index
    %c0_0 = arith.constant 0 : index
    %0 = vector.load %arg1[%c0, %c0_0] : memref<16x128xf32, #tpu.memory_space<vmem>>, vector<16x128xf32>
    %c0_1 = arith.constant 0 : index
    %c0_2 = arith.constant 0 : index
    %1 = vector.load %arg2[%c0_1, %c0_2] : memref<1x128xf32, #tpu.memory_space<vmem>>, vector<1x128xf32>
    %2 = vector.broadcast %1 : vector<1x128xf32> to vector<16x128xf32>
    %3 = arith.mulf %0, %2 : vector<16x128xf32>
    %c0_3 = arith.constant 0 : index
    %c0_4 = arith.constant 0 : index
    %4 = vector.load %arg3[%c0_3, %c0_4] : memref<1x128xf32, #tpu.memory_space<vmem>>, vector<1x128xf32>
    %5 = vector.broadcast %4 : vector<1x128xf32> to vector<16x128xf32>
    %6 = arith.addf %3, %5 : vector<16x128xf32>
    %cst = arith.constant 0.000000e+00 : f32
    %7 = vector.broadcast %cst : f32 to vector<16x128xf32>
    %8 = arith.maximumf %6, %7 : vector<16x128xf32>
    %c0_5 = arith.constant 0 : index
    %c0_6 = arith.constant 0 : index
    %9 = vector.load %arg4[%c0_5, %c0_6] : memref<16x128xf32, #tpu.memory_space<vmem>>, vector<16x128xf32>
    tpu.vector_store %arg4[%c0_5, %c0_6], %8 {strides = array<i32>} : memref<16x128xf32, #tpu.memory_space<vmem>>, vector<16x128xf32>,
    return
  }
  func.func @transform_0(%arg0: i32) -> (i32, i32) {
    %c0_i32 = arith.constant 0 : i32
    %c0_i32_0 = arith.constant 0 : i32
    return %arg0, %c0_i32 : i32, i32
  }
  func.func @transform_1(%arg0: i32) -> (i32, i32) {
    %c0_i32 = arith.constant 0 : i32
    %c0_i32_0 = arith.constant 0 : i32
    %c0_i32_1 = arith.constant 0 : i32
    return %c0_i32, %c0_i32_0 : i32, i32
  }
  func.func @transform_2(%arg0: i32) -> (i32, i32) {
    %c0_i32 = arith.constant 0 : i32
    %c0_i32_0 = arith.constant 0 : i32
    %c0_i32_1 = arith.constant 0 : i32
    return %c0_i32, %c0_i32_0 : i32, i32
  }
  func.func @transform_3(%arg0: i32) -> (i32, i32) {
    %c0_i32 = arith.constant 0 : i32
    %c0_i32_0 = arith.constant 0 : i32
    return %arg0, %c0_i32 : i32, i32
  }
}

module attributes {stable_mosaic.version = 11 : i64} {
  func.func @_pconv_kernel(%arg0: i32, %arg1: memref<16x288xbf16, #tpu.memory_space<vmem>>, %arg2: memref<16x1xf32, #tpu.memory_space<vmem>>, %arg3: memref<288x128xbf16, #tpu.memory_space<vmem>>, %arg4: memref<1x128xf32, #tpu.memory_space<vmem>>, %arg5: memref<16x128xf32, #tpu.memory_space<vmem>>, %arg6: memref<8x128xf32, #tpu.memory_space<vmem>>, %arg7: memref<8x128xf32, #tpu.memory_space<vmem>>) attributes {dimension_semantics = [#tpu.dimension_semantics<parallel>], iteration_bounds = array<i64: 1>, scalar_prefetch = 0 : i64, scratch_operands = 0 : i64, tpu.core_type = #tpu.core_type<tc>, window_params = [{transform_indices = @transform_0, window_bounds = array<i64: 16, 288>}, {transform_indices = @transform_1, window_bounds = array<i64: 16, 1>}, {pipeline_mode = #tpu.pipeline_mode<synchronous>, transform_indices = @transform_2, window_bounds = array<i64: 288, 128>}, {pipeline_mode = #tpu.pipeline_mode<synchronous>, transform_indices = @transform_3, window_bounds = array<i64: 1, 128>}, {transform_indices = @transform_4, window_bounds = array<i64: 16, 128>}, {transform_indices = @transform_5, window_bounds = array<i64: 8, 128>}, {transform_indices = @transform_6, window_bounds = array<i64: 8, 128>}]} {
    %c0 = arith.constant 0 : index
    %c0_0 = arith.constant 0 : index
    %0 = vector.load %arg1[%c0, %c0_0] : memref<16x288xbf16, #tpu.memory_space<vmem>>, vector<16x288xbf16>
    %c0_1 = arith.constant 0 : index
    %c0_2 = arith.constant 0 : index
    %1 = vector.load %arg3[%c0_1, %c0_2] : memref<288x128xbf16, #tpu.memory_space<vmem>>, vector<288x128xbf16>
    %cst = arith.constant dense<0.000000e+00> : vector<16x128xf32>
    %2 = tpu.matmul %0, %1, %cst {dimension_numbers = #tpu.dot_dimension_numbers<[1], [0], [0], [1], [0, 0, 1, 1], [], []>} : vector<16x288xbf16>, vector<288x128xbf16>, vector<16x128xf32> -> vector<16x128xf32>
    %c0_3 = arith.constant 0 : index
    %c0_4 = arith.constant 0 : index
    %3 = vector.load %arg4[%c0_3, %c0_4] : memref<1x128xf32, #tpu.memory_space<vmem>>, vector<1x128xf32>
    %4 = vector.broadcast %3 : vector<1x128xf32> to vector<16x128xf32>
    %5 = arith.addf %2, %4 : vector<16x128xf32>
    %c0_5 = arith.constant 0 : index
    %c0_6 = arith.constant 0 : index
    %6 = vector.load %arg2[%c0_5, %c0_6] : memref<16x1xf32, #tpu.memory_space<vmem>>, vector<16x1xf32>
    %cst_7 = arith.constant 0.000000e+00 : f32
    %7 = vector.broadcast %cst_7 : f32 to vector<16x1xf32>
    %8 = arith.cmpf ogt, %6, %7 : vector<16x1xf32>
    %9 = arith.extui %8 : vector<16x1xi1> to vector<16x1xi32>
    %10 = arith.sitofp %9 : vector<16x1xi32> to vector<16x1xf32>
    %11 = vector.broadcast %10 : vector<16x1xf32> to vector<16x128xf32>
    %12 = arith.mulf %5, %11 : vector<16x128xf32>
    %c0_8 = arith.constant 0 : index
    %c0_9 = arith.constant 0 : index
    %13 = vector.load %arg5[%c0_8, %c0_9] : memref<16x128xf32, #tpu.memory_space<vmem>>, vector<16x128xf32>
    tpu.vector_store %arg5[%c0_8, %c0_9], %12 {strides = array<i32>} : memref<16x128xf32, #tpu.memory_space<vmem>>, vector<16x128xf32>,
    %cst_10 = arith.constant dense<0.000000e+00> : vector<128xf32>
    %14 = vector.multi_reduction <add>, %12, %cst_10 [0] : vector<16x128xf32> to vector<128xf32>
    %15 = vector.shape_cast %14 : vector<128xf32> to vector<1x128xf32>
    %16 = vector.shape_cast %15 : vector<1x128xf32> to vector<1x128xf32>
    %17 = vector.broadcast %16 : vector<1x128xf32> to vector<8x128xf32>
    %c0_11 = arith.constant 0 : index
    %c0_12 = arith.constant 0 : index
    %18 = vector.load %arg6[%c0_11, %c0_12] : memref<8x128xf32, #tpu.memory_space<vmem>>, vector<8x128xf32>
    tpu.vector_store %arg6[%c0_11, %c0_12], %17 {strides = array<i32>} : memref<8x128xf32, #tpu.memory_space<vmem>>, vector<8x128xf32>,
    %19 = arith.mulf %12, %12 : vector<16x128xf32>
    %cst_13 = arith.constant dense<0.000000e+00> : vector<128xf32>
    %20 = vector.multi_reduction <add>, %19, %cst_13 [0] : vector<16x128xf32> to vector<128xf32>
    %21 = vector.shape_cast %20 : vector<128xf32> to vector<1x128xf32>
    %22 = vector.shape_cast %21 : vector<1x128xf32> to vector<1x128xf32>
    %23 = vector.broadcast %22 : vector<1x128xf32> to vector<8x128xf32>
    %c0_14 = arith.constant 0 : index
    %c0_15 = arith.constant 0 : index
    %24 = vector.load %arg7[%c0_14, %c0_15] : memref<8x128xf32, #tpu.memory_space<vmem>>, vector<8x128xf32>
    tpu.vector_store %arg7[%c0_14, %c0_15], %23 {strides = array<i32>} : memref<8x128xf32, #tpu.memory_space<vmem>>, vector<8x128xf32>,
    return
  }
  func.func @transform_0(%arg0: i32) -> (i32, i32) {
    %c0_i32 = arith.constant 0 : i32
    %c0_i32_0 = arith.constant 0 : i32
    return %arg0, %c0_i32 : i32, i32
  }
  func.func @transform_1(%arg0: i32) -> (i32, i32) {
    %c0_i32 = arith.constant 0 : i32
    %c0_i32_0 = arith.constant 0 : i32
    return %arg0, %c0_i32 : i32, i32
  }
  func.func @transform_2(%arg0: i32) -> (i32, i32) {
    %c0_i32 = arith.constant 0 : i32
    %c0_i32_0 = arith.constant 0 : i32
    %c0_i32_1 = arith.constant 0 : i32
    return %c0_i32, %c0_i32_0 : i32, i32
  }
  func.func @transform_3(%arg0: i32) -> (i32, i32) {
    %c0_i32 = arith.constant 0 : i32
    %c0_i32_0 = arith.constant 0 : i32
    %c0_i32_1 = arith.constant 0 : i32
    return %c0_i32, %c0_i32_0 : i32, i32
  }
  func.func @transform_4(%arg0: i32) -> (i32, i32) {
    %c0_i32 = arith.constant 0 : i32
    %c0_i32_0 = arith.constant 0 : i32
    return %arg0, %c0_i32 : i32, i32
  }
  func.func @transform_5(%arg0: i32) -> (i32, i32) {
    %c0_i32 = arith.constant 0 : i32
    %c0_i32_0 = arith.constant 0 : i32
    return %arg0, %c0_i32 : i32, i32
  }
  func.func @transform_6(%arg0: i32) -> (i32, i32) {
    %c0_i32 = arith.constant 0 : i32
    %c0_i32_0 = arith.constant 0 : i32
    return %arg0, %c0_i32 : i32, i32
  }
}

module attributes {stable_mosaic.version = 11 : i64} {
  func.func @_pconv_kernel(%arg0: i32, %arg1: memref<16x864xbf16, #tpu.memory_space<vmem>>, %arg2: memref<16x1xf32, #tpu.memory_space<vmem>>, %arg3: memref<864x128xbf16, #tpu.memory_space<vmem>>, %arg4: memref<1x128xf32, #tpu.memory_space<vmem>>, %arg5: memref<16x128xf32, #tpu.memory_space<vmem>>, %arg6: memref<8x128xf32, #tpu.memory_space<vmem>>, %arg7: memref<8x128xf32, #tpu.memory_space<vmem>>) attributes {dimension_semantics = [#tpu.dimension_semantics<parallel>], iteration_bounds = array<i64: 1>, scalar_prefetch = 0 : i64, scratch_operands = 0 : i64, tpu.core_type = #tpu.core_type<tc>, window_params = [{transform_indices = @transform_0, window_bounds = array<i64: 16, 864>}, {transform_indices = @transform_1, window_bounds = array<i64: 16, 1>}, {pipeline_mode = #tpu.pipeline_mode<synchronous>, transform_indices = @transform_2, window_bounds = array<i64: 864, 128>}, {pipeline_mode = #tpu.pipeline_mode<synchronous>, transform_indices = @transform_3, window_bounds = array<i64: 1, 128>}, {transform_indices = @transform_4, window_bounds = array<i64: 16, 128>}, {transform_indices = @transform_5, window_bounds = array<i64: 8, 128>}, {transform_indices = @transform_6, window_bounds = array<i64: 8, 128>}]} {
    %c0 = arith.constant 0 : index
    %c0_0 = arith.constant 0 : index
    %0 = vector.load %arg1[%c0, %c0_0] : memref<16x864xbf16, #tpu.memory_space<vmem>>, vector<16x864xbf16>
    %c0_1 = arith.constant 0 : index
    %c0_2 = arith.constant 0 : index
    %1 = vector.load %arg3[%c0_1, %c0_2] : memref<864x128xbf16, #tpu.memory_space<vmem>>, vector<864x128xbf16>
    %cst = arith.constant dense<0.000000e+00> : vector<16x128xf32>
    %2 = tpu.matmul %0, %1, %cst {dimension_numbers = #tpu.dot_dimension_numbers<[1], [0], [0], [1], [0, 0, 1, 1], [], []>} : vector<16x864xbf16>, vector<864x128xbf16>, vector<16x128xf32> -> vector<16x128xf32>
    %c0_3 = arith.constant 0 : index
    %c0_4 = arith.constant 0 : index
    %3 = vector.load %arg4[%c0_3, %c0_4] : memref<1x128xf32, #tpu.memory_space<vmem>>, vector<1x128xf32>
    %4 = vector.broadcast %3 : vector<1x128xf32> to vector<16x128xf32>
    %5 = arith.addf %2, %4 : vector<16x128xf32>
    %c0_5 = arith.constant 0 : index
    %c0_6 = arith.constant 0 : index
    %6 = vector.load %arg2[%c0_5, %c0_6] : memref<16x1xf32, #tpu.memory_space<vmem>>, vector<16x1xf32>
    %cst_7 = arith.constant 0.000000e+00 : f32
    %7 = vector.broadcast %cst_7 : f32 to vector<16x1xf32>
    %8 = arith.cmpf ogt, %6, %7 : vector<16x1xf32>
    %9 = arith.extui %8 : vector<16x1xi1> to vector<16x1xi32>
    %10 = arith.sitofp %9 : vector<16x1xi32> to vector<16x1xf32>
    %11 = vector.broadcast %10 : vector<16x1xf32> to vector<16x128xf32>
    %12 = arith.mulf %5, %11 : vector<16x128xf32>
    %c0_8 = arith.constant 0 : index
    %c0_9 = arith.constant 0 : index
    %13 = vector.load %arg5[%c0_8, %c0_9] : memref<16x128xf32, #tpu.memory_space<vmem>>, vector<16x128xf32>
    tpu.vector_store %arg5[%c0_8, %c0_9], %12 {strides = array<i32>} : memref<16x128xf32, #tpu.memory_space<vmem>>, vector<16x128xf32>,
    %cst_10 = arith.constant dense<0.000000e+00> : vector<128xf32>
    %14 = vector.multi_reduction <add>, %12, %cst_10 [0] : vector<16x128xf32> to vector<128xf32>
    %15 = vector.shape_cast %14 : vector<128xf32> to vector<1x128xf32>
    %16 = vector.shape_cast %15 : vector<1x128xf32> to vector<1x128xf32>
    %17 = vector.broadcast %16 : vector<1x128xf32> to vector<8x128xf32>
    %c0_11 = arith.constant 0 : index
    %c0_12 = arith.constant 0 : index
    %18 = vector.load %arg6[%c0_11, %c0_12] : memref<8x128xf32, #tpu.memory_space<vmem>>, vector<8x128xf32>
    tpu.vector_store %arg6[%c0_11, %c0_12], %17 {strides = array<i32>} : memref<8x128xf32, #tpu.memory_space<vmem>>, vector<8x128xf32>,
    %19 = arith.mulf %12, %12 : vector<16x128xf32>
    %cst_13 = arith.constant dense<0.000000e+00> : vector<128xf32>
    %20 = vector.multi_reduction <add>, %19, %cst_13 [0] : vector<16x128xf32> to vector<128xf32>
    %21 = vector.shape_cast %20 : vector<128xf32> to vector<1x128xf32>
    %22 = vector.shape_cast %21 : vector<1x128xf32> to vector<1x128xf32>
    %23 = vector.broadcast %22 : vector<1x128xf32> to vector<8x128xf32>
    %c0_14 = arith.constant 0 : index
    %c0_15 = arith.constant 0 : index
    %24 = vector.load %arg7[%c0_14, %c0_15] : memref<8x128xf32, #tpu.memory_space<vmem>>, vector<8x128xf32>
    tpu.vector_store %arg7[%c0_14, %c0_15], %23 {strides = array<i32>} : memref<8x128xf32, #tpu.memory_space<vmem>>, vector<8x128xf32>,
    return
  }
  func.func @transform_0(%arg0: i32) -> (i32, i32) {
    %c0_i32 = arith.constant 0 : i32
    %c0_i32_0 = arith.constant 0 : i32
    return %arg0, %c0_i32 : i32, i32
  }
  func.func @transform_1(%arg0: i32) -> (i32, i32) {
    %c0_i32 = arith.constant 0 : i32
    %c0_i32_0 = arith.constant 0 : i32
    return %arg0, %c0_i32 : i32, i32
  }
  func.func @transform_2(%arg0: i32) -> (i32, i32) {
    %c0_i32 = arith.constant 0 : i32
    %c0_i32_0 = arith.constant 0 : i32
    %c0_i32_1 = arith.constant 0 : i32
    return %c0_i32, %c0_i32_0 : i32, i32
  }
  func.func @transform_3(%arg0: i32) -> (i32, i32) {
    %c0_i32 = arith.constant 0 : i32
    %c0_i32_0 = arith.constant 0 : i32
    %c0_i32_1 = arith.constant 0 : i32
    return %c0_i32, %c0_i32_0 : i32, i32
  }
  func.func @transform_4(%arg0: i32) -> (i32, i32) {
    %c0_i32 = arith.constant 0 : i32
    %c0_i32_0 = arith.constant 0 : i32
    return %arg0, %c0_i32 : i32, i32
  }
  func.func @transform_5(%arg0: i32) -> (i32, i32) {
    %c0_i32 = arith.constant 0 : i32
    %c0_i32_0 = arith.constant 0 : i32
    return %arg0, %c0_i32 : i32, i32
  }
  func.func @transform_6(%arg0: i32) -> (i32, i32) {
    %c0_i32 = arith.constant 0 : i32
    %c0_i32_0 = arith.constant 0 : i32
    return %arg0, %c0_i32 : i32, i32
  }
}

module attributes {stable_mosaic.version = 11 : i64} {
  func.func @_bn_act_kernel(%arg0: i32, %arg1: memref<16x128xf32, #tpu.memory_space<vmem>>, %arg2: memref<1x128xf32, #tpu.memory_space<vmem>>, %arg3: memref<1x128xf32, #tpu.memory_space<vmem>>, %arg4: memref<16x128xf32, #tpu.memory_space<vmem>>) attributes {dimension_semantics = [#tpu.dimension_semantics<parallel>], iteration_bounds = array<i64: 1>, scalar_prefetch = 0 : i64, scratch_operands = 0 : i64, tpu.core_type = #tpu.core_type<tc>, window_params = [{transform_indices = @transform_0, window_bounds = array<i64: 16, 128>}, {pipeline_mode = #tpu.pipeline_mode<synchronous>, transform_indices = @transform_1, window_bounds = array<i64: 1, 128>}, {pipeline_mode = #tpu.pipeline_mode<synchronous>, transform_indices = @transform_2, window_bounds = array<i64: 1, 128>}, {transform_indices = @transform_3, window_bounds = array<i64: 16, 128>}]} {
    %c0 = arith.constant 0 : index
    %c0_0 = arith.constant 0 : index
    %0 = vector.load %arg1[%c0, %c0_0] : memref<16x128xf32, #tpu.memory_space<vmem>>, vector<16x128xf32>
    %c0_1 = arith.constant 0 : index
    %c0_2 = arith.constant 0 : index
    %1 = vector.load %arg2[%c0_1, %c0_2] : memref<1x128xf32, #tpu.memory_space<vmem>>, vector<1x128xf32>
    %2 = vector.broadcast %1 : vector<1x128xf32> to vector<16x128xf32>
    %3 = arith.mulf %0, %2 : vector<16x128xf32>
    %c0_3 = arith.constant 0 : index
    %c0_4 = arith.constant 0 : index
    %4 = vector.load %arg3[%c0_3, %c0_4] : memref<1x128xf32, #tpu.memory_space<vmem>>, vector<1x128xf32>
    %5 = vector.broadcast %4 : vector<1x128xf32> to vector<16x128xf32>
    %6 = arith.addf %3, %5 : vector<16x128xf32>
    %cst = arith.constant 0.000000e+00 : f32
    %7 = vector.broadcast %cst : f32 to vector<16x128xf32>
    %8 = arith.cmpf oge, %6, %7 : vector<16x128xf32>
    %cst_5 = arith.constant 0.00999999977 : f32
    %9 = vector.broadcast %cst_5 : f32 to vector<16x128xf32>
    %10 = arith.mulf %9, %6 : vector<16x128xf32>
    %11 = arith.select %8, %6, %10 : vector<16x128xi1>, vector<16x128xf32>
    %c0_6 = arith.constant 0 : index
    %c0_7 = arith.constant 0 : index
    %12 = vector.load %arg4[%c0_6, %c0_7] : memref<16x128xf32, #tpu.memory_space<vmem>>, vector<16x128xf32>
    tpu.vector_store %arg4[%c0_6, %c0_7], %11 {strides = array<i32>} : memref<16x128xf32, #tpu.memory_space<vmem>>, vector<16x128xf32>,
    return
  }
  func.func @transform_0(%arg0: i32) -> (i32, i32) {
    %c0_i32 = arith.constant 0 : i32
    %c0_i32_0 = arith.constant 0 : i32
    return %arg0, %c0_i32 : i32, i32
  }
  func.func @transform_1(%arg0: i32) -> (i32, i32) {
    %c0_i32 = arith.constant 0 : i32
    %c0_i32_0 = arith.constant 0 : i32
    %c0_i32_1 = arith.constant 0 : i32
    return %c0_i32, %c0_i32_0 : i32, i32
  }
  func.func @transform_2(%arg0: i32) -> (i32, i32) {
    %c0_i32 = arith.constant 0 : i32
    %c0_i32_0 = arith.constant 0 : i32
    %c0_i32_1 = arith.constant 0 : i32
    return %c0_i32, %c0_i32_0 : i32, i32
  }
  func.func @transform_3(%arg0: i32) -> (i32, i32) {
    %c0_i32 = arith.constant 0 : i32
    %c0_i32_0 = arith.constant 0 : i32
    return %arg0, %c0_i32 : i32, i32
  }
}

module attributes {stable_mosaic.version = 11 : i64} {
  func.func @_bn_act_kernel(%arg0: i32, %arg1: memref<32x128xf32, #tpu.memory_space<vmem>>, %arg2: memref<1x128xf32, #tpu.memory_space<vmem>>, %arg3: memref<1x128xf32, #tpu.memory_space<vmem>>, %arg4: memref<32x128xf32, #tpu.memory_space<vmem>>) attributes {dimension_semantics = [#tpu.dimension_semantics<parallel>], iteration_bounds = array<i64: 1>, scalar_prefetch = 0 : i64, scratch_operands = 0 : i64, tpu.core_type = #tpu.core_type<tc>, window_params = [{transform_indices = @transform_0, window_bounds = array<i64: 32, 128>}, {pipeline_mode = #tpu.pipeline_mode<synchronous>, transform_indices = @transform_1, window_bounds = array<i64: 1, 128>}, {pipeline_mode = #tpu.pipeline_mode<synchronous>, transform_indices = @transform_2, window_bounds = array<i64: 1, 128>}, {transform_indices = @transform_3, window_bounds = array<i64: 32, 128>}]} {
    %c0 = arith.constant 0 : index
    %c0_0 = arith.constant 0 : index
    %0 = vector.load %arg1[%c0, %c0_0] : memref<32x128xf32, #tpu.memory_space<vmem>>, vector<32x128xf32>
    %c0_1 = arith.constant 0 : index
    %c0_2 = arith.constant 0 : index
    %1 = vector.load %arg2[%c0_1, %c0_2] : memref<1x128xf32, #tpu.memory_space<vmem>>, vector<1x128xf32>
    %2 = vector.broadcast %1 : vector<1x128xf32> to vector<32x128xf32>
    %3 = arith.mulf %0, %2 : vector<32x128xf32>
    %c0_3 = arith.constant 0 : index
    %c0_4 = arith.constant 0 : index
    %4 = vector.load %arg3[%c0_3, %c0_4] : memref<1x128xf32, #tpu.memory_space<vmem>>, vector<1x128xf32>
    %5 = vector.broadcast %4 : vector<1x128xf32> to vector<32x128xf32>
    %6 = arith.addf %3, %5 : vector<32x128xf32>
    %cst = arith.constant 0.000000e+00 : f32
    %7 = vector.broadcast %cst : f32 to vector<32x128xf32>
    %8 = arith.cmpf oge, %6, %7 : vector<32x128xf32>
    %cst_5 = arith.constant 0.00999999977 : f32
    %9 = vector.broadcast %cst_5 : f32 to vector<32x128xf32>
    %10 = arith.mulf %9, %6 : vector<32x128xf32>
    %11 = arith.select %8, %6, %10 : vector<32x128xi1>, vector<32x128xf32>
    %c0_6 = arith.constant 0 : index
    %c0_7 = arith.constant 0 : index
    %12 = vector.load %arg4[%c0_6, %c0_7] : memref<32x128xf32, #tpu.memory_space<vmem>>, vector<32x128xf32>
    tpu.vector_store %arg4[%c0_6, %c0_7], %11 {strides = array<i32>} : memref<32x128xf32, #tpu.memory_space<vmem>>, vector<32x128xf32>,
    return
  }
  func.func @transform_0(%arg0: i32) -> (i32, i32) {
    %c0_i32 = arith.constant 0 : i32
    %c0_i32_0 = arith.constant 0 : i32
    return %arg0, %c0_i32 : i32, i32
  }
  func.func @transform_1(%arg0: i32) -> (i32, i32) {
    %c0_i32 = arith.constant 0 : i32
    %c0_i32_0 = arith.constant 0 : i32
    %c0_i32_1 = arith.constant 0 : i32
    return %c0_i32, %c0_i32_0 : i32, i32
  }
  func.func @transform_2(%arg0: i32) -> (i32, i32) {
    %c0_i32 = arith.constant 0 : i32
    %c0_i32_0 = arith.constant 0 : i32
    %c0_i32_1 = arith.constant 0 : i32
    return %c0_i32, %c0_i32_0 : i32, i32
  }
  func.func @transform_3(%arg0: i32) -> (i32, i32) {
    %c0_i32 = arith.constant 0 : i32
    %c0_i32_0 = arith.constant 0 : i32
    return %arg0, %c0_i32 : i32, i32
  }
}

module attributes {stable_mosaic.version = 11 : i64} {
  func.func @_pconv_kernel(%arg0: i32, %arg1: memref<32x432xbf16, #tpu.memory_space<vmem>>, %arg2: memref<32x1xf32, #tpu.memory_space<vmem>>, %arg3: memref<432x128xbf16, #tpu.memory_space<vmem>>, %arg4: memref<1x128xf32, #tpu.memory_space<vmem>>, %arg5: memref<32x128xf32, #tpu.memory_space<vmem>>, %arg6: memref<8x128xf32, #tpu.memory_space<vmem>>, %arg7: memref<8x128xf32, #tpu.memory_space<vmem>>) attributes {dimension_semantics = [#tpu.dimension_semantics<parallel>], iteration_bounds = array<i64: 1>, scalar_prefetch = 0 : i64, scratch_operands = 0 : i64, tpu.core_type = #tpu.core_type<tc>, window_params = [{transform_indices = @transform_0, window_bounds = array<i64: 32, 432>}, {transform_indices = @transform_1, window_bounds = array<i64: 32, 1>}, {pipeline_mode = #tpu.pipeline_mode<synchronous>, transform_indices = @transform_2, window_bounds = array<i64: 432, 128>}, {pipeline_mode = #tpu.pipeline_mode<synchronous>, transform_indices = @transform_3, window_bounds = array<i64: 1, 128>}, {transform_indices = @transform_4, window_bounds = array<i64: 32, 128>}, {transform_indices = @transform_5, window_bounds = array<i64: 8, 128>}, {transform_indices = @transform_6, window_bounds = array<i64: 8, 128>}]} {
    %c0 = arith.constant 0 : index
    %c0_0 = arith.constant 0 : index
    %0 = vector.load %arg1[%c0, %c0_0] : memref<32x432xbf16, #tpu.memory_space<vmem>>, vector<32x432xbf16>
    %c0_1 = arith.constant 0 : index
    %c0_2 = arith.constant 0 : index
    %1 = vector.load %arg3[%c0_1, %c0_2] : memref<432x128xbf16, #tpu.memory_space<vmem>>, vector<432x128xbf16>
    %cst = arith.constant dense<0.000000e+00> : vector<32x128xf32>
    %2 = tpu.matmul %0, %1, %cst {dimension_numbers = #tpu.dot_dimension_numbers<[1], [0], [0], [1], [0, 0, 1, 1], [], []>} : vector<32x432xbf16>, vector<432x128xbf16>, vector<32x128xf32> -> vector<32x128xf32>
    %c0_3 = arith.constant 0 : index
    %c0_4 = arith.constant 0 : index
    %3 = vector.load %arg4[%c0_3, %c0_4] : memref<1x128xf32, #tpu.memory_space<vmem>>, vector<1x128xf32>
    %4 = vector.broadcast %3 : vector<1x128xf32> to vector<32x128xf32>
    %5 = arith.addf %2, %4 : vector<32x128xf32>
    %c0_5 = arith.constant 0 : index
    %c0_6 = arith.constant 0 : index
    %6 = vector.load %arg2[%c0_5, %c0_6] : memref<32x1xf32, #tpu.memory_space<vmem>>, vector<32x1xf32>
    %cst_7 = arith.constant 0.000000e+00 : f32
    %7 = vector.broadcast %cst_7 : f32 to vector<32x1xf32>
    %8 = arith.cmpf ogt, %6, %7 : vector<32x1xf32>
    %9 = arith.extui %8 : vector<32x1xi1> to vector<32x1xi32>
    %10 = arith.sitofp %9 : vector<32x1xi32> to vector<32x1xf32>
    %11 = vector.broadcast %10 : vector<32x1xf32> to vector<32x128xf32>
    %12 = arith.mulf %5, %11 : vector<32x128xf32>
    %c0_8 = arith.constant 0 : index
    %c0_9 = arith.constant 0 : index
    %13 = vector.load %arg5[%c0_8, %c0_9] : memref<32x128xf32, #tpu.memory_space<vmem>>, vector<32x128xf32>
    tpu.vector_store %arg5[%c0_8, %c0_9], %12 {strides = array<i32>} : memref<32x128xf32, #tpu.memory_space<vmem>>, vector<32x128xf32>,
    %cst_10 = arith.constant dense<0.000000e+00> : vector<128xf32>
    %14 = vector.multi_reduction <add>, %12, %cst_10 [0] : vector<32x128xf32> to vector<128xf32>
    %15 = vector.shape_cast %14 : vector<128xf32> to vector<1x128xf32>
    %16 = vector.shape_cast %15 : vector<1x128xf32> to vector<1x128xf32>
    %17 = vector.broadcast %16 : vector<1x128xf32> to vector<8x128xf32>
    %c0_11 = arith.constant 0 : index
    %c0_12 = arith.constant 0 : index
    %18 = vector.load %arg6[%c0_11, %c0_12] : memref<8x128xf32, #tpu.memory_space<vmem>>, vector<8x128xf32>
    tpu.vector_store %arg6[%c0_11, %c0_12], %17 {strides = array<i32>} : memref<8x128xf32, #tpu.memory_space<vmem>>, vector<8x128xf32>,
    %19 = arith.mulf %12, %12 : vector<32x128xf32>
    %cst_13 = arith.constant dense<0.000000e+00> : vector<128xf32>
    %20 = vector.multi_reduction <add>, %19, %cst_13 [0] : vector<32x128xf32> to vector<128xf32>
    %21 = vector.shape_cast %20 : vector<128xf32> to vector<1x128xf32>
    %22 = vector.shape_cast %21 : vector<1x128xf32> to vector<1x128xf32>
    %23 = vector.broadcast %22 : vector<1x128xf32> to vector<8x128xf32>
    %c0_14 = arith.constant 0 : index
    %c0_15 = arith.constant 0 : index
    %24 = vector.load %arg7[%c0_14, %c0_15] : memref<8x128xf32, #tpu.memory_space<vmem>>, vector<8x128xf32>
    tpu.vector_store %arg7[%c0_14, %c0_15], %23 {strides = array<i32>} : memref<8x128xf32, #tpu.memory_space<vmem>>, vector<8x128xf32>,
    return
  }
  func.func @transform_0(%arg0: i32) -> (i32, i32) {
    %c0_i32 = arith.constant 0 : i32
    %c0_i32_0 = arith.constant 0 : i32
    return %arg0, %c0_i32 : i32, i32
  }
  func.func @transform_1(%arg0: i32) -> (i32, i32) {
    %c0_i32 = arith.constant 0 : i32
    %c0_i32_0 = arith.constant 0 : i32
    return %arg0, %c0_i32 : i32, i32
  }
  func.func @transform_2(%arg0: i32) -> (i32, i32) {
    %c0_i32 = arith.constant 0 : i32
    %c0_i32_0 = arith.constant 0 : i32
    %c0_i32_1 = arith.constant 0 : i32
    return %c0_i32, %c0_i32_0 : i32, i32
  }
  func.func @transform_3(%arg0: i32) -> (i32, i32) {
    %c0_i32 = arith.constant 0 : i32
    %c0_i32_0 = arith.constant 0 : i32
    %c0_i32_1 = arith.constant 0 : i32
    return %c0_i32, %c0_i32_0 : i32, i32
  }
  func.func @transform_4(%arg0: i32) -> (i32, i32) {
    %c0_i32 = arith.constant 0 : i32
    %c0_i32_0 = arith.constant 0 : i32
    return %arg0, %c0_i32 : i32, i32
  }
  func.func @transform_5(%arg0: i32) -> (i32, i32) {
    %c0_i32 = arith.constant 0 : i32
    %c0_i32_0 = arith.constant 0 : i32
    return %arg0, %c0_i32 : i32, i32
  }
  func.func @transform_6(%arg0: i32) -> (i32, i32) {
    %c0_i32 = arith.constant 0 : i32
    %c0_i32_0 = arith.constant 0 : i32
    return %arg0, %c0_i32 : i32, i32
  }
}

module attributes {stable_mosaic.version = 11 : i64} {
  func.func @_pconv_kernel(%arg0: i32, %arg1: memref<128x216xbf16, #tpu.memory_space<vmem>>, %arg2: memref<128x1xf32, #tpu.memory_space<vmem>>, %arg3: memref<216x128xbf16, #tpu.memory_space<vmem>>, %arg4: memref<1x128xf32, #tpu.memory_space<vmem>>, %arg5: memref<128x128xf32, #tpu.memory_space<vmem>>, %arg6: memref<8x128xf32, #tpu.memory_space<vmem>>, %arg7: memref<8x128xf32, #tpu.memory_space<vmem>>) attributes {dimension_semantics = [#tpu.dimension_semantics<parallel>], iteration_bounds = array<i64: 1>, scalar_prefetch = 0 : i64, scratch_operands = 0 : i64, tpu.core_type = #tpu.core_type<tc>, window_params = [{transform_indices = @transform_0, window_bounds = array<i64: 128, 216>}, {transform_indices = @transform_1, window_bounds = array<i64: 128, 1>}, {pipeline_mode = #tpu.pipeline_mode<synchronous>, transform_indices = @transform_2, window_bounds = array<i64: 216, 128>}, {pipeline_mode = #tpu.pipeline_mode<synchronous>, transform_indices = @transform_3, window_bounds = array<i64: 1, 128>}, {transform_indices = @transform_4, window_bounds = array<i64: 128, 128>}, {transform_indices = @transform_5, window_bounds = array<i64: 8, 128>}, {transform_indices = @transform_6, window_bounds = array<i64: 8, 128>}]} {
    %c0 = arith.constant 0 : index
    %c0_0 = arith.constant 0 : index
    %0 = vector.load %arg1[%c0, %c0_0] : memref<128x216xbf16, #tpu.memory_space<vmem>>, vector<128x216xbf16>
    %c0_1 = arith.constant 0 : index
    %c0_2 = arith.constant 0 : index
    %1 = vector.load %arg3[%c0_1, %c0_2] : memref<216x128xbf16, #tpu.memory_space<vmem>>, vector<216x128xbf16>
    %cst = arith.constant dense<0.000000e+00> : vector<128x128xf32>
    %2 = tpu.matmul %0, %1, %cst {dimension_numbers = #tpu.dot_dimension_numbers<[1], [0], [0], [1], [0, 0, 1, 1], [], []>} : vector<128x216xbf16>, vector<216x128xbf16>, vector<128x128xf32> -> vector<128x128xf32>
    %c0_3 = arith.constant 0 : index
    %c0_4 = arith.constant 0 : index
    %3 = vector.load %arg4[%c0_3, %c0_4] : memref<1x128xf32, #tpu.memory_space<vmem>>, vector<1x128xf32>
    %4 = vector.broadcast %3 : vector<1x128xf32> to vector<128x128xf32>
    %5 = arith.addf %2, %4 : vector<128x128xf32>
    %c0_5 = arith.constant 0 : index
    %c0_6 = arith.constant 0 : index
    %6 = vector.load %arg2[%c0_5, %c0_6] : memref<128x1xf32, #tpu.memory_space<vmem>>, vector<128x1xf32>
    %cst_7 = arith.constant 0.000000e+00 : f32
    %7 = vector.broadcast %cst_7 : f32 to vector<128x1xf32>
    %8 = arith.cmpf ogt, %6, %7 : vector<128x1xf32>
    %9 = arith.extui %8 : vector<128x1xi1> to vector<128x1xi32>
    %10 = arith.sitofp %9 : vector<128x1xi32> to vector<128x1xf32>
    %11 = vector.broadcast %10 : vector<128x1xf32> to vector<128x128xf32>
    %12 = arith.mulf %5, %11 : vector<128x128xf32>
    %c0_8 = arith.constant 0 : index
    %c0_9 = arith.constant 0 : index
    %13 = vector.load %arg5[%c0_8, %c0_9] : memref<128x128xf32, #tpu.memory_space<vmem>>, vector<128x128xf32>
    tpu.vector_store %arg5[%c0_8, %c0_9], %12 {strides = array<i32>} : memref<128x128xf32, #tpu.memory_space<vmem>>, vector<128x128xf32>,
    %cst_10 = arith.constant dense<0.000000e+00> : vector<128xf32>
    %14 = vector.multi_reduction <add>, %12, %cst_10 [0] : vector<128x128xf32> to vector<128xf32>
    %15 = vector.shape_cast %14 : vector<128xf32> to vector<1x128xf32>
    %16 = vector.shape_cast %15 : vector<1x128xf32> to vector<1x128xf32>
    %17 = vector.broadcast %16 : vector<1x128xf32> to vector<8x128xf32>
    %c0_11 = arith.constant 0 : index
    %c0_12 = arith.constant 0 : index
    %18 = vector.load %arg6[%c0_11, %c0_12] : memref<8x128xf32, #tpu.memory_space<vmem>>, vector<8x128xf32>
    tpu.vector_store %arg6[%c0_11, %c0_12], %17 {strides = array<i32>} : memref<8x128xf32, #tpu.memory_space<vmem>>, vector<8x128xf32>,
    %19 = arith.mulf %12, %12 : vector<128x128xf32>
    %cst_13 = arith.constant dense<0.000000e+00> : vector<128xf32>
    %20 = vector.multi_reduction <add>, %19, %cst_13 [0] : vector<128x128xf32> to vector<128xf32>
    %21 = vector.shape_cast %20 : vector<128xf32> to vector<1x128xf32>
    %22 = vector.shape_cast %21 : vector<1x128xf32> to vector<1x128xf32>
    %23 = vector.broadcast %22 : vector<1x128xf32> to vector<8x128xf32>
    %c0_14 = arith.constant 0 : index
    %c0_15 = arith.constant 0 : index
    %24 = vector.load %arg7[%c0_14, %c0_15] : memref<8x128xf32, #tpu.memory_space<vmem>>, vector<8x128xf32>
    tpu.vector_store %arg7[%c0_14, %c0_15], %23 {strides = array<i32>} : memref<8x128xf32, #tpu.memory_space<vmem>>, vector<8x128xf32>,
    return
  }
  func.func @transform_0(%arg0: i32) -> (i32, i32) {
    %c0_i32 = arith.constant 0 : i32
    %c0_i32_0 = arith.constant 0 : i32
    return %arg0, %c0_i32 : i32, i32
  }
  func.func @transform_1(%arg0: i32) -> (i32, i32) {
    %c0_i32 = arith.constant 0 : i32
    %c0_i32_0 = arith.constant 0 : i32
    return %arg0, %c0_i32 : i32, i32
  }
  func.func @transform_2(%arg0: i32) -> (i32, i32) {
    %c0_i32 = arith.constant 0 : i32
    %c0_i32_0 = arith.constant 0 : i32
    %c0_i32_1 = arith.constant 0 : i32
    return %c0_i32, %c0_i32_0 : i32, i32
  }
  func.func @transform_3(%arg0: i32) -> (i32, i32) {
    %c0_i32 = arith.constant 0 : i32
    %c0_i32_0 = arith.constant 0 : i32
    %c0_i32_1 = arith.constant 0 : i32
    return %c0_i32, %c0_i32_0 : i32, i32
  }
  func.func @transform_4(%arg0: i32) -> (i32, i32) {
    %c0_i32 = arith.constant 0 : i32
    %c0_i32_0 = arith.constant 0 : i32
    return %arg0, %c0_i32 : i32, i32
  }
  func.func @transform_5(%arg0: i32) -> (i32, i32) {
    %c0_i32 = arith.constant 0 : i32
    %c0_i32_0 = arith.constant 0 : i32
    return %arg0, %c0_i32 : i32, i32
  }
  func.func @transform_6(%arg0: i32) -> (i32, i32) {
    %c0_i32 = arith.constant 0 : i32
    %c0_i32_0 = arith.constant 0 : i32
    return %arg0, %c0_i32 : i32, i32
  }
}

module attributes {stable_mosaic.version = 11 : i64} {
  func.func @_bn_act_kernel(%arg0: i32, %arg1: memref<128x128xf32, #tpu.memory_space<vmem>>, %arg2: memref<1x128xf32, #tpu.memory_space<vmem>>, %arg3: memref<1x128xf32, #tpu.memory_space<vmem>>, %arg4: memref<128x128xf32, #tpu.memory_space<vmem>>) attributes {dimension_semantics = [#tpu.dimension_semantics<parallel>], iteration_bounds = array<i64: 1>, scalar_prefetch = 0 : i64, scratch_operands = 0 : i64, tpu.core_type = #tpu.core_type<tc>, window_params = [{transform_indices = @transform_0, window_bounds = array<i64: 128, 128>}, {pipeline_mode = #tpu.pipeline_mode<synchronous>, transform_indices = @transform_1, window_bounds = array<i64: 1, 128>}, {pipeline_mode = #tpu.pipeline_mode<synchronous>, transform_indices = @transform_2, window_bounds = array<i64: 1, 128>}, {transform_indices = @transform_3, window_bounds = array<i64: 128, 128>}]} {
    %c0 = arith.constant 0 : index
    %c0_0 = arith.constant 0 : index
    %0 = vector.load %arg1[%c0, %c0_0] : memref<128x128xf32, #tpu.memory_space<vmem>>, vector<128x128xf32>
    %c0_1 = arith.constant 0 : index
    %c0_2 = arith.constant 0 : index
    %1 = vector.load %arg2[%c0_1, %c0_2] : memref<1x128xf32, #tpu.memory_space<vmem>>, vector<1x128xf32>
    %2 = vector.broadcast %1 : vector<1x128xf32> to vector<128x128xf32>
    %3 = arith.mulf %0, %2 : vector<128x128xf32>
    %c0_3 = arith.constant 0 : index
    %c0_4 = arith.constant 0 : index
    %4 = vector.load %arg3[%c0_3, %c0_4] : memref<1x128xf32, #tpu.memory_space<vmem>>, vector<1x128xf32>
    %5 = vector.broadcast %4 : vector<1x128xf32> to vector<128x128xf32>
    %6 = arith.addf %3, %5 : vector<128x128xf32>
    %cst = arith.constant 0.000000e+00 : f32
    %7 = vector.broadcast %cst : f32 to vector<128x128xf32>
    %8 = arith.cmpf oge, %6, %7 : vector<128x128xf32>
    %cst_5 = arith.constant 0.00999999977 : f32
    %9 = vector.broadcast %cst_5 : f32 to vector<128x128xf32>
    %10 = arith.mulf %9, %6 : vector<128x128xf32>
    %11 = arith.select %8, %6, %10 : vector<128x128xi1>, vector<128x128xf32>
    %c0_6 = arith.constant 0 : index
    %c0_7 = arith.constant 0 : index
    %12 = vector.load %arg4[%c0_6, %c0_7] : memref<128x128xf32, #tpu.memory_space<vmem>>, vector<128x128xf32>
    tpu.vector_store %arg4[%c0_6, %c0_7], %11 {strides = array<i32>} : memref<128x128xf32, #tpu.memory_space<vmem>>, vector<128x128xf32>,
    return
  }
  func.func @transform_0(%arg0: i32) -> (i32, i32) {
    %c0_i32 = arith.constant 0 : i32
    %c0_i32_0 = arith.constant 0 : i32
    return %arg0, %c0_i32 : i32, i32
  }
  func.func @transform_1(%arg0: i32) -> (i32, i32) {
    %c0_i32 = arith.constant 0 : i32
    %c0_i32_0 = arith.constant 0 : i32
    %c0_i32_1 = arith.constant 0 : i32
    return %c0_i32, %c0_i32_0 : i32, i32
  }
  func.func @transform_2(%arg0: i32) -> (i32, i32) {
    %c0_i32 = arith.constant 0 : i32
    %c0_i32_0 = arith.constant 0 : i32
    %c0_i32_1 = arith.constant 0 : i32
    return %c0_i32, %c0_i32_0 : i32, i32
  }
  func.func @transform_3(%arg0: i32) -> (i32, i32) {
    %c0_i32 = arith.constant 0 : i32
    %c0_i32_0 = arith.constant 0 : i32
    return %arg0, %c0_i32 : i32, i32
  }
}

module attributes {stable_mosaic.version = 11 : i64} {
  func.func @_pconv_kernel(%arg0: i32, %arg1: memref<256x108xbf16, #tpu.memory_space<vmem>>, %arg2: memref<256x1xf32, #tpu.memory_space<vmem>>, %arg3: memref<108x128xbf16, #tpu.memory_space<vmem>>, %arg4: memref<1x128xf32, #tpu.memory_space<vmem>>, %arg5: memref<256x128xf32, #tpu.memory_space<vmem>>, %arg6: memref<8x128xf32, #tpu.memory_space<vmem>>, %arg7: memref<8x128xf32, #tpu.memory_space<vmem>>) attributes {dimension_semantics = [#tpu.dimension_semantics<parallel>], iteration_bounds = array<i64: 2>, scalar_prefetch = 0 : i64, scratch_operands = 0 : i64, tpu.core_type = #tpu.core_type<tc>, window_params = [{transform_indices = @transform_0, window_bounds = array<i64: 256, 108>}, {transform_indices = @transform_1, window_bounds = array<i64: 256, 1>}, {pipeline_mode = #tpu.pipeline_mode<synchronous>, transform_indices = @transform_2, window_bounds = array<i64: 108, 128>}, {pipeline_mode = #tpu.pipeline_mode<synchronous>, transform_indices = @transform_3, window_bounds = array<i64: 1, 128>}, {transform_indices = @transform_4, window_bounds = array<i64: 256, 128>}, {transform_indices = @transform_5, window_bounds = array<i64: 8, 128>}, {transform_indices = @transform_6, window_bounds = array<i64: 8, 128>}]} {
    %c0 = arith.constant 0 : index
    %c0_0 = arith.constant 0 : index
    %0 = vector.load %arg1[%c0, %c0_0] : memref<256x108xbf16, #tpu.memory_space<vmem>>, vector<256x108xbf16>
    %c0_1 = arith.constant 0 : index
    %c0_2 = arith.constant 0 : index
    %1 = vector.load %arg3[%c0_1, %c0_2] : memref<108x128xbf16, #tpu.memory_space<vmem>>, vector<108x128xbf16>
    %cst = arith.constant dense<0.000000e+00> : vector<256x128xf32>
    %2 = tpu.matmul %0, %1, %cst {dimension_numbers = #tpu.dot_dimension_numbers<[1], [0], [0], [1], [0, 0, 1, 1], [], []>} : vector<256x108xbf16>, vector<108x128xbf16>, vector<256x128xf32> -> vector<256x128xf32>
    %c0_3 = arith.constant 0 : index
    %c0_4 = arith.constant 0 : index
    %3 = vector.load %arg4[%c0_3, %c0_4] : memref<1x128xf32, #tpu.memory_space<vmem>>, vector<1x128xf32>
    %4 = vector.broadcast %3 : vector<1x128xf32> to vector<256x128xf32>
    %5 = arith.addf %2, %4 : vector<256x128xf32>
    %c0_5 = arith.constant 0 : index
    %c0_6 = arith.constant 0 : index
    %6 = vector.load %arg2[%c0_5, %c0_6] : memref<256x1xf32, #tpu.memory_space<vmem>>, vector<256x1xf32>
    %cst_7 = arith.constant 0.000000e+00 : f32
    %7 = vector.broadcast %cst_7 : f32 to vector<256x1xf32>
    %8 = arith.cmpf ogt, %6, %7 : vector<256x1xf32>
    %9 = arith.extui %8 : vector<256x1xi1> to vector<256x1xi32>
    %10 = arith.sitofp %9 : vector<256x1xi32> to vector<256x1xf32>
    %11 = vector.broadcast %10 : vector<256x1xf32> to vector<256x128xf32>
    %12 = arith.mulf %5, %11 : vector<256x128xf32>
    %c0_8 = arith.constant 0 : index
    %c0_9 = arith.constant 0 : index
    %13 = vector.load %arg5[%c0_8, %c0_9] : memref<256x128xf32, #tpu.memory_space<vmem>>, vector<256x128xf32>
    tpu.vector_store %arg5[%c0_8, %c0_9], %12 {strides = array<i32>} : memref<256x128xf32, #tpu.memory_space<vmem>>, vector<256x128xf32>,
    %cst_10 = arith.constant dense<0.000000e+00> : vector<128xf32>
    %14 = vector.multi_reduction <add>, %12, %cst_10 [0] : vector<256x128xf32> to vector<128xf32>
    %15 = vector.shape_cast %14 : vector<128xf32> to vector<1x128xf32>
    %16 = vector.shape_cast %15 : vector<1x128xf32> to vector<1x128xf32>
    %17 = vector.broadcast %16 : vector<1x128xf32> to vector<8x128xf32>
    %c0_11 = arith.constant 0 : index
    %c0_12 = arith.constant 0 : index
    %18 = vector.load %arg6[%c0_11, %c0_12] : memref<8x128xf32, #tpu.memory_space<vmem>>, vector<8x128xf32>
    tpu.vector_store %arg6[%c0_11, %c0_12], %17 {strides = array<i32>} : memref<8x128xf32, #tpu.memory_space<vmem>>, vector<8x128xf32>,
    %19 = arith.mulf %12, %12 : vector<256x128xf32>
    %cst_13 = arith.constant dense<0.000000e+00> : vector<128xf32>
    %20 = vector.multi_reduction <add>, %19, %cst_13 [0] : vector<256x128xf32> to vector<128xf32>
    %21 = vector.shape_cast %20 : vector<128xf32> to vector<1x128xf32>
    %22 = vector.shape_cast %21 : vector<1x128xf32> to vector<1x128xf32>
    %23 = vector.broadcast %22 : vector<1x128xf32> to vector<8x128xf32>
    %c0_14 = arith.constant 0 : index
    %c0_15 = arith.constant 0 : index
    %24 = vector.load %arg7[%c0_14, %c0_15] : memref<8x128xf32, #tpu.memory_space<vmem>>, vector<8x128xf32>
    tpu.vector_store %arg7[%c0_14, %c0_15], %23 {strides = array<i32>} : memref<8x128xf32, #tpu.memory_space<vmem>>, vector<8x128xf32>,
    return
  }
  func.func @transform_0(%arg0: i32) -> (i32, i32) {
    %c0_i32 = arith.constant 0 : i32
    %c0_i32_0 = arith.constant 0 : i32
    return %arg0, %c0_i32 : i32, i32
  }
  func.func @transform_1(%arg0: i32) -> (i32, i32) {
    %c0_i32 = arith.constant 0 : i32
    %c0_i32_0 = arith.constant 0 : i32
    return %arg0, %c0_i32 : i32, i32
  }
  func.func @transform_2(%arg0: i32) -> (i32, i32) {
    %c0_i32 = arith.constant 0 : i32
    %c0_i32_0 = arith.constant 0 : i32
    %c0_i32_1 = arith.constant 0 : i32
    return %c0_i32, %c0_i32_0 : i32, i32
  }
  func.func @transform_3(%arg0: i32) -> (i32, i32) {
    %c0_i32 = arith.constant 0 : i32
    %c0_i32_0 = arith.constant 0 : i32
    %c0_i32_1 = arith.constant 0 : i32
    return %c0_i32, %c0_i32_0 : i32, i32
  }
  func.func @transform_4(%arg0: i32) -> (i32, i32) {
    %c0_i32 = arith.constant 0 : i32
    %c0_i32_0 = arith.constant 0 : i32
    return %arg0, %c0_i32 : i32, i32
  }
  func.func @transform_5(%arg0: i32) -> (i32, i32) {
    %c0_i32 = arith.constant 0 : i32
    %c0_i32_0 = arith.constant 0 : i32
    return %arg0, %c0_i32 : i32, i32
  }
  func.func @transform_6(%arg0: i32) -> (i32, i32) {
    %c0_i32 = arith.constant 0 : i32
    %c0_i32_0 = arith.constant 0 : i32
    return %arg0, %c0_i32 : i32, i32
  }
}

module attributes {stable_mosaic.version = 11 : i64} {
  func.func @_bn_act_kernel(%arg0: i32, %arg1: memref<256x128xf32, #tpu.memory_space<vmem>>, %arg2: memref<1x128xf32, #tpu.memory_space<vmem>>, %arg3: memref<1x128xf32, #tpu.memory_space<vmem>>, %arg4: memref<256x128xf32, #tpu.memory_space<vmem>>) attributes {dimension_semantics = [#tpu.dimension_semantics<parallel>], iteration_bounds = array<i64: 2>, scalar_prefetch = 0 : i64, scratch_operands = 0 : i64, tpu.core_type = #tpu.core_type<tc>, window_params = [{transform_indices = @transform_0, window_bounds = array<i64: 256, 128>}, {pipeline_mode = #tpu.pipeline_mode<synchronous>, transform_indices = @transform_1, window_bounds = array<i64: 1, 128>}, {pipeline_mode = #tpu.pipeline_mode<synchronous>, transform_indices = @transform_2, window_bounds = array<i64: 1, 128>}, {transform_indices = @transform_3, window_bounds = array<i64: 256, 128>}]} {
    %c0 = arith.constant 0 : index
    %c0_0 = arith.constant 0 : index
    %0 = vector.load %arg1[%c0, %c0_0] : memref<256x128xf32, #tpu.memory_space<vmem>>, vector<256x128xf32>
    %c0_1 = arith.constant 0 : index
    %c0_2 = arith.constant 0 : index
    %1 = vector.load %arg2[%c0_1, %c0_2] : memref<1x128xf32, #tpu.memory_space<vmem>>, vector<1x128xf32>
    %2 = vector.broadcast %1 : vector<1x128xf32> to vector<256x128xf32>
    %3 = arith.mulf %0, %2 : vector<256x128xf32>
    %c0_3 = arith.constant 0 : index
    %c0_4 = arith.constant 0 : index
    %4 = vector.load %arg3[%c0_3, %c0_4] : memref<1x128xf32, #tpu.memory_space<vmem>>, vector<1x128xf32>
    %5 = vector.broadcast %4 : vector<1x128xf32> to vector<256x128xf32>
    %6 = arith.addf %3, %5 : vector<256x128xf32>
    %c0_5 = arith.constant 0 : index
    %c0_6 = arith.constant 0 : index
    %7 = vector.load %arg4[%c0_5, %c0_6] : memref<256x128xf32, #tpu.memory_space<vmem>>, vector<256x128xf32>
    tpu.vector_store %arg4[%c0_5, %c0_6], %6 {strides = array<i32>} : memref<256x128xf32, #tpu.memory_space<vmem>>, vector<256x128xf32>,
    return
  }
  func.func @transform_0(%arg0: i32) -> (i32, i32) {
    %c0_i32 = arith.constant 0 : i32
    %c0_i32_0 = arith.constant 0 : i32
    return %arg0, %c0_i32 : i32, i32
  }
  func.func @transform_1(%arg0: i32) -> (i32, i32) {
    %c0_i32 = arith.constant 0 : i32
    %c0_i32_0 = arith.constant 0 : i32
    %c0_i32_1 = arith.constant 0 : i32
    return %c0_i32, %c0_i32_0 : i32, i32
  }
  func.func @transform_2(%arg0: i32) -> (i32, i32) {
    %c0_i32 = arith.constant 0 : i32
    %c0_i32_0 = arith.constant 0 : i32
    %c0_i32_1 = arith.constant 0 : i32
    return %c0_i32, %c0_i32_0 : i32, i32
  }
  func.func @transform_3(%arg0: i32) -> (i32, i32) {
    %c0_i32 = arith.constant 0 : i32
    %c0_i32_0 = arith.constant 0 : i32
    return %arg0, %c0_i32 : i32, i32
  }
}

</mosaic_0001>

<bundles_post_ra>
// kernel: mul.24
= control target key start
LH: loop header
LB: loop body
LE: loop exit
PB: predicated region body
PF: predicated region fallthrough
CT: control target
= control target key end

     0   :  { %3 = vsyncpa [#allocation1], 0  ;;  %s590_s0 = inlined_call_operand.hbm [shape: f32[2,16,16,4], index: 0, kind: input, shape index: {}]   ;;  %s591_s1 = inlined_call_operand.hbm [shape: f32[2,16,16,4], index: 1, kind: input, shape index: {}]   ;;  %s592_s2 = inlined_call_operand.vmem [shape: bf16[2,16,16,4], index: 2, kind: output, shape index: {}]  }
   0x1   :  { %s7_s0 = sshll.u32 %s590_s0, 4  ;;  %s8_s0 = int_to_ptr.hbm [resolvable:$true] %s7_s0 }
   0x2   :  { %4 = vsyncpa [#allocation3], 0  ;;  %s469_s11 = smov [#allocation0]   ;;  %s18_s1 = sshll.u32 %s591_s1, 4  ;;  %s19_s1 = int_to_ptr.hbm [resolvable:$true] %s18_s1 }
   0x3   :  { %s9_s12 = sshll.u32 %s469_s11, 4  ;;  %s470_s15 = smov 64   ;;  %s10_s12 = int_to_ptr.vmem [resolvable:$true] %s9_s12 }
   0x4   :  { %s471_s16 = smov 4   ;;  %s472_s17 = smov [#allocation2]  }
   0x5   :  { %15 = dma.hbm_to_vmem [thread:$0]  %s8_s0, 2048, %s10_s12, [#allocation1], %s470_s15, %s470_s15, %s471_s16  }
   0x6   :  { %s20_s18 = sshll.u32 %s472_s17, 4  ;;  %s21_s18 = int_to_ptr.vmem [resolvable:$true] %s20_s18 }
   0x7   :  { %26 = dma.hbm_to_vmem [thread:$0]  %s19_s1, 2048, %s21_s18, [#allocation3], %s470_s15, %s470_s15, %s471_s16  }
   0x8   :  { %465 = dma.done.wait [#allocation1], 2048  }
   0x9   :  { %466 = vsyncadd [#allocation1], 4294965248 }
   0xa   :  { %467 = dma.done.wait [#allocation3], 2048  }
   0xb   :  { %468 = vsyncadd [#allocation3], 4294965248  ;;  %v31_v0 = vld [vmem:[#allocation0] sm:$0xf]  ;;  %v51_v5 = vld [vmem:[#allocation0 + $0x4] sm:$0xf] }
   0xc   :  { %v32_v1 = vld [vmem:[#allocation2] sm:$0xf]  ;;  %v53_v6 = vld [vmem:[#allocation2 + $0x4] sm:$0xf]  ;;  %v73_v11 = vld [vmem:[#allocation0 + $0x8] sm:$0xf] }
   0xd   :  { %v40_v2 = vld [vmem:[#allocation0 + $0x40] sm:$0xf]  ;;  %v35_v3 = vmul.f32 %v32_v1, %v31_v0  ;;  %v56_v8 = vmul.f32 %v53_v6, %v51_v5  ;;  %v62_v9 = vld [vmem:[#allocation0 + $0x44] sm:$0xf]  ;;  %v75_v14 = vld [vmem:[#allocation2 + $0x8] sm:$0xf] }
   0xe   :  { %v42_v4 = vld [vmem:[#allocation2 + $0x40] sm:$0xf]  ;;  %v64_v10 = vld [vmem:[#allocation2 + $0x44] sm:$0xf]  ;;  %v84_v15 = vld [vmem:[#allocation0 + $0x48] sm:$0xf]  ;;  %v78_v18 = vmul.f32 %v75_v14, %v73_v11 }
   0xf   :  { %v45_v7 = vmul.f32 %v42_v4, %v40_v2  ;;  %v37_v12 = vpack.c.bf16 0.0, %v35_v3  ;;  %v67_v13 = vmul.f32 %v64_v10, %v62_v9  ;;  %v59_v17 = vpack.c.bf16 0.0, %v56_v8  ;;  %v86_v19 = vld [vmem:[#allocation2 + $0x48] sm:$0xf]  ;;  %v95_v20 = vld [vmem:[#allocation0 + $0xc] sm:$0xf] }
  0x10   :  { %v89_v22 = vmul.f32 %v86_v19, %v84_v15  ;;  %v97_v23 = vld [vmem:[#allocation2 + $0xc] sm:$0xf]  ;;  %v81_v25 = vpack.c.bf16 0.0, %v78_v18  ;;  %v117_v30 = vld [vmem:[#allocation0 + $0x10] sm:$0xf] }
  0x11   :  { %v48_v16 = vpack.c.bf16 0.0, %v45_v7  ;;  %38 = vst [vmem:[%s592_s2] sm:$0x3] %v37_v12  ;;  %v70_v21 = vpack.c.bf16 0.0, %v67_v13  ;;  %v106_v24 = vld [vmem:[#allocation0 + $0x4c] sm:$0xf]  ;;  %v100_v26 = vmul.f32 %v97_v23, %v95_v20 }
  0x12   :  { %v108_v27 = vld [vmem:[#allocation2 + $0x4c] sm:$0xf]  ;;  %383 = vst [vmem:[%s592_s2 + $0x2] sm:$0x3] %v59_v17  ;;  %v92_v28 = vpack.c.bf16 0.0, %v89_v22 }
  0x13   :  { %382 = vst [vmem:[%s592_s2 + $0x20] sm:$0x3] %v48_v16  ;;  %v111_v29 = vmul.f32 %v108_v27, %v106_v24  ;;  %v103_v31 = vpack.c.bf16 0.0, %v100_v26  ;;  %v119_v32 = vld [vmem:[#allocation2 + $0x10] sm:$0xf] }
  0x14   :  { %384 = vst [vmem:[%s592_s2 + $0x22] sm:$0x3] %v70_v21  ;;  %v122_v34 = vmul.f32 %v119_v32, %v117_v30  ;;  %v128_v35 = vld [vmem:[#allocation0 + $0x50] sm:$0xf]  ;;  %v139_v37 = vld [vmem:[#allocation0 + $0x14] sm:$0xf] }
  0x15   :  { %385 = vst [vmem:[%s592_s2 + $0x4] sm:$0x3] %v81_v25  ;;  %v114_v33 = vpack.c.bf16 0.0, %v111_v29  ;;  %v130_v36 = vld [vmem:[#allocation2 + $0x50] sm:$0xf] }
  0x16   :  { %386 = vst [vmem:[%s592_s2 + $0x24] sm:$0x3] %v92_v28  ;;  %v125_v38 = vpack.c.bf16 0.0, %v122_v34  ;;  %v133_v39 = vmul.f32 %v130_v36, %v128_v35  ;;  %v141_v40 = vld [vmem:[#allocation2 + $0x14] sm:$0xf] }
  0x17   :  { %387 = vst [vmem:[%s592_s2 + $0x6] sm:$0x3] %v103_v31  ;;  %v144_v41 = vmul.f32 %v141_v40, %v139_v37  ;;  %v150_v42 = vld [vmem:[#allocation0 + $0x54] sm:$0xf]  ;;  %v161_v46 = vld [vmem:[#allocation0 + $0x18] sm:$0xf] }
  0x18   :  { %388 = vst [vmem:[%s592_s2 + $0x26] sm:$0x3] %v114_v33  ;;  %v152_v43 = vld [vmem:[#allocation2 + $0x54] sm:$0xf]  ;;  %v136_v44 = vpack.c.bf16 0.0, %v133_v39 }
  0x19   :  { %389 = vst [vmem:[%s592_s2 + $0x8] sm:$0x3] %v125_v38  ;;  %v155_v45 = vmul.f32 %v152_v43, %v150_v42  ;;  %v147_v47 = vpack.c.bf16 0.0, %v144_v41  ;;  %v163_v48 = vld [vmem:[#allocation2 + $0x18] sm:$0xf] }
  0x1a   :  { %v172_v49 = vld [vmem:[#allocation0 + $0x58] sm:$0xf]  ;;  %390 = vst [vmem:[%s592_s2 + $0x28] sm:$0x3] %v136_v44  ;;  %v166_v51 = vmul.f32 %v163_v48, %v161_v46  ;;  %v183_v54 = vld [vmem:[#allocation0 + $0x1c] sm:$0xf] }
  0x1b   :  { %v158_v50 = vpack.c.bf16 0.0, %v155_v45  ;;  %v174_v52 = vld [vmem:[#allocation2 + $0x58] sm:$0xf]  ;;  %391 = vst [vmem:[%s592_s2 + $0xa] sm:$0x3] %v147_v47 }
  0x1c   :  { %v177_v53 = vmul.f32 %v174_v52, %v172_v49  ;;  %v185_v55 = vld [vmem:[#allocation2 + $0x1c] sm:$0xf]  ;;  %v169_v56 = vpack.c.bf16 0.0, %v166_v51  ;;  %v205_v61 = vld [vmem:[#allocation0 + $0x20] sm:$0xf] }
  0x1d   :  { %392 = vst [vmem:[%s592_s2 + $0x2a] sm:$0x3] %v158_v50  ;;  %v188_v57 = vmul.f32 %v185_v55, %v183_v54  ;;  %v194_v58 = vld [vmem:[#allocation0 + $0x5c] sm:$0xf]  ;;  %v207_v0 = vld [vmem:[#allocation2 + $0x20] sm:$0xf] }
  0x1e   :  { %v180_v59 = vpack.c.bf16 0.0, %v177_v53  ;;  %v196_v60 = vld [vmem:[#allocation2 + $0x5c] sm:$0xf]  ;;  %393 = vst [vmem:[%s592_s2 + $0xc] sm:$0x3] %v169_v56  ;;  %v210_v1 = vmul.f32 %v207_v0, %v205_v61 }
  0x1f   :  { %v191_v62 = vpack.c.bf16 0.0, %v188_v57  ;;  %v199_v63 = vmul.f32 %v196_v60, %v194_v58  ;;  %v216_v2 = vld [vmem:[#allocation0 + $0x60] sm:$0xf]  ;;  %v227_v6 = vld [vmem:[#allocation0 + $0x24] sm:$0xf] }
  0x20   :  { %394 = vst [vmem:[%s592_s2 + $0x2c] sm:$0x3] %v180_v59  ;;  %v218_v3 = vld [vmem:[#allocation2 + $0x60] sm:$0xf]  ;;  %v213_v7 = vpack.c.bf16 0.0, %v210_v1 }
  0x21   :  { %395 = vst [vmem:[%s592_s2 + $0xe] sm:$0x3] %v191_v62  ;;  %v202_v4 = vpack.c.bf16 0.0, %v199_v63  ;;  %v221_v5 = vmul.f32 %v218_v3, %v216_v2  ;;  %v229_v8 = vld [vmem:[#allocation2 + $0x24] sm:$0xf] }
  0x22   :  { %v238_v9 = vld [vmem:[#allocation0 + $0x64] sm:$0xf]  ;;  %v232_v11 = vmul.f32 %v229_v8, %v227_v6  ;;  %397 = vst [vmem:[%s592_s2 + $0x10] sm:$0x3] %v213_v7  ;;  %v249_v14 = vld [vmem:[#allocation0 + $0x28] sm:$0xf] }
  0x23   :  { %396 = vst [vmem:[%s592_s2 + $0x2e] sm:$0x3] %v202_v4  ;;  %v224_v10 = vpack.c.bf16 0.0, %v221_v5  ;;  %v240_v12 = vld [vmem:[#allocation2 + $0x64] sm:$0xf] }
  0x24   :  { %v243_v13 = vmul.f32 %v240_v12, %v238_v9  ;;  %v251_v15 = vld [vmem:[#allocation2 + $0x28] sm:$0xf]  ;;  %v235_v16 = vpack.c.bf16 0.0, %v232_v11  ;;  %v271_v21 = vld [vmem:[#allocation0 + $0x2c] sm:$0xf] }
  0x25   :  { %398 = vst [vmem:[%s592_s2 + $0x30] sm:$0x3] %v224_v10  ;;  %v254_v17 = vmul.f32 %v251_v15, %v249_v14  ;;  %v260_v18 = vld [vmem:[#allocation0 + $0x68] sm:$0xf]  ;;  %v273_v24 = vld [vmem:[#allocation2 + $0x2c] sm:$0xf] }
  0x26   :  { %v246_v19 = vpack.c.bf16 0.0, %v243_v13  ;;  %v262_v20 = vld [vmem:[#allocation2 + $0x68] sm:$0xf]  ;;  %399 = vst [vmem:[%s592_s2 + $0x12] sm:$0x3] %v235_v16  ;;  %v276_v25 = vmul.f32 %v273_v24, %v271_v21 }
  0x27   :  { %v257_v22 = vpack.c.bf16 0.0, %v254_v17  ;;  %v265_v23 = vmul.f32 %v262_v20, %v260_v18  ;;  %v282_v26 = vld [vmem:[#allocation0 + $0x6c] sm:$0xf]  ;;  %v293_v30 = vld [vmem:[#allocation0 + $0x30] sm:$0xf] }
  0x28   :  { %400 = vst [vmem:[%s592_s2 + $0x32] sm:$0x3] %v246_v19  ;;  %v284_v27 = vld [vmem:[#allocation2 + $0x6c] sm:$0xf]  ;;  %v279_v31 = vpack.c.bf16 0.0, %v276_v25 }
  0x29   :  { %401 = vst [vmem:[%s592_s2 + $0x14] sm:$0x3] %v257_v22  ;;  %v268_v28 = vpack.c.bf16 0.0, %v265_v23  ;;  %v287_v29 = vmul.f32 %v284_v27, %v282_v26  ;;  %v295_v32 = vld [vmem:[#allocation2 + $0x30] sm:$0xf] }
  0x2a   :  { %v304_v33 = vld [vmem:[#allocation0 + $0x70] sm:$0xf]  ;;  %v298_v35 = vmul.f32 %v295_v32, %v293_v30  ;;  %403 = vst [vmem:[%s592_s2 + $0x16] sm:$0x3] %v279_v31  ;;  %v315_v38 = vld [vmem:[#allocation0 + $0x34] sm:$0xf] }
  0x2b   :  { %402 = vst [vmem:[%s592_s2 + $0x34] sm:$0x3] %v268_v28  ;;  %v290_v34 = vpack.c.bf16 0.0, %v287_v29  ;;  %v306_v36 = vld [vmem:[#allocation2 + $0x70] sm:$0xf] }
  0x2c   :  { %v309_v37 = vmul.f32 %v306_v36, %v304_v33  ;;  %v317_v39 = vld [vmem:[#allocation2 + $0x34] sm:$0xf]  ;;  %v301_v40 = vpack.c.bf16 0.0, %v298_v35  ;;  %v337_v45 = vld [vmem:[#allocation0 + $0x38] sm:$0xf] }
  0x2d   :  { %404 = vst [vmem:[%s592_s2 + $0x36] sm:$0x3] %v290_v34  ;;  %v320_v41 = vmul.f32 %v317_v39, %v315_v38  ;;  %v326_v42 = vld [vmem:[#allocation0 + $0x74] sm:$0xf]  ;;  %v339_v48 = vld [vmem:[#allocation2 + $0x38] sm:$0xf] }
  0x2e   :  { %v312_v43 = vpack.c.bf16 0.0, %v309_v37  ;;  %v328_v44 = vld [vmem:[#allocation2 + $0x74] sm:$0xf]  ;;  %405 = vst [vmem:[%s592_s2 + $0x18] sm:$0x3] %v301_v40  ;;  %v342_v49 = vmul.f32 %v339_v48, %v337_v45 }
  0x2f   :  { %v323_v46 = vpack.c.bf16 0.0, %v320_v41  ;;  %v331_v47 = vmul.f32 %v328_v44, %v326_v42  ;;  %v348_v50 = vld [vmem:[#allocation0 + $0x78] sm:$0xf]  ;;  %v359_v54 = vld [vmem:[#allocation0 + $0x3c] sm:$0xf] }
  0x30   :  { %406 = vst [vmem:[%s592_s2 + $0x38] sm:$0x3] %v312_v43  ;;  %v350_v51 = vld [vmem:[#allocation2 + $0x78] sm:$0xf]  ;;  %v345_v55 = vpack.c.bf16 0.0, %v342_v49 }
  0x31   :  { %407 = vst [vmem:[%s592_s2 + $0x1a] sm:$0x3] %v323_v46  ;;  %v334_v52 = vpack.c.bf16 0.0, %v331_v47  ;;  %v353_v53 = vmul.f32 %v350_v51, %v348_v50  ;;  %v361_v56 = vld [vmem:[#allocation2 + $0x3c] sm:$0xf] }
  0x32   :  { %v370_v57 = vld [vmem:[#allocation0 + $0x7c] sm:$0xf]  ;;  %v364_v59 = vmul.f32 %v361_v56, %v359_v54  ;;  %409 = vst [vmem:[%s592_s2 + $0x1c] sm:$0x3] %v345_v55 }
  0x33   :  { %408 = vst [vmem:[%s592_s2 + $0x3a] sm:$0x3] %v334_v52  ;;  %v356_v58 = vpack.c.bf16 0.0, %v353_v53  ;;  %v372_v60 = vld [vmem:[#allocation2 + $0x7c] sm:$0xf] }
  0x34   :  { %v375_v61 = vmul.f32 %v372_v60, %v370_v57  ;;  %v367_v62 = vpack.c.bf16 0.0, %v364_v59 }
  0x35   :  { %410 = vst [vmem:[%s592_s2 + $0x3c] sm:$0x3] %v356_v58 }
  0x36   :  { %v378_v63 = vpack.c.bf16 0.0, %v375_v61  ;;  %411 = vst [vmem:[%s592_s2 + $0x1e] sm:$0x3] %v367_v62 }
  0x38   :  { %412 = vst [vmem:[%s592_s2 + $0x3e] sm:$0x3] %v378_v63 }
  0x39   :  { %380 = vsyncpa [#allocation1], 1 }
  0x3a   :  { %381 = vsyncpa [#allocation3], 1 }

// kernel: pconv_net_forward.17
= control target key start
LH: loop header
LB: loop body
LE: loop exit
PB: predicated region body
PF: predicated region fallthrough
CT: control target
= control target key end

     0   :  { %s248_s0 = inlined_call_operand.vmem [shape: f32[128,128], index: 0, kind: input, shape index: {}]   ;;  %s249_s1 = inlined_call_operand.vmem [shape: f32[1,128], index: 1, kind: input, shape index: {}]   ;;  %s250_s2 = inlined_call_operand.vmem [shape: f32[1,128], index: 2, kind: input, shape index: {}]   ;;  %s251_s3 = inlined_call_operand.vmem [shape: f32[128,128], index: 3, kind: output, shape index: {}]  }
   0x1   :  { %v14_v0 = vld [vmem:[%s248_s0] sm:$0xff]  ;;  %v15_v3 = vld [vmem:[%s248_s0 + $0x8] sm:$0xff]  ;;  %v16_v6 = vld [vmem:[%s248_s0 + $0x10] sm:$0xff] }
   0x2   :  { %v106_v1 = vld [vmem:[%s249_s1] ss:$0 sm:$0xff]  ;;  %v17_v7 = vld [vmem:[%s248_s0 + $0x18] sm:$0xff]  ;;  %v19_v12 = vld [vmem:[%s248_s0 + $0x28] sm:$0xff] }
   0x3   :  { %v137_v2 = vld [vmem:[%s250_s2] ss:$0 sm:$0xff]  ;;  %v34_v4 = vmul.f32 %v106_v1, %v14_v0  ;;  %v35_v5 = vmul.f32 %v106_v1, %v15_v3  ;;  %v36_v9 = vmul.f32 %v106_v1, %v16_v6  ;;  %v37_v10 = vmul.f32 %v106_v1, %v17_v7  ;;  %v20_v13 = vld [vmem:[%s248_s0 + $0x30] sm:$0xff]  ;;  %v21_v14 = vld [vmem:[%s248_s0 + $0x38] sm:$0xff] }
   0x4   :  { %v18_v8 = vld [vmem:[%s248_s0 + $0x20] sm:$0xff]  ;;  %v39_v17 = vmul.f32 %v106_v1, %v19_v12  ;;  %v40_v18 = vmul.f32 %v106_v1, %v20_v13  ;;  %v41_v22 = vmul.f32 %v106_v1, %v21_v14  ;;  %v23_v24 = vld [vmem:[%s248_s0 + $0x48] sm:$0xff]  ;;  %v24_v29 = vld [vmem:[%s248_s0 + $0x50] sm:$0xff] }
   0x5   :  { %v38_v11 = vmul.f32 %v106_v1, %v18_v8  ;;  %v54_v15 = vadd.f32 %v137_v2, %v34_v4  ;;  %v55_v16 = vadd.f32 %v137_v2, %v35_v5  ;;  %v56_v19 = vadd.f32 %v137_v2, %v36_v9  ;;  %v22_v23 = vld [vmem:[%s248_s0 + $0x40] sm:$0xff]  ;;  %v25_v30 = vld [vmem:[%s248_s0 + $0x58] sm:$0xff]  ;;  %v27_v35 = vld [vmem:[%s248_s0 + $0x68] sm:$0xff] }
   0x6   :  { %v57_v20 = vadd.f32 %v137_v2, %v37_v10  ;;  %v59_v27 = vadd.f32 %v137_v2, %v39_v17  ;;  %v60_v28 = vadd.f32 %v137_v2, %v40_v18  ;;  %v26_v31 = vld [vmem:[%s248_s0 + $0x60] sm:$0xff]  ;;  %v61_v34 = vadd.f32 %v137_v2, %v41_v22  ;;  %v28_v36 = vld [vmem:[%s248_s0 + $0x70] sm:$0xff]  ;;  %v29_v41 = vld [vmem:[%s248_s0 + $0x78] sm:$0xff] }
   0x7   :  { %v58_v21 = vadd.f32 %v137_v2, %v38_v11  ;;  %v70_v25 = vmax.f32 %v54_v15, 0.0  ;;  %v71_v26 = vmax.f32 %v55_v16, 0.0  ;;  %v72_v32 = vmax.f32 %v56_v19, 0.0 }
   0x8   :  { %v73_v33 = vmax.f32 %v57_v20, 0.0  ;;  %v75_v38 = vmax.f32 %v59_v27, 0.0  ;;  %v42_v39 = vmul.f32 %v106_v1, %v22_v23  ;;  %v43_v40 = vmul.f32 %v106_v1, %v23_v24 }
   0x9   :  { %86 = vst [vmem:[%s251_s3] sm:$0xff] %v70_v25  ;;  %v74_v37 = vmax.f32 %v58_v21, 0.0  ;;  %v76_v42 = vmax.f32 %v60_v28, 0.0  ;;  %v44_v43 = vmul.f32 %v106_v1, %v24_v29  ;;  %v45_v44 = vmul.f32 %v106_v1, %v25_v30 }
   0xa   :  { %87 = vst [vmem:[%s251_s3 + $0x8] sm:$0xff] %v71_v26  ;;  %v46_v45 = vmul.f32 %v106_v1, %v26_v31  ;;  %v62_v46 = vadd.f32 %v137_v2, %v42_v39  ;;  %v63_v47 = vadd.f32 %v137_v2, %v43_v40  ;;  %v47_v48 = vmul.f32 %v106_v1, %v27_v35 }
   0xb   :  { %88 = vst [vmem:[%s251_s3 + $0x10] sm:$0xff] %v72_v32  ;;  %v48_v49 = vmul.f32 %v106_v1, %v28_v36  ;;  %v77_v50 = vmax.f32 %v61_v34, 0.0  ;;  %v64_v51 = vadd.f32 %v137_v2, %v44_v43  ;;  %v65_v52 = vadd.f32 %v137_v2, %v45_v44 }
   0xc   :  { %89 = vst [vmem:[%s251_s3 + $0x18] sm:$0xff] %v73_v33  ;;  %v49_v53 = vmul.f32 %v106_v1, %v29_v41  ;;  %v78_v54 = vmax.f32 %v62_v46, 0.0  ;;  %v66_v55 = vadd.f32 %v137_v2, %v46_v45  ;;  %v79_v56 = vmax.f32 %v63_v47, 0.0 }
   0xd   :  { %90 = vst [vmem:[%s251_s3 + $0x20] sm:$0xff] %v74_v37  ;;  %v67_v57 = vadd.f32 %v137_v2, %v47_v48  ;;  %v80_v58 = vmax.f32 %v64_v51, 0.0  ;;  %v68_v59 = vadd.f32 %v137_v2, %v48_v49  ;;  %v81_v60 = vmax.f32 %v65_v52, 0.0 }
   0xe   :  { %91 = vst [vmem:[%s251_s3 + $0x28] sm:$0xff] %v75_v38  ;;  %v69_v61 = vadd.f32 %v137_v2, %v49_v53  ;;  %v82_v62 = vmax.f32 %v66_v55, 0.0 }
   0xf   :  { %92 = vst [vmem:[%s251_s3 + $0x30] sm:$0xff] %v76_v42  ;;  %v83_v63 = vmax.f32 %v67_v57, 0.0  ;;  %v84_v0 = vmax.f32 %v68_v59, 0.0 }
  0x10   :  { %93 = vst [vmem:[%s251_s3 + $0x38] sm:$0xff] %v77_v50  ;;  %v85_v1 = vmax.f32 %v69_v61, 0.0 }
  0x11   :  { %94 = vst [vmem:[%s251_s3 + $0x40] sm:$0xff] %v78_v54 }
  0x12   :  { %95 = vst [vmem:[%s251_s3 + $0x48] sm:$0xff] %v79_v56 }
  0x13   :  { %96 = vst [vmem:[%s251_s3 + $0x50] sm:$0xff] %v80_v58 }
  0x14   :  { %97 = vst [vmem:[%s251_s3 + $0x58] sm:$0xff] %v81_v60 }
  0x15   :  { %98 = vst [vmem:[%s251_s3 + $0x60] sm:$0xff] %v82_v62 }
  0x16   :  { %99 = vst [vmem:[%s251_s3 + $0x68] sm:$0xff] %v83_v63 }
  0x17   :  { %100 = vst [vmem:[%s251_s3 + $0x70] sm:$0xff] %v84_v0 }
  0x18   :  { %101 = vst [vmem:[%s251_s3 + $0x78] sm:$0xff] %v85_v1 }

// kernel: pconv_net_forward.16
= control target key start
LH: loop header
LB: loop body
LE: loop exit
PB: predicated region body
PF: predicated region fallthrough
CT: control target
= control target key end

     0   :  { %v556_v1 = vmov 0   ;;  %vm126_vm0 = vcmask 1041408   ;;  %v557_v6 = vmov 0.0   ;;  %vm101_vm11 = vcmask 293888   ;;  %s815_s2 = inlined_call_operand.vmem [shape: bf16[36,128], index: 2, kind: input, shape index: {}]   ;;  %s816_s1 = inlined_call_operand.vmem [shape: f32[128,1], index: 1, kind: input, shape index: {}]   ;;  %s817_s3 = inlined_call_operand.vmem [shape: f32[1,128], index: 3, kind: input, shape index: {}]   ;;  %s818_s0 = inlined_call_operand.vmem [shape: bf16[128,36], index: 0, kind: input, shape index: {}]   ;;  %s819_s4 = inlined_call_operand.vmem [shape: f32[128,128], index: 4, kind: output, shape index: {0}]   ;;  %s820_s5 = inlined_call_operand.vmem [shape: f32[8,128], index: 5, kind: output, shape index: {1}]   ;;  %s821_s6 = inlined_call_operand.vmem [shape: f32[8,128], index: 6, kind: output, shape index: {2}]  }
   0x1   :  { %v41_v0 = vld [vmem:[%s815_s2 + $0x10] sm:$0x3]  ;;  %512 = vset.pattern.permute.xlu0 %v556_v1  ;;  %523 = vset.pattern.permute.xlu1 %v556_v1  ;;  %v179_v3 = vld [vmem:[%s816_s1] sm:$0xff]  ;;  %v180_v4 = vld [vmem:[%s816_s1 + $0x8] sm:$0xff] }
   0x2   :  { %v95_v2 = vunpack.c.l.b16 %v41_v0  ;;  %534 = vset.pattern.permute.xlu2 %v556_v1  ;;  %vm195_vm1 = vcmp.gt.f32.partialorder %v179_v3, 0.0  ;;  %vm196_vm2 = vcmp.gt.f32.partialorder %v180_v4, 0.0  ;;  %v183_v9 = vld [vmem:[%s816_s1 + $0x20] sm:$0xff]  ;;  %v184_v10 = vld [vmem:[%s816_s1 + $0x28] sm:$0xff]  ;;  %v181_v14 = vld [vmem:[%s816_s1 + $0x10] sm:$0xff] }
   0x3   :  { %v475_v7 = vsel %vm195_vm1, 1.0, %v557_v6  ;;  %v476_v8 = vsel %vm196_vm2, 1.0, %v557_v6  ;;  %v500_v12 = vld [vmem:[%s815_s2 + $0x8] sm:$0xff]  ;;  %vm199_vm3 = vcmp.gt.f32.partialorder %v183_v9, 0.0  ;;  %vm200_vm4 = vcmp.gt.f32.partialorder %v184_v10, 0.0  ;;  %v182_v15 = vld [vmem:[%s816_s1 + $0x18] sm:$0xff] }
   0x4   :  { %v98_v5 = vpack.c.b16 %v95_v2, %v95_v2  ;;  %v513_v13 = vpack.i.bf16 %v476_v8, %v475_v7  ;;  %v479_v16 = vsel %vm199_vm3, 1.0, %v557_v6  ;;  %v480_v17 = vsel %vm200_vm4, 1.0, %v557_v6  ;;  %v185_v18 = vld [vmem:[%s816_s1 + $0x30] sm:$0xff]  ;;  %v186_v19 = vld [vmem:[%s816_s1 + $0x38] sm:$0xff]  ;;  %v187_v23 = vld [vmem:[%s816_s1 + $0x40] sm:$0xff] }
   0x5   :  { %vm197_vm5 = vcmp.gt.f32.partialorder %v181_v14, 0.0  ;;  %vm198_vm6 = vcmp.gt.f32.partialorder %v182_v15, 0.0  ;;  %v524_v20 = vpack.i.bf16 %v480_v17, %v479_v16  ;;  %v188_v24 = vld [vmem:[%s816_s1 + $0x48] sm:$0xff]  ;;  %vm201_vm7 = vcmp.gt.f32.partialorder %v185_v18, 0.0  ;;  %v499_v25 = vld [vmem:[%s815_s2] sm:$0xff]  ;;  %v189_v29 = vld [vmem:[%s816_s1 + $0x50] sm:$0xff] }
   0x6   :  { %v128_v11 = vsel %vm126_vm0, %v98_v5, 0  ;;  %514 = vperm.xlu0 %512, %v513_v13   ;;  %v477_v21 = vsel %vm197_vm5, 1.0, %v557_v6  ;;  %v478_v22 = vsel %vm198_vm6, 1.0, %v557_v6  ;;  %vm202_vm8 = vcmp.gt.f32.partialorder %v186_v19, 0.0  ;;  %v191_v26 = vld [vmem:[%s816_s1 + $0x60] sm:$0xff]  ;;  %v192_v28 = vld [vmem:[%s816_s1 + $0x68] sm:$0xff] }
   0x7   :  { %135 = vmatpush.bf16.msra.mxu0 %v128_v11  ;;  %501 = vmatpush.bf16.msra.mxu1 %v128_v11  ;;  %v518_v27 = vpack.i.bf16 %v478_v22, %v477_v21  ;;  %vm203_vm9 = vcmp.gt.f32.partialorder %v187_v23, 0.0  ;;  %vm204_vm10 = vcmp.gt.f32.partialorder %v188_v24, 0.0  ;;  %v190_v30 = vld [vmem:[%s816_s1 + $0x58] sm:$0xff]  ;;  %v481_v31 = vsel %vm201_vm7, 1.0, %v557_v6  ;;  %v491_v35 = vld [vmem:[%s818_s0] sm:$0xff]  ;;  %v493_v36 = vld [vmem:[%s818_s0 + $0x10] sm:$0xff] }
   0x8   :  { %502 = vmatpush.bf16.msra.mxu2 %v128_v11  ;;  %503 = vmatpush.bf16.msra.mxu3 %v128_v11  ;;  %v482_v32 = vsel %vm202_vm8, 1.0, %v557_v6  ;;  %v483_v33 = vsel %vm203_vm9, 1.0, %v557_v6  ;;  %v484_v34 = vsel %vm204_vm10, 1.0, %v557_v6  ;;  %vm207_vm12 = vcmp.gt.f32.partialorder %v191_v26, 0.0  ;;  %v193_v37 = vld [vmem:[%s816_s1 + $0x70] sm:$0xff]  ;;  %v495_v39 = vld [vmem:[%s818_s0 + $0x20] sm:$0xff] }
   0x9   :  { %525 = vperm.xlu1 %523, %v524_v20   ;;  %v535_v38 = vpack.i.bf16 %v484_v34, %v483_v33  ;;  %v497_v40 = vld [vmem:[%s818_s0 + $0x30] sm:$0xff]  ;;  %vm208_vm13 = vcmp.gt.f32.partialorder %v192_v28, 0.0  ;;  %v194_v41 = vld [vmem:[%s816_s1 + $0x78] sm:$0xff]  ;;  %vm205_vm14 = vcmp.gt.f32.partialorder %v189_v29, 0.0  ;;  %vm206_vm15 = vcmp.gt.f32.partialorder %v190_v30, 0.0  ;;  %v492_v52 = vld [vmem:[%s818_s0 + $0x8] sm:$0xff] }
   0xa   :  { %v529_v42 = vpack.i.bf16 %v482_v32, %v481_v31  ;;  %v487_v43 = vsel %vm207_vm12, 1.0, %v557_v6  ;;  %vm209_vm0 = vcmp.gt.f32.partialorder %v193_v37, 0.0  ;;  %v488_v44 = vsel %vm208_vm13, 1.0, %v557_v6  ;;  %v494_v53 = vld [vmem:[%s818_s0 + $0x18] sm:$0xff]  ;;  %v496_v54 = vld [vmem:[%s818_s0 + $0x28] sm:$0xff] }
   0xb   :  { %136 = vmatpush.bf16.msra.mxu0 %v500_v12  ;;  %504 = vmatpush.bf16.msra.mxu1 %v500_v12  ;;  %vm210_vm1 = vcmp.gt.f32.partialorder %v194_v41, 0.0  ;;  %v485_v45 = vsel %vm205_vm14, 1.0, %v557_v6  ;;  %v486_v46 = vsel %vm206_vm15, 1.0, %v557_v6  ;;  %v545_v47 = vpack.i.bf16 %v488_v44, %v487_v43  ;;  %v498_v55 = vld [vmem:[%s818_s0 + $0x38] sm:$0xff]  ;;  %v705_v58 = vld [vmem:[%s817_s3] ss:$0 sm:$0xff] }
   0xc   :  { %505 = vmatpush.bf16.msra.mxu2 %v500_v12  ;;  %506 = vmatpush.bf16.msra.mxu3 %v500_v12  ;;  %v489_v48 = vsel %vm209_vm0, 1.0, %v557_v6  ;;  %v490_v49 = vsel %vm210_vm1, 1.0, %v557_v6  ;;  %v540_v50 = vpack.i.bf16 %v486_v46, %v485_v45 }
   0xd   :  { %536 = vperm.xlu2 %534, %v535_v38   ;;  %v550_v51 = vpack.i.bf16 %v490_v49, %v489_v48 }
   0xe   :  { %519 = vperm.xlu0 %512, %v518_v27  }
   0xf   :  { %137 = vmatpush.bf16.msra.mxu0 %v499_v25  ;;  %507 = vmatpush.bf16.msra.mxu1 %v499_v25 }
  0x10   :  { %508 = vmatpush.bf16.msra.mxu2 %v499_v25  ;;  %509 = vmatpush.bf16.msra.mxu3 %v499_v25 }
  0x11   :  { %530 = vperm.xlu1 %523, %v529_v42  }
  0x12   :  { %467 = vmatmul.msk.bf16.vlgmr.msra.gmra.mxu0 %vm101_vm11, %v491_v35  ;;  %469 = vmatmul.msk.bf16.vlgmr.msra.gmra.mxu1 %vm101_vm11, %v493_v36 }
  0x13   :  { %471 = vmatmul.msk.bf16.vlgmr.msra.gmra.mxu2 %vm101_vm11, %v495_v39  ;;  %473 = vmatmul.msk.bf16.vlgmr.msra.gmra.mxu3 %vm101_vm11, %v497_v40 }
  0x15   :  { %541 = vperm.xlu2 %534, %v540_v50  }
  0x16   :  { %546 = vperm.xlu0 %512, %v545_v47  }
  0x19   :  { %551 = vperm.xlu1 %523, %v550_v51  }
  0x22   :  { %468 = vmatmul.msk.bf16.gmra.mxu0 %vm101_vm11, %v492_v52  ;;  %470 = vmatmul.msk.bf16.gmra.mxu1 %vm101_vm11, %v494_v53 }
  0x23   :  { %472 = vmatmul.msk.bf16.gmra.mxu2 %vm101_vm11, %v496_v54  ;;  %474 = vmatmul.msk.bf16.gmra.mxu3 %vm101_vm11, %v498_v55 }
  0x67   :  { %v537_v5 = vpop.permute.xlu2 %536 }
  0x68   :  { %v538_v11 = vunpack.i.l.bf16 %v537_v5  ;;  %v539_v24 = vunpack.i.h.bf16 %v537_v5 }
  0x6f   :  { %v542_v40 = vpop.permute.xlu2 %541 }
  0x70   :  { %v543_v46 = vunpack.i.l.bf16 %v542_v40 }
  0x78   :  { %v515_v56 = vpop.permute.xlu0 %514 }
  0x79   :  { %v516_v60 = vunpack.i.l.bf16 %v515_v56  ;;  %v517_v7 = vunpack.i.h.bf16 %v515_v56 }
  0x7b   :  { %v526_v59 = vpop.permute.xlu1 %525 }
  0x7c   :  { %v527_v61 = vunpack.i.l.bf16 %v526_v59  ;;  %v528_v8 = vunpack.i.h.bf16 %v526_v59 }
  0x80   :  { %v700_v57 = vpop.permute.xlu0 %519 }
  0x81   :  { %v521_v32 = vunpack.i.l.bf16 %v700_v57  ;;  %v522_v43 = vunpack.i.h.bf16 %v700_v57 }
  0x83   :  { %v531_v18 = vpop.permute.xlu1 %530 }
  0x84   :  { %v532_v25 = vunpack.i.l.bf16 %v531_v18  ;;  %v533_v48 = vunpack.i.h.bf16 %v531_v18 }
  0x88   :  { %v547_v4 = vpop.permute.xlu0 %546 }
  0x89   :  { %v548_v6 = vunpack.i.l.bf16 %v547_v4  ;;  %v549_v23 = vunpack.i.h.bf16 %v547_v4  ;;  %v544_v4 = vunpack.i.h.bf16 %v542_v40 }
  0x8b   :  { %v552_v39 = vpop.permute.xlu1 %551 }
  0x8c   :  { %v553_v42 = vunpack.i.l.bf16 %v552_v39 }
  0x8f   :  { %v139_v62 = vpop.f32.mrf.mxu0  ;;  %v149_v63 = vpop.f32.mrf.mxu1 }
  0x90   :  { %v140_v0 = vadd.f32 %v705_v58, %v139_v62  ;;  %v150_v1 = vadd.f32 %v705_v58, %v149_v63 }
  0x92   :  { %v323_v2 = vmul.f32 %v516_v60, %v140_v0  ;;  %v709_v3 = vmul.f32 %v527_v61, %v150_v1 }
  0x94   :  { %339 = vst [vmem:[%s819_s4] sm:$0xff] %v323_v2  ;;  %v377_v47 = vmul.f32 %v323_v2, %v323_v2  ;;  %v381_v5 = vmul.f32 %v709_v3, %v709_v3 }
  0x95   :  { %343 = vst [vmem:[%s819_s4 + $0x20] sm:$0xff] %v709_v3 }
  0x96   :  { %v159_v9 = vpop.f32.mrf.mxu2  ;;  %v169_v10 = vpop.f32.mrf.mxu3 }
  0x97   :  { %v160_v12 = vadd.f32 %v705_v58, %v159_v9  ;;  %v170_v13 = vadd.f32 %v705_v58, %v169_v10  ;;  %v141_v14 = vpop.f32.mrf.mxu0  ;;  %v151_v15 = vpop.f32.mrf.mxu1  ;;  %v554_v10 = vunpack.i.h.bf16 %v552_v39 }
  0x98   :  { %v142_v16 = vadd.f32 %v705_v58, %v141_v14  ;;  %v152_v17 = vadd.f32 %v705_v58, %v151_v15 }
  0x99   :  { %v722_v19 = vmul.f32 %v548_v6, %v170_v13  ;;  %v726_v22 = vmul.f32 %v538_v11, %v160_v12 }
  0x9a   :  { %v324_v20 = vmul.f32 %v517_v7, %v142_v16  ;;  %v724_v21 = vmul.f32 %v528_v8, %v152_v17 }
  0x9b   :  { %351 = vst [vmem:[%s819_s4 + $0x60] sm:$0xff] %v722_v19 }
  0x9c   :  { %340 = vst [vmem:[%s819_s4 + $0x8] sm:$0xff] %v324_v20  ;;  %v378_v41 = vmul.f32 %v324_v20, %v324_v20  ;;  %v355_v53 = vadd.f32 %v324_v20, %v323_v2  ;;  %v382_v13 = vmul.f32 %v724_v21, %v724_v21 }
  0x9d   :  { %344 = vst [vmem:[%s819_s4 + $0x28] sm:$0xff] %v724_v21 }
  0x9e   :  { %v161_v26 = vpop.f32.mrf.mxu2  ;;  %v171_v27 = vpop.f32.mrf.mxu3  ;;  %347 = vst [vmem:[%s819_s4 + $0x40] sm:$0xff] %v726_v22  ;;  %v393_v57 = vadd.f32 %v378_v41, %v377_v47 }
  0x9f   :  { %v162_v28 = vadd.f32 %v705_v58, %v161_v26  ;;  %v172_v29 = vadd.f32 %v705_v58, %v171_v27  ;;  %v144_v30 = vpop.f32.mrf.mxu0  ;;  %v154_v31 = vpop.f32.mrf.mxu1 }
  0xa0   :  { %v145_v33 = vadd.f32 %v705_v58, %v144_v30  ;;  %v155_v34 = vadd.f32 %v705_v58, %v154_v31 }
  0xa1   :  { %v748_v35 = vmul.f32 %v549_v23, %v172_v29  ;;  %v750_v36 = vmul.f32 %v539_v24, %v162_v28 }
  0xa2   :  { %v325_v37 = vmul.f32 %v521_v32, %v145_v33  ;;  %v329_v38 = vmul.f32 %v532_v25, %v155_v34 }
  0xa3   :  { %352 = vst [vmem:[%s819_s4 + $0x68] sm:$0xff] %v748_v35  ;;  %v386_v27 = vmul.f32 %v750_v36, %v750_v36 }
  0xa4   :  { %348 = vst [vmem:[%s819_s4 + $0x48] sm:$0xff] %v750_v36  ;;  %v379_v54 = vmul.f32 %v325_v37, %v325_v37  ;;  %v356_v60 = vadd.f32 %v355_v53, %v325_v37  ;;  %v383_v17 = vmul.f32 %v329_v38, %v329_v38 }
  0xa5   :  { %341 = vst [vmem:[%s819_s4 + $0x10] sm:$0xff] %v325_v37 }
  0xa6   :  { %345 = vst [vmem:[%s819_s4 + $0x30] sm:$0xff] %v329_v38  ;;  %v164_v44 = vpop.f32.mrf.mxu2  ;;  %v174_v45 = vpop.f32.mrf.mxu3  ;;  %v394_v0 = vadd.f32 %v393_v57, %v379_v54 }
  0xa7   :  { %v165_v49 = vadd.f32 %v705_v58, %v164_v44  ;;  %v175_v50 = vadd.f32 %v705_v58, %v174_v45  ;;  %v146_v51 = vpop.f32.mrf.mxu0  ;;  %v156_v52 = vpop.f32.mrf.mxu1 }
  0xa8   :  { %v147_v55 = vadd.f32 %v705_v58, %v146_v51  ;;  %v157_v56 = vadd.f32 %v705_v58, %v156_v52 }
  0xa9   :  { %v337_v59 = vmul.f32 %v553_v42, %v175_v50  ;;  %v333_v63 = vmul.f32 %v543_v46, %v165_v49 }
  0xaa   :  { %v326_v61 = vmul.f32 %v522_v43, %v147_v55  ;;  %v330_v62 = vmul.f32 %v533_v48, %v157_v56 }
  0xab   :  { %353 = vst [vmem:[%s819_s4 + $0x70] sm:$0xff] %v337_v59  ;;  %v387_v31 = vmul.f32 %v333_v63, %v333_v63  ;;  %v391_v43 = vmul.f32 %v337_v59, %v337_v59 }
  0xac   :  { %342 = vst [vmem:[%s819_s4 + $0x18] sm:$0xff] %v326_v61  ;;  %v357_v1 = vadd.f32 %v356_v60, %v326_v61  ;;  %v380_v2 = vmul.f32 %v326_v61, %v326_v61  ;;  %v384_v24 = vmul.f32 %v330_v62, %v330_v62 }
  0xad   :  { %346 = vst [vmem:[%s819_s4 + $0x38] sm:$0xff] %v330_v62 }
  0xae   :  { %v358_v6 = vadd.f32 %v357_v1, %v709_v3  ;;  %v395_v7 = vadd.f32 %v394_v0, %v380_v2  ;;  %349 = vst [vmem:[%s819_s4 + $0x50] sm:$0xff] %v333_v63  ;;  %v166_v8 = vpop.f32.mrf.mxu2  ;;  %v176_v9 = vpop.f32.mrf.mxu3 }
  0xaf   :  { %v167_v11 = vadd.f32 %v705_v58, %v166_v8  ;;  %v177_v12 = vadd.f32 %v705_v58, %v176_v9  ;;  %v385_v58 = vmul.f32 %v726_v22, %v726_v22 }
  0xb0   :  { %v396_v14 = vadd.f32 %v395_v7, %v381_v5  ;;  %v359_v15 = vadd.f32 %v358_v6, %v724_v21 }
  0xb1   :  { %v334_v16 = vmul.f32 %v544_v4, %v167_v11  ;;  %v338_v3 = vmul.f32 %v554_v10, %v177_v12 }
  0xb2   :  { %v360_v18 = vadd.f32 %v359_v15, %v329_v38  ;;  %v397_v20 = vadd.f32 %v396_v14, %v382_v13  ;;  %v389_v38 = vmul.f32 %v722_v19, %v722_v19 }
  0xb3   :  { %350 = vst [vmem:[%s819_s4 + $0x58] sm:$0xff] %v334_v16  ;;  %v388_v37 = vmul.f32 %v334_v16, %v334_v16  ;;  %v392_v46 = vmul.f32 %v338_v3, %v338_v3 }
  0xb4   :  { %v361_v23 = vadd.f32 %v360_v18, %v330_v62  ;;  %v398_v25 = vadd.f32 %v397_v20, %v383_v17  ;;  %354 = vst [vmem:[%s819_s4 + $0x78] sm:$0xff] %v338_v3 }
  0xb6   :  { %v362_v21 = vadd.f32 %v361_v23, %v726_v22  ;;  %v399_v26 = vadd.f32 %v398_v25, %v384_v24  ;;  %v390_v22 = vmul.f32 %v748_v35, %v748_v35 }
  0xb8   :  { %v400_v28 = vadd.f32 %v399_v26, %v385_v58  ;;  %v363_v29 = vadd.f32 %v362_v21, %v750_v36 }
  0xba   :  { %v364_v30 = vadd.f32 %v363_v29, %v333_v63  ;;  %v401_v32 = vadd.f32 %v400_v28, %v386_v27 }
  0xbc   :  { %v402_v33 = vadd.f32 %v401_v32, %v387_v31  ;;  %v365_v34 = vadd.f32 %v364_v30, %v334_v16 }
  0xbe   :  { %v366_v39 = vadd.f32 %v365_v34, %v722_v19  ;;  %v403_v40 = vadd.f32 %v402_v33, %v388_v37 }
  0xc0   :  { %v404_v41 = vadd.f32 %v403_v40, %v389_v38  ;;  %v367_v42 = vadd.f32 %v366_v39, %v748_v35 }
  0xc2   :  { %v368_v36 = vadd.f32 %v367_v42, %v337_v59  ;;  %v405_v44 = vadd.f32 %v404_v41, %v390_v22 }
  0xc4   :  { %v369_v45 = vadd.f32 %v368_v36, %v338_v3  ;;  %v406_v47 = vadd.f32 %v405_v44, %v391_v43 }
  0xc6   :  { %v370_v48 = vrot.slane %v369_v45, 4  ;;  %v407_v49 = vadd.f32 %v406_v47, %v392_v46 }
  0xc8   :  { %v371_v50 = vadd.f32 %v370_v48, %v369_v45  ;;  %v408_v51 = vrot.slane %v407_v49, 4 }
  0xca   :  { %v372_v52 = vrot.slane %v371_v50, 2  ;;  %v409_v53 = vadd.f32 %v408_v51, %v407_v49 }
  0xcc   :  { %v373_v19 = vadd.f32 %v372_v52, %v371_v50  ;;  %v410_v54 = vrot.slane %v409_v53, 2 }
  0xce   :  { %v374_v55 = vrot.slane %v373_v19, 1  ;;  %v411_v56 = vadd.f32 %v410_v54, %v409_v53 }
  0xd0   :  { %v375_v57 = vadd.f32 %v374_v55, %v373_v19  ;;  %v412_v60 = vrot.slane %v411_v56, 1 }
  0xd2   :  { %376 = vst [vmem:[%s820_s5] sm:$0xff] %v375_v57  ;;  %v413_v35 = vadd.f32 %v412_v60, %v411_v56 }
  0xd4   :  { %414 = vst [vmem:[%s821_s6] sm:$0xff] %v413_v35 }

// kernel: pconv_net_forward.19
= control target key start
LH: loop header
LB: loop body
LE: loop exit
PB: predicated region body
PF: predicated region fallthrough
CT: control target
= control target key end

     0   :  { %s98_s0 = inlined_call_operand.vmem [shape: f32[32,128], index: 0, kind: input, shape index: {}]   ;;  %s99_s1 = inlined_call_operand.vmem [shape: f32[1,128], index: 1, kind: input, shape index: {}]   ;;  %s100_s2 = inlined_call_operand.vmem [shape: f32[1,128], index: 2, kind: input, shape index: {}]   ;;  %s101_s3 = inlined_call_operand.vmem [shape: f32[32,128], index: 3, kind: output, shape index: {}]  }
   0x1   :  { %v14_v0 = vld [vmem:[%s98_s0] sm:$0xff]  ;;  %v15_v3 = vld [vmem:[%s98_s0 + $0x8] sm:$0xff]  ;;  %v16_v6 = vld [vmem:[%s98_s0 + $0x10] sm:$0xff] }
   0x2   :  { %v46_v1 = vld [vmem:[%s99_s1] ss:$0 sm:$0xff]  ;;  %v17_v7 = vld [vmem:[%s98_s0 + $0x18] sm:$0xff] }
   0x3   :  { %v47_v2 = vld [vmem:[%s100_s2] ss:$0 sm:$0xff]  ;;  %v22_v4 = vmul.f32 %v46_v1, %v14_v0  ;;  %v23_v5 = vmul.f32 %v46_v1, %v15_v3  ;;  %v24_v8 = vmul.f32 %v46_v1, %v16_v6  ;;  %v25_v9 = vmul.f32 %v46_v1, %v17_v7 }
   0x5   :  { %v30_v10 = vadd.f32 %v47_v2, %v22_v4  ;;  %v31_v11 = vadd.f32 %v47_v2, %v23_v5  ;;  %v32_v12 = vadd.f32 %v47_v2, %v24_v8  ;;  %v33_v13 = vadd.f32 %v47_v2, %v25_v9 }
   0x7   :  { %v34_v14 = vmax.f32 %v30_v10, 0.0  ;;  %v35_v15 = vmax.f32 %v31_v11, 0.0  ;;  %v36_v16 = vmax.f32 %v32_v12, 0.0  ;;  %v37_v17 = vmax.f32 %v33_v13, 0.0 }
   0x9   :  { %38 = vst [vmem:[%s101_s3] sm:$0xff] %v34_v14 }
   0xa   :  { %39 = vst [vmem:[%s101_s3 + $0x8] sm:$0xff] %v35_v15 }
   0xb   :  { %40 = vst [vmem:[%s101_s3 + $0x10] sm:$0xff] %v36_v16 }
   0xc   :  { %41 = vst [vmem:[%s101_s3 + $0x18] sm:$0xff] %v37_v17 }

// kernel: pconv_net_forward.18
= control target key start
LH: loop header
LB: loop body
LE: loop exit
PB: predicated region body
PF: predicated region fallthrough
CT: control target
= control target key end

     0   :  { %v240_v1 = vmov 0   ;;  %vm82_vm0 = vcmask 1043456   ;;  %v241_v8 = vmov 0.0   ;;  %vm75_vm5 = vcmask 588800   ;;  %s331_s2 = inlined_call_operand.vmem [shape: bf16[72,128], index: 2, kind: input, shape index: {}]   ;;  %s332_s1 = inlined_call_operand.vmem [shape: f32[32,1], index: 1, kind: input, shape index: {}]   ;;  %s333_s3 = inlined_call_operand.vmem [shape: f32[1,128], index: 3, kind: input, shape index: {}]   ;;  %s334_s0 = inlined_call_operand.vmem [shape: bf16[32,72], index: 0, kind: input, shape index: {}]   ;;  %s335_s4 = inlined_call_operand.vmem [shape: f32[32,128], index: 4, kind: output, shape index: {0}]   ;;  %s336_s5 = inlined_call_operand.vmem [shape: f32[8,128], index: 5, kind: output, shape index: {1}]   ;;  %s337_s6 = inlined_call_operand.vmem [shape: f32[8,128], index: 6, kind: output, shape index: {2}]  }
   0x1   :  { %v33_v0 = vld [vmem:[%s331_s2 + $0x20] sm:$0xf]  ;;  %228 = vset.pattern.permute.xlu0 %v240_v1  ;;  %v106_v4 = vld [vmem:[%s332_s1 + $0x8] sm:$0xff]  ;;  %v107_v6 = vld [vmem:[%s332_s1 + $0x10] sm:$0xff] }
   0x2   :  { %v65_v2 = vunpack.c.l.b16 %v33_v0  ;;  %v105_v3 = vld [vmem:[%s332_s1] sm:$0xff]  ;;  %vm110_vm2 = vcmp.gt.f32.partialorder %v106_v4, 0.0  ;;  %v108_v7 = vld [vmem:[%s332_s1 + $0x18] sm:$0xff]  ;;  %vm111_vm3 = vcmp.gt.f32.partialorder %v107_v6, 0.0  ;;  %v219_v16 = vld [vmem:[%s331_s2 + $0x10] sm:$0xff] }
   0x3   :  { %vm109_vm1 = vcmp.gt.f32.partialorder %v105_v3, 0.0  ;;  %v212_v10 = vsel %vm110_vm2, 1.0, %v241_v8  ;;  %vm112_vm4 = vcmp.gt.f32.partialorder %v108_v7, 0.0  ;;  %v220_v13 = vld [vmem:[%s331_s2 + $0x18] sm:$0xff]  ;;  %v213_v14 = vsel %vm111_vm3, 1.0, %v241_v8  ;;  %v218_v18 = vld [vmem:[%s331_s2 + $0x8] sm:$0xff] }
   0x4   :  { %v70_v5 = vpack.c.b16 %v65_v2, %v65_v2  ;;  %v211_v9 = vsel %vm109_vm1, 1.0, %v241_v8  ;;  %v214_v15 = vsel %vm112_vm4, 1.0, %v241_v8  ;;  %v217_v19 = vld [vmem:[%s331_s2] sm:$0xff]  ;;  %v216_v21 = vld [vmem:[%s334_s0 + $0x8] sm:$0xff] }
   0x5   :  { %v229_v12 = vpack.i.bf16 %v212_v10, %v211_v9  ;;  %v234_v17 = vpack.i.bf16 %v214_v15, %v213_v14  ;;  %v215_v20 = vld [vmem:[%s334_s0] sm:$0xff] }
   0x6   :  { %v84_v11 = vsel %vm82_vm0, %v70_v5, 0  ;;  %v239_v24 = vld [vmem:[%s333_s3] ss:$0 sm:$0xff] }
   0x7   :  { %89 = vmatpush.bf16.msra.mxu0 %v84_v11  ;;  %221 = vmatpush.bf16.msra.mxu1 %v84_v11 }
   0x8   :  { %230 = vperm.xlu0 %228, %v229_v12  }
   0xb   :  { %90 = vmatpush.bf16.msra.mxu0 %v220_v13  ;;  %222 = vmatpush.bf16.msra.mxu1 %v220_v13 }
   0xf   :  { %91 = vmatpush.bf16.msra.mxu0 %v219_v16  ;;  %223 = vmatpush.bf16.msra.mxu1 %v219_v16 }
  0x10   :  { %235 = vperm.xlu0 %228, %v234_v17  }
  0x13   :  { %92 = vmatpush.bf16.msra.mxu0 %v218_v18  ;;  %224 = vmatpush.bf16.msra.mxu1 %v218_v18 }
  0x17   :  { %93 = vmatpush.bf16.msra.mxu0 %v217_v19  ;;  %225 = vmatpush.bf16.msra.mxu1 %v217_v19 }
  0x1a   :  { %209 = vmatmul.msk.bf16.vlgmr.msra.gmra.mxu0 %vm75_vm5, %v215_v20  ;;  %210 = vmatmul.msk.bf16.vlgmr.msra.gmra.mxu1 %vm75_vm5, %v216_v21 }
  0x7a   :  { %v231_v22 = vpop.permute.xlu0 %230 }
  0x7b   :  { %v232_v25 = vunpack.i.l.bf16 %v231_v22  ;;  %v233_v35 = vunpack.i.h.bf16 %v231_v22 }
  0x82   :  { %v236_v23 = vpop.permute.xlu0 %235 }
  0x83   :  { %v237_v26 = vunpack.i.l.bf16 %v236_v23  ;;  %v238_v36 = vunpack.i.h.bf16 %v236_v23 }
  0x97   :  { %v95_v27 = vpop.f32.mrf.mxu0  ;;  %v100_v28 = vpop.f32.mrf.mxu1 }
  0x98   :  { %v96_v29 = vadd.f32 %v239_v24, %v95_v27  ;;  %v101_v30 = vadd.f32 %v239_v24, %v100_v28 }
  0x9a   :  { %v141_v31 = vmul.f32 %v232_v25, %v96_v29  ;;  %v143_v32 = vmul.f32 %v237_v26, %v101_v30 }
  0x9c   :  { %145 = vst [vmem:[%s335_s4] sm:$0xff] %v141_v31  ;;  %v159_v41 = vmul.f32 %v141_v31, %v141_v31  ;;  %v161_v44 = vmul.f32 %v143_v32, %v143_v32 }
  0x9d   :  { %147 = vst [vmem:[%s335_s4 + $0x10] sm:$0xff] %v143_v32 }
  0x9f   :  { %v97_v33 = vpop.f32.mrf.mxu0  ;;  %v102_v34 = vpop.f32.mrf.mxu1 }
  0xa0   :  { %v98_v37 = vadd.f32 %v239_v24, %v97_v33  ;;  %v103_v38 = vadd.f32 %v239_v24, %v102_v34 }
  0xa2   :  { %v142_v39 = vmul.f32 %v233_v35, %v98_v37  ;;  %v144_v40 = vmul.f32 %v238_v36, %v103_v38 }
  0xa4   :  { %146 = vst [vmem:[%s335_s4 + $0x8] sm:$0xff] %v142_v39  ;;  %v149_v42 = vadd.f32 %v142_v39, %v141_v31  ;;  %v160_v43 = vmul.f32 %v142_v39, %v142_v39  ;;  %v162_v48 = vmul.f32 %v144_v40, %v144_v40 }
  0xa5   :  { %148 = vst [vmem:[%s335_s4 + $0x18] sm:$0xff] %v144_v40 }
  0xa6   :  { %v163_v45 = vadd.f32 %v160_v43, %v159_v41  ;;  %v150_v46 = vadd.f32 %v149_v42, %v143_v32 }
  0xa8   :  { %v151_v47 = vadd.f32 %v150_v46, %v144_v40  ;;  %v164_v49 = vadd.f32 %v163_v45, %v161_v44 }
  0xaa   :  { %v152_v50 = vrot.slane %v151_v47, 4  ;;  %v165_v51 = vadd.f32 %v164_v49, %v162_v48 }
  0xac   :  { %v153_v52 = vadd.f32 %v152_v50, %v151_v47  ;;  %v166_v53 = vrot.slane %v165_v51, 4 }
  0xae   :  { %v154_v54 = vrot.slane %v153_v52, 2  ;;  %v167_v55 = vadd.f32 %v166_v53, %v165_v51 }
  0xb0   :  { %v155_v56 = vadd.f32 %v154_v54, %v153_v52  ;;  %v168_v57 = vrot.slane %v167_v55, 2 }
  0xb2   :  { %v156_v58 = vrot.slane %v155_v56, 1  ;;  %v169_v59 = vadd.f32 %v168_v57, %v167_v55 }
  0xb4   :  { %v157_v60 = vadd.f32 %v156_v58, %v155_v56  ;;  %v170_v61 = vrot.slane %v169_v59, 1 }
  0xb6   :  { %158 = vst [vmem:[%s336_s5] sm:$0xff] %v157_v60  ;;  %v171_v62 = vadd.f32 %v170_v61, %v169_v59 }
  0xb8   :  { %172 = vst [vmem:[%s337_s6] sm:$0xff] %v171_v62 }

// kernel: pconv_net_forward.21
= control target key start
LH: loop header
LB: loop body
LE: loop exit
PB: predicated region body
PF: predicated region fallthrough
CT: control target
= control target key end

     0   :  { %s76_s0 = inlined_call_operand.vmem [shape: f32[16,128], index: 0, kind: input, shape index: {}]   ;;  %s77_s1 = inlined_call_operand.vmem [shape: f32[1,128], index: 1, kind: input, shape index: {}]   ;;  %s78_s2 = inlined_call_operand.vmem [shape: f32[1,128], index: 2, kind: input, shape index: {}]   ;;  %s79_s3 = inlined_call_operand.vmem [shape: f32[16,128], index: 3, kind: output, shape index: {}]  }
   0x1   :  { %v14_v0 = vld [vmem:[%s76_s0] sm:$0xff]  ;;  %v15_v3 = vld [vmem:[%s76_s0 + $0x8] sm:$0xff] }
   0x2   :  { %v36_v1 = vld [vmem:[%s77_s1] ss:$0 sm:$0xff] }
   0x3   :  { %v37_v2 = vld [vmem:[%s78_s2] ss:$0 sm:$0xff]  ;;  %v20_v4 = vmul.f32 %v36_v1, %v14_v0  ;;  %v21_v5 = vmul.f32 %v36_v1, %v15_v3 }
   0x5   :  { %v26_v6 = vadd.f32 %v37_v2, %v20_v4  ;;  %v27_v7 = vadd.f32 %v37_v2, %v21_v5 }
   0x7   :  { %v28_v8 = vmax.f32 %v26_v6, 0.0  ;;  %v29_v9 = vmax.f32 %v27_v7, 0.0 }
   0x9   :  { %30 = vst [vmem:[%s79_s3] sm:$0xff] %v28_v8 }
   0xa   :  { %31 = vst [vmem:[%s79_s3 + $0x8] sm:$0xff] %v29_v9 }

// kernel: pconv_net_forward.20
= control target key start
LH: loop header
LB: loop body
LE: loop exit
PB: predicated region body
PF: predicated region fallthrough
CT: control target
= control target key end

     0   :  { %v259_v4 = vmov 0   ;;  %vm108_vm0 = vcmask 130048   ;;  %v260_v10 = vmov 0.0   ;;  %s356_s2 = inlined_call_operand.vmem [shape: bf16[144,128], index: 2, kind: input, shape index: {}]   ;;  %s357_s0 = inlined_call_operand.vmem [shape: bf16[16,144], index: 0, kind: input, shape index: {}]   ;;  %s358_s1 = inlined_call_operand.vmem [shape: f32[16,1], index: 1, kind: input, shape index: {}]   ;;  %s359_s3 = inlined_call_operand.vmem [shape: f32[1,128], index: 3, kind: input, shape index: {}]   ;;  %s360_s4 = inlined_call_operand.vmem [shape: f32[16,128], index: 4, kind: output, shape index: {0}]   ;;  %s361_s5 = inlined_call_operand.vmem [shape: f32[8,128], index: 5, kind: output, shape index: {1}]   ;;  %s362_s6 = inlined_call_operand.vmem [shape: f32[8,128], index: 6, kind: output, shape index: {2}]  }
   0x1   :  { %v248_v0 = vld [vmem:[%s356_s2 + $0x38] sm:$0xff]  ;;  %v247_v1 = vld [vmem:[%s356_s2 + $0x30] sm:$0xff]  ;;  %v249_v2 = vld [vmem:[%s356_s2 + $0x40] sm:$0xff]  ;;  %252 = vset.pattern.permute.xlu0 %v259_v4 }
   0x2   :  { %112 = vmatpush.bf16.msra.mxu0 %v248_v0  ;;  %v239_v3 = vld [vmem:[%s357_s0 + $0x4] sm:$0xf]  ;;  %v196_v5 = vld [vmem:[%s357_s0 + $0x8] sm:$0xf0]  ;;  %133 = vmatpush.bf16.msra.mxu1 %v249_v2  ;;  %v244_v15 = vld [vmem:[%s356_s2 + $0x18] sm:$0xff] }
   0x3   :  { %v199_v6 = vor.u32 %v239_v3, %v196_v5  ;;  %v140_v7 = vld [vmem:[%s358_s1] sm:$0xff]  ;;  %v141_v8 = vld [vmem:[%s358_s1 + $0x8] sm:$0xff]  ;;  %v243_v16 = vld [vmem:[%s356_s2 + $0x10] sm:$0xff] }
   0x4   :  { %vm142_vm1 = vcmp.gt.f32.partialorder %v140_v7, 0.0  ;;  %vm143_vm2 = vcmp.gt.f32.partialorder %v141_v8, 0.0  ;;  %v246_v9 = vld [vmem:[%s356_s2 + $0x28] sm:$0xff]  ;;  %v245_v14 = vld [vmem:[%s356_s2 + $0x20] sm:$0xff] }
   0x5   :  { %v237_v11 = vsel %vm142_vm1, 1.0, %v260_v10  ;;  %v238_v12 = vsel %vm143_vm2, 1.0, %v260_v10  ;;  %236 = vmatmul.msk.bf16.vlgmr.msra.gmra.mxu1 %vm108_vm0, %v199_v6  ;;  %v242_v17 = vld [vmem:[%s356_s2 + $0x8] sm:$0xff]  ;;  %v241_v18 = vld [vmem:[%s356_s2] sm:$0xff] }
   0x6   :  { %113 = vmatpush.bf16.msra.mxu0 %v247_v1  ;;  %v253_v13 = vpack.i.bf16 %v238_v12, %v237_v11  ;;  %v194_v19 = vld [vmem:[%s357_s0] sm:$0xf]  ;;  %v240_v20 = vld [vmem:[%s357_s0 + $0x4] sm:$0xf0] }
   0x7   :  { %v195_v21 = vor.u32 %v240_v20, %v194_v19  ;;  %v258_v22 = vld [vmem:[%s359_s3] ss:$0 sm:$0xff] }
   0x8   :  { %254 = vperm.xlu0 %252, %v253_v13  }
   0xa   :  { %114 = vmatpush.bf16.msra.mxu0 %v246_v9 }
   0xe   :  { %115 = vmatpush.bf16.msra.mxu0 %v245_v14 }
  0x12   :  { %116 = vmatpush.bf16.msra.mxu0 %v244_v15 }
  0x16   :  { %117 = vmatpush.bf16.msra.mxu0 %v243_v16 }
  0x1a   :  { %118 = vmatpush.bf16.msra.mxu0 %v242_v17 }
  0x1e   :  { %119 = vmatpush.bf16.msra.mxu0 %v241_v18 }
  0x21   :  { %120 = vmatmul.bf16.vlgmr.msra.gmra.mxu0 %v195_v21 }
  0x7a   :  { %v255_v23 = vpop.permute.xlu0 %254 }
  0x7b   :  { %v256_v27 = vunpack.i.l.bf16 %v255_v23  ;;  %v257_v31 = vunpack.i.h.bf16 %v255_v23 }
  0x82   :  { %v135_v24 = vpop.f32.mrf.mxu1 }
  0x8a   :  { %v137_v33 = vpop.f32.mrf.mxu1 }
  0x9e   :  { %v121_v25 = vpop.f32.mrf.mxu0 }
  0x9f   :  { %v122_v26 = vadd.f32 %v258_v22, %v121_v25 }
  0xa1   :  { %v136_v28 = vadd.f32 %v135_v24, %v122_v26 }
  0xa3   :  { %v158_v29 = vmul.f32 %v256_v27, %v136_v28 }
  0xa5   :  { %160 = vst [vmem:[%s360_s4] sm:$0xff] %v158_v29  ;;  %v170_v36 = vmul.f32 %v158_v29, %v158_v29 }
  0xa6   :  { %v123_v30 = vpop.f32.mrf.mxu0 }
  0xa7   :  { %v124_v32 = vadd.f32 %v258_v22, %v123_v30 }
  0xa9   :  { %v138_v34 = vadd.f32 %v137_v33, %v124_v32 }
  0xab   :  { %v159_v35 = vmul.f32 %v257_v31, %v138_v34 }
  0xad   :  { %161 = vst [vmem:[%s360_s4 + $0x8] sm:$0xff] %v159_v35  ;;  %v162_v37 = vadd.f32 %v159_v35, %v158_v29  ;;  %v171_v38 = vmul.f32 %v159_v35, %v159_v35 }
  0xaf   :  { %v163_v39 = vrot.slane %v162_v37, 4  ;;  %v172_v40 = vadd.f32 %v171_v38, %v170_v36 }
  0xb1   :  { %v164_v41 = vadd.f32 %v163_v39, %v162_v37  ;;  %v173_v42 = vrot.slane %v172_v40, 4 }
  0xb3   :  { %v165_v43 = vrot.slane %v164_v41, 2  ;;  %v174_v44 = vadd.f32 %v173_v42, %v172_v40 }
  0xb5   :  { %v166_v45 = vadd.f32 %v165_v43, %v164_v41  ;;  %v175_v46 = vrot.slane %v174_v44, 2 }
  0xb7   :  { %v167_v47 = vrot.slane %v166_v45, 1  ;;  %v176_v48 = vadd.f32 %v175_v46, %v174_v44 }
  0xb9   :  { %v168_v49 = vadd.f32 %v167_v47, %v166_v45  ;;  %v177_v50 = vrot.slane %v176_v48, 1 }
  0xbb   :  { %169 = vst [vmem:[%s361_s5] sm:$0xff] %v168_v49  ;;  %v178_v51 = vadd.f32 %v177_v50, %v176_v48 }
  0xbd   :  { %179 = vst [vmem:[%s362_s6] sm:$0xff] %v178_v51 }

// kernel: pconv_net_forward.22
= control target key start
LH: loop header
LB: loop body
LE: loop exit
PB: predicated region body
PF: predicated region fallthrough
CT: control target
= control target key end

     0   :  { %v403_v5 = vmov 0   ;;  %vm188_vm0 = vcmask 261120   ;;  %v404_v16 = vmov 0.0   ;;  %s533_s2 = inlined_call_operand.vmem [shape: bf16[288,128], index: 2, kind: input, shape index: {}]   ;;  %s534_s0 = inlined_call_operand.vmem [shape: bf16[16,288], index: 0, kind: input, shape index: {}]   ;;  %s535_s1 = inlined_call_operand.vmem [shape: f32[16,1], index: 1, kind: input, shape index: {}]   ;;  %s536_s3 = inlined_call_operand.vmem [shape: f32[1,128], index: 3, kind: input, shape index: {}]   ;;  %s537_s4 = inlined_call_operand.vmem [shape: f32[16,128], index: 4, kind: output, shape index: {0}]   ;;  %s538_s5 = inlined_call_operand.vmem [shape: f32[8,128], index: 5, kind: output, shape index: {1}]   ;;  %s539_s6 = inlined_call_operand.vmem [shape: f32[8,128], index: 6, kind: output, shape index: {2}]  }
   0x1   :  { %v383_v0 = vld [vmem:[%s533_s2 + $0x38] sm:$0xff]  ;;  %v382_v2 = vld [vmem:[%s533_s2 + $0x30] sm:$0xff]  ;;  %v393_v4 = vld [vmem:[%s533_s2 + $0x88] sm:$0xff]  ;;  %396 = vset.pattern.permute.xlu0 %v403_v5 }
   0x2   :  { %v391_v1 = vld [vmem:[%s533_s2 + $0x78] sm:$0xff]  ;;  %192 = vmatpush.bf16.msra.mxu0 %v383_v0  ;;  %v390_v3 = vld [vmem:[%s533_s2 + $0x70] sm:$0xff]  ;;  %226 = vmatpush.bf16.msra.mxu2 %v393_v4  ;;  %v392_v6 = vld [vmem:[%s533_s2 + $0x80] sm:$0xff] }
   0x3   :  { %206 = vmatpush.bf16.msra.mxu1 %v391_v1  ;;  %v296_v7 = vld [vmem:[%s534_s0 + $0x8] sm:$0xf]  ;;  %v375_v8 = vld [vmem:[%s534_s0 + $0x10] sm:$0xf0]  ;;  %v234_v12 = vld [vmem:[%s535_s1] sm:$0xff] }
   0x4   :  { %v381_v9 = vld [vmem:[%s533_s2 + $0x28] sm:$0xff]  ;;  %v297_v11 = vor.u32 %v375_v8, %v296_v7  ;;  %vm236_vm1 = vcmp.gt.f32.partialorder %v234_v12, 0.0  ;;  %v380_v14 = vld [vmem:[%s533_s2 + $0x20] sm:$0xff]  ;;  %v379_v20 = vld [vmem:[%s533_s2 + $0x18] sm:$0xff] }
   0x5   :  { %v389_v10 = vld [vmem:[%s533_s2 + $0x68] sm:$0xff]  ;;  %v388_v15 = vld [vmem:[%s533_s2 + $0x60] sm:$0xff]  ;;  %v371_v17 = vsel %vm236_vm1, 1.0, %v404_v16  ;;  %v387_v21 = vld [vmem:[%s533_s2 + $0x58] sm:$0xff] }
   0x6   :  { %193 = vmatpush.bf16.msra.mxu0 %v382_v2  ;;  %227 = vmatpush.bf16.msra.mxu2 %v392_v6  ;;  %v235_v13 = vld [vmem:[%s535_s1 + $0x8] sm:$0xff]  ;;  %v378_v22 = vld [vmem:[%s533_s2 + $0x10] sm:$0xff]  ;;  %v376_v26 = vld [vmem:[%s533_s2] sm:$0xff] }
   0x7   :  { %207 = vmatpush.bf16.msra.mxu1 %v390_v3  ;;  %vm237_vm2 = vcmp.gt.f32.partialorder %v235_v13, 0.0  ;;  %v386_v23 = vld [vmem:[%s533_s2 + $0x50] sm:$0xff]  ;;  %v377_v24 = vld [vmem:[%s533_s2 + $0x8] sm:$0xff]  ;;  %v384_v27 = vld [vmem:[%s533_s2 + $0x40] sm:$0xff] }
   0x8   :  { %v372_v18 = vsel %vm237_vm2, 1.0, %v404_v16  ;;  %v385_v25 = vld [vmem:[%s533_s2 + $0x48] sm:$0xff]  ;;  %v288_v28 = vld [vmem:[%s534_s0] sm:$0xf]  ;;  %v373_v30 = vld [vmem:[%s534_s0 + $0x4] sm:$0xf] }
   0x9   :  { %370 = vmatmul.msk.bf16.vlgmr.msra.gmra.mxu2 %vm188_vm0, %v297_v11  ;;  %v397_v19 = vpack.i.bf16 %v372_v18, %v371_v17  ;;  %v374_v29 = vld [vmem:[%s534_s0 + $0x8] sm:$0xf0]  ;;  %v290_v31 = vld [vmem:[%s534_s0 + $0xc] sm:$0xf0]  ;;  %v402_v34 = vld [vmem:[%s536_s3] ss:$0 sm:$0xff] }
   0xa   :  { %194 = vmatpush.bf16.msra.mxu0 %v381_v9  ;;  %v289_v32 = vor.u32 %v374_v29, %v288_v28  ;;  %v293_v33 = vor.u32 %v373_v30, %v290_v31 }
   0xb   :  { %208 = vmatpush.bf16.msra.mxu1 %v389_v10  ;;  %398 = vperm.xlu0 %396, %v397_v19  }
   0xe   :  { %195 = vmatpush.bf16.msra.mxu0 %v380_v14 }
   0xf   :  { %209 = vmatpush.bf16.msra.mxu1 %v388_v15 }
  0x12   :  { %196 = vmatpush.bf16.msra.mxu0 %v379_v20 }
  0x13   :  { %210 = vmatpush.bf16.msra.mxu1 %v387_v21 }
  0x16   :  { %197 = vmatpush.bf16.msra.mxu0 %v378_v22 }
  0x17   :  { %211 = vmatpush.bf16.msra.mxu1 %v386_v23 }
  0x1a   :  { %198 = vmatpush.bf16.msra.mxu0 %v377_v24 }
  0x1b   :  { %212 = vmatpush.bf16.msra.mxu1 %v385_v25 }
  0x1e   :  { %199 = vmatpush.bf16.msra.mxu0 %v376_v26 }
  0x1f   :  { %213 = vmatpush.bf16.msra.mxu1 %v384_v27 }
  0x21   :  { %200 = vmatmul.bf16.vlgmr.msra.gmra.mxu0 %v289_v32 }
  0x22   :  { %214 = vmatmul.bf16.vlgmr.msra.gmra.mxu1 %v293_v33 }
  0x7d   :  { %v399_v35 = vpop.permute.xlu0 %398 }
  0x7e   :  { %v400_v41 = vunpack.i.l.bf16 %v399_v35  ;;  %v401_v47 = vunpack.i.h.bf16 %v399_v35 }
  0x8c   :  { %v229_v39 = vpop.f32.mrf.mxu2 }
  0x94   :  { %v231_v49 = vpop.f32.mrf.mxu2 }
  0x9e   :  { %v201_v36 = vpop.f32.mrf.mxu0 }
  0x9f   :  { %v215_v37 = vpop.f32.mrf.mxu1  ;;  %v202_v38 = vadd.f32 %v402_v34, %v201_v36 }
  0xa1   :  { %v216_v40 = vadd.f32 %v215_v37, %v202_v38 }
  0xa3   :  { %v230_v42 = vadd.f32 %v229_v39, %v216_v40 }
  0xa5   :  { %v252_v43 = vmul.f32 %v400_v41, %v230_v42 }
  0xa6   :  { %v203_v44 = vpop.f32.mrf.mxu0 }
  0xa7   :  { %254 = vst [vmem:[%s537_s4] sm:$0xff] %v252_v43  ;;  %v204_v45 = vadd.f32 %v402_v34, %v203_v44  ;;  %v217_v46 = vpop.f32.mrf.mxu1  ;;  %v264_v52 = vmul.f32 %v252_v43, %v252_v43 }
  0xa9   :  { %v218_v48 = vadd.f32 %v217_v46, %v204_v45 }
  0xab   :  { %v232_v50 = vadd.f32 %v231_v49, %v218_v48 }
  0xad   :  { %v253_v51 = vmul.f32 %v401_v47, %v232_v50 }
  0xaf   :  { %255 = vst [vmem:[%s537_s4 + $0x8] sm:$0xff] %v253_v51  ;;  %v256_v53 = vadd.f32 %v253_v51, %v252_v43  ;;  %v265_v54 = vmul.f32 %v253_v51, %v253_v51 }
  0xb1   :  { %v257_v55 = vrot.slane %v256_v53, 4  ;;  %v266_v56 = vadd.f32 %v265_v54, %v264_v52 }
  0xb3   :  { %v258_v57 = vadd.f32 %v257_v55, %v256_v53  ;;  %v267_v58 = vrot.slane %v266_v56, 4 }
  0xb5   :  { %v259_v59 = vrot.slane %v258_v57, 2  ;;  %v268_v60 = vadd.f32 %v267_v58, %v266_v56 }
  0xb7   :  { %v260_v61 = vadd.f32 %v259_v59, %v258_v57  ;;  %v269_v62 = vrot.slane %v268_v60, 2 }
  0xb9   :  { %v261_v63 = vrot.slane %v260_v61, 1  ;;  %v270_v0 = vadd.f32 %v269_v62, %v268_v60 }
  0xbb   :  { %v262_v1 = vadd.f32 %v261_v63, %v260_v61  ;;  %v271_v2 = vrot.slane %v270_v0, 1 }
  0xbd   :  { %263 = vst [vmem:[%s538_s5] sm:$0xff] %v262_v1  ;;  %v272_v3 = vadd.f32 %v271_v2, %v270_v0 }
  0xbf   :  { %273 = vst [vmem:[%s539_s6] sm:$0xff] %v272_v3 }

// kernel: pconv_net_forward.25
= control target key start
LH: loop header
LB: loop body
LE: loop exit
PB: predicated region body
PF: predicated region fallthrough
CT: control target
= control target key end

     0   :  { %s80_s0 = inlined_call_operand.vmem [shape: f32[16,128], index: 0, kind: input, shape index: {}]   ;;  %s81_s1 = inlined_call_operand.vmem [shape: f32[1,128], index: 1, kind: input, shape index: {}]   ;;  %s82_s2 = inlined_call_operand.vmem [shape: f32[1,128], index: 2, kind: input, shape index: {}]   ;;  %s83_s3 = inlined_call_operand.vmem [shape: f32[16,128], index: 3, kind: output, shape index: {}]  }
   0x1   :  { %v14_v0 = vld [vmem:[%s80_s0] sm:$0xff]  ;;  %v15_v3 = vld [vmem:[%s80_s0 + $0x8] sm:$0xff] }
   0x2   :  { %v40_v1 = vld [vmem:[%s81_s1] ss:$0 sm:$0xff] }
   0x3   :  { %v41_v2 = vld [vmem:[%s82_s2] ss:$0 sm:$0xff]  ;;  %v20_v4 = vmul.f32 %v40_v1, %v14_v0  ;;  %v21_v5 = vmul.f32 %v40_v1, %v15_v3 }
   0x5   :  { %v26_v6 = vadd.f32 %v41_v2, %v20_v4  ;;  %v27_v7 = vadd.f32 %v41_v2, %v21_v5 }
   0x7   :  { %vm28_vm0 = vcmp.ge.f32.partialorder %v26_v6, 0.0  ;;  %v30_v8 = vmul.f32 0.01, %v26_v6  ;;  %vm29_vm1 = vcmp.ge.f32.partialorder %v27_v7, 0.0  ;;  %v31_v9 = vmul.f32 0.01, %v27_v7 }
   0x9   :  { %v32_v10 = vsel %vm28_vm0, %v26_v6, %v30_v8  ;;  %v33_v11 = vsel %vm29_vm1, %v27_v7, %v31_v9 }
   0xa   :  { %34 = vst [vmem:[%s83_s3] sm:$0xff] %v32_v10 }
   0xb   :  { %35 = vst [vmem:[%s83_s3 + $0x8] sm:$0xff] %v33_v11 }

// kernel: pconv_net_forward.24
= control target key start
LH: loop header
LB: loop body
LE: loop exit
PB: predicated region body
PF: predicated region fallthrough
CT: control target
= control target key end

     0   :  { %v971_v52 = vmov 0.0   ;;  %v972_v57 = vmov 0   ;;  %vm500_vm2 = vcmask 785408   ;;  %s1233_s2 = inlined_call_operand.vmem [shape: bf16[864,128], index: 2, kind: input, shape index: {}]   ;;  %s1234_s3 = inlined_call_operand.vmem [shape: f32[1,128], index: 3, kind: input, shape index: {}]   ;;  %s1235_s0 = inlined_call_operand.vmem [shape: bf16[16,864], index: 0, kind: input, shape index: {}]   ;;  %s1236_s1 = inlined_call_operand.vmem [shape: f32[16,1], index: 1, kind: input, shape index: {}]   ;;  %s1237_s4 = inlined_call_operand.vmem [shape: f32[16,128], index: 4, kind: output, shape index: {0}]   ;;  %s1238_s5 = inlined_call_operand.vmem [shape: f32[8,128], index: 5, kind: output, shape index: {1}]   ;;  %s1239_s6 = inlined_call_operand.vmem [shape: f32[8,128], index: 6, kind: output, shape index: {2}]  }
   0x1   :  { %v915_v0 = vld [vmem:[%s1233_s2 + $0x38] sm:$0xff]  ;;  %v914_v3 = vld [vmem:[%s1233_s2 + $0x30] sm:$0xff]  ;;  %v913_v8 = vld [vmem:[%s1233_s2 + $0x28] sm:$0xff]  ;;  %964 = vset.pattern.permute.xlu0 %v972_v57 }
   0x2   :  { %v923_v1 = vld [vmem:[%s1233_s2 + $0x78] sm:$0xff]  ;;  %504 = vmatpush.bf16.msra.mxu0 %v915_v0  ;;  %v922_v4 = vld [vmem:[%s1233_s2 + $0x70] sm:$0xff]  ;;  %v921_v9 = vld [vmem:[%s1233_s2 + $0x68] sm:$0xff] }
   0x3   :  { %v931_v2 = vld [vmem:[%s1233_s2 + $0xb8] sm:$0xff]  ;;  %518 = vmatpush.bf16.msra.mxu1 %v923_v1  ;;  %v930_v6 = vld [vmem:[%s1233_s2 + $0xb0] sm:$0xff]  ;;  %v929_v10 = vld [vmem:[%s1233_s2 + $0xa8] sm:$0xff] }
   0x4   :  { %v939_v5 = vld [vmem:[%s1233_s2 + $0xf8] sm:$0xff]  ;;  %532 = vmatpush.bf16.msra.mxu2 %v931_v2  ;;  %v938_v7 = vld [vmem:[%s1233_s2 + $0xf0] sm:$0xff]  ;;  %v937_v11 = vld [vmem:[%s1233_s2 + $0xe8] sm:$0xff] }
   0x5   :  { %546 = vmatpush.bf16.msra.mxu3 %v939_v5  ;;  %v912_v12 = vld [vmem:[%s1233_s2 + $0x20] sm:$0xff]  ;;  %v911_v16 = vld [vmem:[%s1233_s2 + $0x18] sm:$0xff]  ;;  %v910_v20 = vld [vmem:[%s1233_s2 + $0x10] sm:$0xff] }
   0x6   :  { %505 = vmatpush.bf16.msra.mxu0 %v914_v3  ;;  %v920_v13 = vld [vmem:[%s1233_s2 + $0x60] sm:$0xff]  ;;  %v919_v17 = vld [vmem:[%s1233_s2 + $0x58] sm:$0xff]  ;;  %v918_v21 = vld [vmem:[%s1233_s2 + $0x50] sm:$0xff] }
   0x7   :  { %519 = vmatpush.bf16.msra.mxu1 %v922_v4  ;;  %v928_v14 = vld [vmem:[%s1233_s2 + $0xa0] sm:$0xff]  ;;  %v927_v18 = vld [vmem:[%s1233_s2 + $0x98] sm:$0xff]  ;;  %v926_v22 = vld [vmem:[%s1233_s2 + $0x90] sm:$0xff] }
   0x8   :  { %533 = vmatpush.bf16.msra.mxu2 %v930_v6  ;;  %v936_v15 = vld [vmem:[%s1233_s2 + $0xe0] sm:$0xff]  ;;  %v935_v19 = vld [vmem:[%s1233_s2 + $0xd8] sm:$0xff]  ;;  %v934_v23 = vld [vmem:[%s1233_s2 + $0xd0] sm:$0xff] }
   0x9   :  { %547 = vmatpush.bf16.msra.mxu3 %v938_v7  ;;  %v909_v24 = vld [vmem:[%s1233_s2 + $0x8] sm:$0xff]  ;;  %v908_v27 = vld [vmem:[%s1233_s2] sm:$0xff]  ;;  %v947_v31 = vld [vmem:[%s1233_s2 + $0x138] sm:$0xff] }
   0xa   :  { %506 = vmatpush.bf16.msra.mxu0 %v913_v8  ;;  %v917_v25 = vld [vmem:[%s1233_s2 + $0x48] sm:$0xff]  ;;  %v916_v29 = vld [vmem:[%s1233_s2 + $0x40] sm:$0xff]  ;;  %v904_v34 = vld [vmem:[%s1235_s0 + $0x18] sm:$0xf0] }
   0xb   :  { %520 = vmatpush.bf16.msra.mxu1 %v921_v9  ;;  %v925_v26 = vld [vmem:[%s1233_s2 + $0x88] sm:$0xff]  ;;  %v924_v30 = vld [vmem:[%s1233_s2 + $0x80] sm:$0xff]  ;;  %v955_v38 = vld [vmem:[%s1233_s2 + $0x178] sm:$0xff] }
   0xc   :  { %534 = vmatpush.bf16.msra.mxu2 %v929_v10  ;;  %v933_v28 = vld [vmem:[%s1233_s2 + $0xc8] sm:$0xff]  ;;  %v656_v33 = vld [vmem:[%s1235_s0] sm:$0xf]  ;;  %v905_v35 = vld [vmem:[%s1235_s0 + $0x20] sm:$0xf0] }
   0xd   :  { %548 = vmatpush.bf16.msra.mxu3 %v937_v11  ;;  %v664_v32 = vld [vmem:[%s1235_s0 + $0x8] sm:$0xf]  ;;  %v901_v36 = vld [vmem:[%s1235_s0 + $0x4] sm:$0xf]  ;;  %v658_v37 = vld [vmem:[%s1235_s0 + $0x1c] sm:$0xf0]  ;;  %v657_v41 = vor.u32 %v904_v34, %v656_v33 }
   0xe   :  { %507 = vmatpush.bf16.msra.mxu0 %v912_v12  ;;  %v961_v39 = vld [vmem:[%s1233_s2 + $0x1a8] sm:$0xff]  ;;  %v932_v40 = vld [vmem:[%s1233_s2 + $0xc0] sm:$0xff]  ;;  %v665_v42 = vor.u32 %v905_v35, %v664_v32  ;;  %v661_v45 = vor.u32 %v901_v36, %v658_v37  ;;  %v946_v46 = vld [vmem:[%s1233_s2 + $0x130] sm:$0xff] }
   0xf   :  { %521 = vmatpush.bf16.msra.mxu1 %v920_v13  ;;  %v902_v43 = vld [vmem:[%s1235_s0 + $0xc] sm:$0xf]  ;;  %v666_v44 = vld [vmem:[%s1235_s0 + $0x24] sm:$0xf0]  ;;  %v602_v47 = vld [vmem:[%s1236_s1] sm:$0xff] }
  0x10   :  { %535 = vmatpush.bf16.msra.mxu2 %v928_v14  ;;  %v603_v48 = vld [vmem:[%s1236_s1 + $0x8] sm:$0xff]  ;;  %v954_v49 = vld [vmem:[%s1233_s2 + $0x170] sm:$0xff]  ;;  %v960_v50 = vld [vmem:[%s1233_s2 + $0x1a0] sm:$0xff]  ;;  %vm604_vm0 = vcmp.gt.f32.partialorder %v602_v47, 0.0  ;;  %v669_v51 = vor.u32 %v902_v43, %v666_v44 }
  0x11   :  { %549 = vmatpush.bf16.msra.mxu3 %v936_v15  ;;  %vm605_vm1 = vcmp.gt.f32.partialorder %v603_v48, 0.0  ;;  %v899_v53 = vsel %vm604_vm0, 1.0, %v971_v52  ;;  %v945_v56 = vld [vmem:[%s1233_s2 + $0x128] sm:$0xff]  ;;  %v959_v59 = vld [vmem:[%s1233_s2 + $0x198] sm:$0xff]  ;;  %v944_v60 = vld [vmem:[%s1233_s2 + $0x120] sm:$0xff] }
  0x12   :  { %508 = vmatpush.bf16.msra.mxu0 %v911_v16  ;;  %v900_v54 = vsel %vm605_vm1, 1.0, %v971_v52  ;;  %v953_v58 = vld [vmem:[%s1233_s2 + $0x168] sm:$0xff]  ;;  %v952_v61 = vld [vmem:[%s1233_s2 + $0x160] sm:$0xff]  ;;  %v958_v62 = vld [vmem:[%s1233_s2 + $0x190] sm:$0xff] }
  0x13   :  { %522 = vmatpush.bf16.msra.mxu1 %v919_v17  ;;  %v965_v55 = vpack.i.bf16 %v900_v54, %v899_v53  ;;  %v943_v63 = vld [vmem:[%s1233_s2 + $0x118] sm:$0xff]  ;;  %v957_v1 = vld [vmem:[%s1233_s2 + $0x188] sm:$0xff]  ;;  %v942_v2 = vld [vmem:[%s1233_s2 + $0x110] sm:$0xff] }
  0x14   :  { %536 = vmatpush.bf16.msra.mxu2 %v927_v18  ;;  %v951_v0 = vld [vmem:[%s1233_s2 + $0x158] sm:$0xff]  ;;  %v950_v3 = vld [vmem:[%s1233_s2 + $0x150] sm:$0xff]  ;;  %v956_v4 = vld [vmem:[%s1233_s2 + $0x180] sm:$0xff] }
  0x15   :  { %550 = vmatpush.bf16.msra.mxu3 %v935_v19  ;;  %966 = vperm.xlu0 %964, %v965_v55   ;;  %v680_v5 = vld [vmem:[%s1235_s0 + $0x18] sm:$0xf]  ;;  %v907_v6 = vld [vmem:[%s1235_s0 + $0x30] sm:$0xf0]  ;;  %v941_v8 = vld [vmem:[%s1233_s2 + $0x108] sm:$0xff] }
  0x16   :  { %509 = vmatpush.bf16.msra.mxu0 %v910_v20  ;;  %v681_v7 = vor.u32 %v907_v6, %v680_v5  ;;  %v949_v9 = vld [vmem:[%s1233_s2 + $0x148] sm:$0xff]  ;;  %v940_v10 = vld [vmem:[%s1233_s2 + $0x100] sm:$0xff]  ;;  %v672_v11 = vld [vmem:[%s1235_s0 + $0x10] sm:$0xf] }
  0x17   :  { %523 = vmatpush.bf16.msra.mxu1 %v918_v21  ;;  %v906_v12 = vld [vmem:[%s1235_s0 + $0x28] sm:$0xf0]  ;;  %v948_v13 = vld [vmem:[%s1233_s2 + $0x140] sm:$0xff]  ;;  %v903_v14 = vld [vmem:[%s1235_s0 + $0x14] sm:$0xf] }
  0x18   :  { %537 = vmatpush.bf16.msra.mxu2 %v926_v22  ;;  %v674_v15 = vld [vmem:[%s1235_s0 + $0x2c] sm:$0xf0]  ;;  %v673_v16 = vor.u32 %v906_v12, %v672_v11  ;;  %v970_v19 = vld [vmem:[%s1234_s3] ss:$0 sm:$0xff] }
  0x19   :  { %551 = vmatpush.bf16.msra.mxu3 %v934_v23  ;;  %v677_v17 = vor.u32 %v903_v14, %v674_v15 }
  0x1a   :  { %510 = vmatpush.bf16.msra.mxu0 %v909_v24 }
  0x1b   :  { %524 = vmatpush.bf16.msra.mxu1 %v917_v25 }
  0x1c   :  { %538 = vmatpush.bf16.msra.mxu2 %v925_v26 }
  0x1d   :  { %552 = vmatpush.bf16.msra.mxu3 %v933_v28 }
  0x1e   :  { %511 = vmatpush.bf16.msra.mxu0 %v908_v27 }
  0x1f   :  { %525 = vmatpush.bf16.msra.mxu1 %v916_v29 }
  0x20   :  { %539 = vmatpush.bf16.msra.mxu2 %v924_v30 }
  0x21   :  { %553 = vmatpush.bf16.msra.mxu3 %v932_v40  ;;  %512 = vmatmul.bf16.vlgmr.msra.gmra.mxu0 %v657_v41 }
  0x22   :  { %560 = vmatpush.bf16.msrb.mxu0 %v947_v31  ;;  %526 = vmatmul.bf16.vlgmr.msra.gmra.mxu1 %v661_v45 }
  0x23   :  { %574 = vmatpush.bf16.msrb.mxu1 %v955_v38  ;;  %540 = vmatmul.bf16.vlgmr.msra.gmra.mxu2 %v665_v42 }
  0x24   :  { %590 = vmatpush.bf16.msrb.mxu2 %v961_v39  ;;  %554 = vmatmul.bf16.vlgmr.msra.gmra.mxu3 %v669_v51 }
  0x26   :  { %561 = vmatpush.bf16.msrb.mxu0 %v946_v46 }
  0x27   :  { %575 = vmatpush.bf16.msrb.mxu1 %v954_v49 }
  0x28   :  { %591 = vmatpush.bf16.msrb.mxu2 %v960_v50 }
  0x2a   :  { %562 = vmatpush.bf16.msrb.mxu0 %v945_v56 }
  0x2b   :  { %576 = vmatpush.bf16.msrb.mxu1 %v953_v58 }
  0x2c   :  { %592 = vmatpush.bf16.msrb.mxu2 %v959_v59 }
  0x2e   :  { %563 = vmatpush.bf16.msrb.mxu0 %v944_v60 }
  0x2f   :  { %577 = vmatpush.bf16.msrb.mxu1 %v952_v61 }
  0x30   :  { %593 = vmatpush.bf16.msrb.mxu2 %v958_v62 }
  0x32   :  { %564 = vmatpush.bf16.msrb.mxu0 %v943_v63 }
  0x33   :  { %578 = vmatpush.bf16.msrb.mxu1 %v951_v0 }
  0x34   :  { %594 = vmatpush.bf16.msrb.mxu2 %v957_v1 }
  0x36   :  { %565 = vmatpush.bf16.msrb.mxu0 %v942_v2 }
  0x37   :  { %579 = vmatpush.bf16.msrb.mxu1 %v950_v3 }
  0x38   :  { %595 = vmatpush.bf16.msrb.mxu2 %v956_v4 }
  0x3a   :  { %566 = vmatpush.bf16.msrb.mxu0 %v941_v8 }
  0x3b   :  { %898 = vmatmul.msk.bf16.vlgmr.msrb.gmra.mxu2 %vm500_vm2, %v681_v7  ;;  %580 = vmatpush.bf16.msrb.mxu1 %v949_v9 }
  0x3e   :  { %567 = vmatpush.bf16.msrb.mxu0 %v940_v10 }
  0x3f   :  { %581 = vmatpush.bf16.msrb.mxu1 %v948_v13 }
  0x41   :  { %568 = vmatmul.bf16.vlgmr.msrb.gmra.mxu0 %v673_v16 }
  0x42   :  { %582 = vmatmul.bf16.vlgmr.msrb.gmra.mxu1 %v677_v17 }
  0x87   :  { %v967_v33 = vpop.permute.xlu0 %966 }
  0x88   :  { %v968_v39 = vunpack.i.l.bf16 %v967_v33  ;;  %v969_v47 = vunpack.i.h.bf16 %v967_v33 }
  0x9e   :  { %v513_v18 = vpop.f32.mrf.mxu0 }
  0x9f   :  { %v527_v20 = vpop.f32.mrf.mxu1  ;;  %v514_v22 = vadd.f32 %v970_v19, %v513_v18 }
  0xa1   :  { %v528_v23 = vadd.f32 %v527_v20, %v514_v22 }
  0xa6   :  { %v541_v21 = vpop.f32.mrf.mxu2  ;;  %v515_v24 = vpop.f32.mrf.mxu0 }
  0xa7   :  { %v529_v25 = vpop.f32.mrf.mxu1  ;;  %v555_v26 = vpop.f32.mrf.mxu3  ;;  %v542_v28 = vadd.f32 %v541_v21, %v528_v23  ;;  %v516_v29 = vadd.f32 %v970_v19, %v515_v24 }
  0xa9   :  { %v556_v30 = vadd.f32 %v555_v26, %v542_v28  ;;  %v530_v31 = vadd.f32 %v529_v25, %v516_v29 }
  0xae   :  { %v543_v27 = vpop.f32.mrf.mxu2 }
  0xaf   :  { %v544_v37 = vadd.f32 %v543_v27, %v530_v31  ;;  %v557_v40 = vpop.f32.mrf.mxu3 }
  0xb1   :  { %v558_v42 = vadd.f32 %v557_v40, %v544_v37 }
  0xbe   :  { %v569_v32 = vpop.f32.mrf.mxu0  ;;  %v597_v36 = vpop.f32.mrf.mxu2 }
  0xbf   :  { %v570_v34 = vadd.f32 %v569_v32, %v556_v30  ;;  %v583_v35 = vpop.f32.mrf.mxu1 }
  0xc1   :  { %v584_v38 = vadd.f32 %v583_v35, %v570_v34 }
  0xc3   :  { %v598_v41 = vadd.f32 %v597_v36, %v584_v38 }
  0xc5   :  { %v620_v43 = vmul.f32 %v968_v39, %v598_v41 }
  0xc6   :  { %v571_v44 = vpop.f32.mrf.mxu0  ;;  %v599_v49 = vpop.f32.mrf.mxu2 }
  0xc7   :  { %622 = vst [vmem:[%s1237_s4] sm:$0xff] %v620_v43  ;;  %v572_v45 = vadd.f32 %v571_v44, %v558_v42  ;;  %v585_v46 = vpop.f32.mrf.mxu1  ;;  %v632_v52 = vmul.f32 %v620_v43, %v620_v43 }
  0xc9   :  { %v586_v48 = vadd.f32 %v585_v46, %v572_v45 }
  0xcb   :  { %v600_v50 = vadd.f32 %v599_v49, %v586_v48 }
  0xcd   :  { %v621_v51 = vmul.f32 %v969_v47, %v600_v50 }
  0xcf   :  { %623 = vst [vmem:[%s1237_s4 + $0x8] sm:$0xff] %v621_v51  ;;  %v624_v53 = vadd.f32 %v621_v51, %v620_v43  ;;  %v633_v54 = vmul.f32 %v621_v51, %v621_v51 }
  0xd1   :  { %v625_v55 = vrot.slane %v624_v53, 4  ;;  %v634_v56 = vadd.f32 %v633_v54, %v632_v52 }
  0xd3   :  { %v626_v57 = vadd.f32 %v625_v55, %v624_v53  ;;  %v635_v58 = vrot.slane %v634_v56, 4 }
  0xd5   :  { %v627_v59 = vrot.slane %v626_v57, 2  ;;  %v636_v60 = vadd.f32 %v635_v58, %v634_v56 }
  0xd7   :  { %v628_v61 = vadd.f32 %v627_v59, %v626_v57  ;;  %v637_v62 = vrot.slane %v636_v60, 2 }
  0xd9   :  { %v629_v63 = vrot.slane %v628_v61, 1  ;;  %v638_v0 = vadd.f32 %v637_v62, %v636_v60 }
  0xdb   :  { %v630_v1 = vadd.f32 %v629_v63, %v628_v61  ;;  %v639_v2 = vrot.slane %v638_v0, 1 }
  0xdd   :  { %631 = vst [vmem:[%s1238_s5] sm:$0xff] %v630_v1  ;;  %v640_v3 = vadd.f32 %v639_v2, %v638_v0 }
  0xdf   :  { %641 = vst [vmem:[%s1239_s6] sm:$0xff] %v640_v3 }

// kernel: pconv_net_forward.27
= control target key start
LH: loop header
LB: loop body
LE: loop exit
PB: predicated region body
PF: predicated region fallthrough
CT: control target
= control target key end

     0   :  { %s106_s0 = inlined_call_operand.vmem [shape: f32[32,128], index: 0, kind: input, shape index: {}]   ;;  %s107_s1 = inlined_call_operand.vmem [shape: f32[1,128], index: 1, kind: input, shape index: {}]   ;;  %s108_s2 = inlined_call_operand.vmem [shape: f32[1,128], index: 2, kind: input, shape index: {}]   ;;  %s109_s3 = inlined_call_operand.vmem [shape: f32[32,128], index: 3, kind: output, shape index: {}]  }
   0x1   :  { %v14_v0 = vld [vmem:[%s106_s0] sm:$0xff]  ;;  %v15_v3 = vld [vmem:[%s106_s0 + $0x8] sm:$0xff]  ;;  %v16_v6 = vld [vmem:[%s106_s0 + $0x10] sm:$0xff] }
   0x2   :  { %v54_v1 = vld [vmem:[%s107_s1] ss:$0 sm:$0xff]  ;;  %v17_v7 = vld [vmem:[%s106_s0 + $0x18] sm:$0xff] }
   0x3   :  { %v55_v2 = vld [vmem:[%s108_s2] ss:$0 sm:$0xff]  ;;  %v22_v4 = vmul.f32 %v54_v1, %v14_v0  ;;  %v23_v5 = vmul.f32 %v54_v1, %v15_v3  ;;  %v24_v8 = vmul.f32 %v54_v1, %v16_v6  ;;  %v25_v9 = vmul.f32 %v54_v1, %v17_v7 }
   0x5   :  { %v30_v10 = vadd.f32 %v55_v2, %v22_v4  ;;  %v31_v11 = vadd.f32 %v55_v2, %v23_v5  ;;  %v32_v12 = vadd.f32 %v55_v2, %v24_v8  ;;  %v33_v13 = vadd.f32 %v55_v2, %v25_v9 }
   0x7   :  { %vm34_vm0 = vcmp.ge.f32.partialorder %v30_v10, 0.0  ;;  %v38_v14 = vmul.f32 0.01, %v30_v10  ;;  %vm35_vm1 = vcmp.ge.f32.partialorder %v31_v11, 0.0  ;;  %v39_v15 = vmul.f32 0.01, %v31_v11 }
   0x8   :  { %vm36_vm2 = vcmp.ge.f32.partialorder %v32_v12, 0.0  ;;  %v40_v16 = vmul.f32 0.01, %v32_v12  ;;  %vm37_vm3 = vcmp.ge.f32.partialorder %v33_v13, 0.0  ;;  %v41_v17 = vmul.f32 0.01, %v33_v13 }
   0x9   :  { %v42_v18 = vsel %vm34_vm0, %v30_v10, %v38_v14  ;;  %v43_v19 = vsel %vm35_vm1, %v31_v11, %v39_v15 }
   0xa   :  { %46 = vst [vmem:[%s109_s3] sm:$0xff] %v42_v18  ;;  %v44_v20 = vsel %vm36_vm2, %v32_v12, %v40_v16  ;;  %v45_v21 = vsel %vm37_vm3, %v33_v13, %v41_v17 }
   0xb   :  { %47 = vst [vmem:[%s109_s3 + $0x8] sm:$0xff] %v43_v19 }
   0xc   :  { %48 = vst [vmem:[%s109_s3 + $0x10] sm:$0xff] %v44_v20 }
   0xd   :  { %49 = vst [vmem:[%s109_s3 + $0x18] sm:$0xff] %v45_v21 }

// kernel: pconv_net_forward.26
= control target key start
LH: loop header
LB: loop body
LE: loop exit
PB: predicated region body
PF: predicated region fallthrough
CT: control target
= control target key end

     0   :  { %vm287_vm0 = vcmask 392192   ;;  %v645_v25 = vmov 0.0   ;;  %v646_v32 = vmov 0   ;;  %s846_s2 = inlined_call_operand.vmem [shape: bf16[432,128], index: 2, kind: input, shape index: {}]   ;;  %s847_s0 = inlined_call_operand.vmem [shape: bf16[32,432], index: 0, kind: input, shape index: {}]   ;;  %s848_s3 = inlined_call_operand.vmem [shape: f32[1,128], index: 3, kind: input, shape index: {}]   ;;  %s849_s1 = inlined_call_operand.vmem [shape: f32[32,1], index: 1, kind: input, shape index: {}]   ;;  %s850_s4 = inlined_call_operand.vmem [shape: f32[32,128], index: 4, kind: output, shape index: {0}]   ;;  %s851_s5 = inlined_call_operand.vmem [shape: f32[8,128], index: 5, kind: output, shape index: {1}]   ;;  %s852_s6 = inlined_call_operand.vmem [shape: f32[8,128], index: 6, kind: output, shape index: {2}]  }
   0x1   :  { %v611_v0 = vld [vmem:[%s846_s2 + $0x38] sm:$0xff]  ;;  %v610_v3 = vld [vmem:[%s846_s2 + $0x30] sm:$0xff]  ;;  %v609_v7 = vld [vmem:[%s846_s2 + $0x28] sm:$0xff]  ;;  %633 = vset.pattern.permute.xlu0 %v646_v32 }
   0x2   :  { %v619_v1 = vld [vmem:[%s846_s2 + $0x78] sm:$0xff]  ;;  %294 = vmatpush.bf16.msra.mxu0 %v611_v0  ;;  %v618_v4 = vld [vmem:[%s846_s2 + $0x70] sm:$0xff]  ;;  %v617_v8 = vld [vmem:[%s846_s2 + $0x68] sm:$0xff] }
   0x3   :  { %v627_v2 = vld [vmem:[%s846_s2 + $0xb8] sm:$0xff]  ;;  %313 = vmatpush.bf16.msra.mxu1 %v619_v1  ;;  %v626_v5 = vld [vmem:[%s846_s2 + $0xb0] sm:$0xff]  ;;  %v625_v9 = vld [vmem:[%s846_s2 + $0xa8] sm:$0xff] }
   0x4   :  { %332 = vmatpush.bf16.msra.mxu2 %v627_v2  ;;  %v630_v6 = vld [vmem:[%s846_s2 + $0xd0] sm:$0xff]  ;;  %v629_v10 = vld [vmem:[%s846_s2 + $0xc8] sm:$0xff]  ;;  %v608_v11 = vld [vmem:[%s846_s2 + $0x20] sm:$0xff] }
   0x5   :  { %356 = vmatpush.bf16.msra.mxu3 %v630_v6  ;;  %v616_v12 = vld [vmem:[%s846_s2 + $0x60] sm:$0xff]  ;;  %v597_v15 = vld [vmem:[%s847_s0 + $0xc] sm:$0xf]  ;;  %v462_v16 = vld [vmem:[%s847_s0 + $0x18] sm:$0xf0] }
   0x6   :  { %295 = vmatpush.bf16.msra.mxu0 %v610_v3  ;;  %v624_v13 = vld [vmem:[%s846_s2 + $0xa0] sm:$0xff]  ;;  %v607_v17 = vld [vmem:[%s846_s2 + $0x18] sm:$0xff]  ;;  %v465_v20 = vor.u32 %v597_v15, %v462_v16  ;;  %v371_v22 = vld [vmem:[%s849_s1 + $0x8] sm:$0xff] }
   0x7   :  { %314 = vmatpush.bf16.msra.mxu1 %v618_v4  ;;  %v628_v14 = vld [vmem:[%s846_s2 + $0xc0] sm:$0xff]  ;;  %v615_v18 = vld [vmem:[%s846_s2 + $0x58] sm:$0xff]  ;;  %v606_v23 = vld [vmem:[%s846_s2 + $0x10] sm:$0xff]  ;;  %vm375_vm2 = vcmp.gt.f32.partialorder %v371_v22, 0.0 }
   0x8   :  { %333 = vmatpush.bf16.msra.mxu2 %v626_v5  ;;  %v623_v19 = vld [vmem:[%s846_s2 + $0x98] sm:$0xff]  ;;  %v370_v21 = vld [vmem:[%s849_s1] sm:$0xff]  ;;  %v614_v24 = vld [vmem:[%s846_s2 + $0x50] sm:$0xff]  ;;  %v593_v27 = vsel %vm375_vm2, 1.0, %v645_v25 }
   0x9   :  { %357 = vmatpush.bf16.msra.mxu3 %v629_v10  ;;  %vm374_vm1 = vcmp.gt.f32.partialorder %v370_v21, 0.0  ;;  %v372_v28 = vld [vmem:[%s849_s1 + $0x10] sm:$0xff]  ;;  %v373_v29 = vld [vmem:[%s849_s1 + $0x18] sm:$0xff]  ;;  %v605_v33 = vld [vmem:[%s846_s2 + $0x8] sm:$0xff] }
   0xa   :  { %296 = vmatpush.bf16.msra.mxu0 %v609_v7  ;;  %v592_v26 = vsel %vm374_vm1, 1.0, %v645_v25  ;;  %v622_v30 = vld [vmem:[%s846_s2 + $0x90] sm:$0xff]  ;;  %vm376_vm3 = vcmp.gt.f32.partialorder %v372_v28, 0.0  ;;  %vm377_vm4 = vcmp.gt.f32.partialorder %v373_v29, 0.0  ;;  %v613_v34 = vld [vmem:[%s846_s2 + $0x48] sm:$0xff]  ;;  %v604_v38 = vld [vmem:[%s846_s2] sm:$0xff] }
   0xb   :  { %315 = vmatpush.bf16.msra.mxu1 %v617_v8  ;;  %v634_v31 = vpack.i.bf16 %v593_v27, %v592_v26  ;;  %v594_v35 = vsel %vm376_vm3, 1.0, %v645_v25  ;;  %v595_v36 = vsel %vm377_vm4, 1.0, %v645_v25  ;;  %v621_v37 = vld [vmem:[%s846_s2 + $0x88] sm:$0xff]  ;;  %v612_v39 = vld [vmem:[%s846_s2 + $0x40] sm:$0xff]  ;;  %v598_v42 = vld [vmem:[%s847_s0 + $0xc] sm:$0xf0] }
   0xc   :  { %334 = vmatpush.bf16.msra.mxu2 %v625_v9  ;;  %v452_v40 = vld [vmem:[%s847_s0] sm:$0xf]  ;;  %v639_v41 = vpack.i.bf16 %v595_v36, %v594_v35  ;;  %v596_v43 = vld [vmem:[%s847_s0 + $0x4] sm:$0xf]  ;;  %v454_v44 = vld [vmem:[%s847_s0 + $0x10] sm:$0xf0] }
   0xd   :  { %358 = vmatpush.bf16.msra.mxu3 %v628_v14  ;;  %635 = vperm.xlu0 %633, %v634_v31   ;;  %v620_v45 = vld [vmem:[%s846_s2 + $0x80] sm:$0xff]  ;;  %v460_v46 = vld [vmem:[%s847_s0 + $0x8] sm:$0xf]  ;;  %v599_v47 = vld [vmem:[%s847_s0 + $0x14] sm:$0xf0]  ;;  %v453_v50 = vor.u32 %v598_v42, %v452_v40  ;;  %v457_v51 = vor.u32 %v596_v43, %v454_v44 }
   0xe   :  { %297 = vmatpush.bf16.msra.mxu0 %v608_v11  ;;  %v601_v48 = vld [vmem:[%s847_s0 + $0x2c] sm:$0xf]  ;;  %v478_v49 = vld [vmem:[%s847_s0 + $0x38] sm:$0xf0]  ;;  %v461_v52 = vor.u32 %v599_v47, %v460_v46  ;;  %v468_v54 = vld [vmem:[%s847_s0 + $0x20] sm:$0xf] }
   0xf   :  { %316 = vmatpush.bf16.msra.mxu1 %v616_v12  ;;  %v481_v53 = vor.u32 %v601_v48, %v478_v49  ;;  %v602_v55 = vld [vmem:[%s847_s0 + $0x2c] sm:$0xf0]  ;;  %v600_v56 = vld [vmem:[%s847_s0 + $0x24] sm:$0xf]  ;;  %v470_v57 = vld [vmem:[%s847_s0 + $0x30] sm:$0xf0] }
  0x10   :  { %335 = vmatpush.bf16.msra.mxu2 %v624_v13  ;;  %590 = vmatmul.msk.bf16.vlgmr.msra.gmra.mxu3 %vm287_vm0, %v465_v20  ;;  %v476_v58 = vld [vmem:[%s847_s0 + $0x28] sm:$0xf]  ;;  %v603_v59 = vld [vmem:[%s847_s0 + $0x34] sm:$0xf0]  ;;  %v469_v60 = vor.u32 %v602_v55, %v468_v54  ;;  %v473_v61 = vor.u32 %v600_v56, %v470_v57  ;;  %v644_v63 = vld [vmem:[%s848_s3] ss:$0 sm:$0xff] }
  0x11   :  { %v477_v62 = vor.u32 %v603_v59, %v476_v58 }
  0x12   :  { %298 = vmatpush.bf16.msra.mxu0 %v607_v17 }
  0x13   :  { %317 = vmatpush.bf16.msra.mxu1 %v615_v18 }
  0x14   :  { %336 = vmatpush.bf16.msra.mxu2 %v623_v19 }
  0x15   :  { %640 = vperm.xlu0 %633, %v639_v41  }
  0x16   :  { %299 = vmatpush.bf16.msra.mxu0 %v606_v23 }
  0x17   :  { %318 = vmatpush.bf16.msra.mxu1 %v614_v24 }
  0x18   :  { %337 = vmatpush.bf16.msra.mxu2 %v622_v30 }
  0x1a   :  { %300 = vmatpush.bf16.msra.mxu0 %v605_v33 }
  0x1b   :  { %319 = vmatpush.bf16.msra.mxu1 %v613_v34 }
  0x1c   :  { %338 = vmatpush.bf16.msra.mxu2 %v621_v37 }
  0x1e   :  { %301 = vmatpush.bf16.msra.mxu0 %v604_v38 }
  0x1f   :  { %320 = vmatpush.bf16.msra.mxu1 %v612_v39 }
  0x20   :  { %339 = vmatpush.bf16.msra.mxu2 %v620_v45  ;;  %591 = vmatmul.msk.bf16.gmra.mxu3 %vm287_vm0, %v481_v53 }
  0x21   :  { %302 = vmatmul.bf16.vlgmr.msra.gmra.mxu0 %v453_v50 }
  0x22   :  { %321 = vmatmul.bf16.vlgmr.msra.gmra.mxu1 %v457_v51 }
  0x23   :  { %340 = vmatmul.bf16.vlgmr.msra.gmra.mxu2 %v461_v52 }
  0x31   :  { %307 = vmatmul.bf16.gmra.mxu0 %v469_v60 }
  0x32   :  { %326 = vmatmul.bf16.gmra.mxu1 %v473_v61 }
  0x33   :  { %345 = vmatmul.bf16.gmra.mxu2 %v477_v62 }
  0x7f   :  { %v636_v5 = vpop.permute.xlu0 %635 }
  0x80   :  { %v637_v8 = vunpack.i.l.bf16 %v636_v5  ;;  %v638_v17 = vunpack.i.h.bf16 %v636_v5 }
  0x87   :  { %v641_v25 = vpop.permute.xlu0 %640 }
  0x88   :  { %v642_v30 = vunpack.i.l.bf16 %v641_v25  ;;  %v643_v39 = vunpack.i.h.bf16 %v641_v25 }
  0x93   :  { %v360_v3 = vpop.f32.mrf.mxu3 }
  0x9b   :  { %v362_v14 = vpop.f32.mrf.mxu3 }
  0x9e   :  { %v303_v0 = vpop.f32.mrf.mxu0 }
  0x9f   :  { %v322_v1 = vpop.f32.mrf.mxu1  ;;  %v304_v2 = vadd.f32 %v644_v63, %v303_v0 }
  0xa1   :  { %v323_v4 = vadd.f32 %v322_v1, %v304_v2 }
  0xa3   :  { %v365_v26 = vpop.f32.mrf.mxu3 }
  0xa6   :  { %v341_v6 = vpop.f32.mrf.mxu2  ;;  %v305_v9 = vpop.f32.mrf.mxu0 }
  0xa7   :  { %v342_v7 = vadd.f32 %v341_v6, %v323_v4  ;;  %v324_v10 = vpop.f32.mrf.mxu1  ;;  %v306_v12 = vadd.f32 %v644_v63, %v305_v9 }
  0xa9   :  { %v361_v11 = vadd.f32 %v360_v3, %v342_v7  ;;  %v325_v15 = vadd.f32 %v324_v10, %v306_v12 }
  0xab   :  { %v406_v13 = vmul.f32 %v637_v8, %v361_v11  ;;  %v367_v40 = vpop.f32.mrf.mxu3 }
  0xad   :  { %410 = vst [vmem:[%s850_s4] sm:$0xff] %v406_v13  ;;  %v424_v41 = vmul.f32 %v406_v13, %v406_v13 }
  0xae   :  { %v343_v16 = vpop.f32.mrf.mxu2  ;;  %v308_v19 = vpop.f32.mrf.mxu0 }
  0xaf   :  { %v344_v18 = vadd.f32 %v343_v16, %v325_v15  ;;  %v309_v20 = vadd.f32 %v644_v63, %v308_v19  ;;  %v327_v22 = vpop.f32.mrf.mxu1 }
  0xb1   :  { %v363_v21 = vadd.f32 %v362_v14, %v344_v18  ;;  %v328_v24 = vadd.f32 %v327_v22, %v309_v20 }
  0xb3   :  { %v407_v23 = vmul.f32 %v638_v17, %v363_v21 }
  0xb5   :  { %411 = vst [vmem:[%s850_s4 + $0x8] sm:$0xff] %v407_v23  ;;  %v425_v37 = vmul.f32 %v407_v23, %v407_v23  ;;  %v414_v42 = vadd.f32 %v407_v23, %v406_v13 }
  0xb6   :  { %v346_v27 = vpop.f32.mrf.mxu2  ;;  %v310_v29 = vpop.f32.mrf.mxu0 }
  0xb7   :  { %v347_v28 = vadd.f32 %v346_v27, %v328_v24  ;;  %v311_v32 = vadd.f32 %v644_v63, %v310_v29  ;;  %v329_v34 = vpop.f32.mrf.mxu1  ;;  %v428_v45 = vadd.f32 %v425_v37, %v424_v41 }
  0xb9   :  { %v366_v31 = vadd.f32 %v365_v26, %v347_v28  ;;  %v330_v35 = vadd.f32 %v329_v34, %v311_v32 }
  0xbb   :  { %v408_v33 = vmul.f32 %v642_v30, %v366_v31 }
  0xbd   :  { %412 = vst [vmem:[%s850_s4 + $0x10] sm:$0xff] %v408_v33  ;;  %v426_v43 = vmul.f32 %v408_v33, %v408_v33  ;;  %v415_v46 = vadd.f32 %v414_v42, %v408_v33 }
  0xbe   :  { %v348_v36 = vpop.f32.mrf.mxu2 }
  0xbf   :  { %v349_v38 = vadd.f32 %v348_v36, %v330_v35  ;;  %v429_v48 = vadd.f32 %v428_v45, %v426_v43 }
  0xc1   :  { %v368_v44 = vadd.f32 %v367_v40, %v349_v38 }
  0xc3   :  { %v409_v47 = vmul.f32 %v643_v39, %v368_v44 }
  0xc5   :  { %413 = vst [vmem:[%s850_s4 + $0x18] sm:$0xff] %v409_v47  ;;  %v416_v49 = vadd.f32 %v415_v46, %v409_v47  ;;  %v427_v50 = vmul.f32 %v409_v47, %v409_v47 }
  0xc7   :  { %v417_v51 = vrot.slane %v416_v49, 4  ;;  %v430_v52 = vadd.f32 %v429_v48, %v427_v50 }
  0xc9   :  { %v418_v53 = vadd.f32 %v417_v51, %v416_v49  ;;  %v431_v54 = vrot.slane %v430_v52, 4 }
  0xcb   :  { %v419_v55 = vrot.slane %v418_v53, 2  ;;  %v432_v56 = vadd.f32 %v431_v54, %v430_v52 }
  0xcd   :  { %v420_v57 = vadd.f32 %v419_v55, %v418_v53  ;;  %v433_v58 = vrot.slane %v432_v56, 2 }
  0xcf   :  { %v421_v59 = vrot.slane %v420_v57, 1  ;;  %v434_v60 = vadd.f32 %v433_v58, %v432_v56 }
  0xd1   :  { %v422_v61 = vadd.f32 %v421_v59, %v420_v57  ;;  %v435_v62 = vrot.slane %v434_v60, 1 }
  0xd3   :  { %423 = vst [vmem:[%s851_s5] sm:$0xff] %v422_v61  ;;  %v436_v63 = vadd.f32 %v435_v62, %v434_v60 }
  0xd5   :  { %437 = vst [vmem:[%s852_s6] sm:$0xff] %v436_v63 }

// kernel: pconv_net_forward.29
= control target key start
LH: loop header
LB: loop body
LE: loop exit
PB: predicated region body
PF: predicated region fallthrough
CT: control target
= control target key end

     0   :  { %s298_s0 = inlined_call_operand.vmem [shape: f32[128,128], index: 0, kind: input, shape index: {}]   ;;  %s299_s1 = inlined_call_operand.vmem [shape: f32[1,128], index: 1, kind: input, shape index: {}]   ;;  %s300_s2 = inlined_call_operand.vmem [shape: f32[1,128], index: 2, kind: input, shape index: {}]   ;;  %s301_s3 = inlined_call_operand.vmem [shape: f32[128,128], index: 3, kind: output, shape index: {}]  }
   0x1   :  { %v14_v0 = vld [vmem:[%s298_s0] sm:$0xff]  ;;  %v15_v3 = vld [vmem:[%s298_s0 + $0x8] sm:$0xff]  ;;  %v16_v6 = vld [vmem:[%s298_s0 + $0x10] sm:$0xff] }
   0x2   :  { %v166_v1 = vld [vmem:[%s299_s1] ss:$0 sm:$0xff]  ;;  %v17_v7 = vld [vmem:[%s298_s0 + $0x18] sm:$0xff]  ;;  %v19_v12 = vld [vmem:[%s298_s0 + $0x28] sm:$0xff] }
   0x3   :  { %v171_v2 = vld [vmem:[%s300_s2] ss:$0 sm:$0xff]  ;;  %v34_v4 = vmul.f32 %v166_v1, %v14_v0  ;;  %v35_v5 = vmul.f32 %v166_v1, %v15_v3  ;;  %v36_v9 = vmul.f32 %v166_v1, %v16_v6  ;;  %v37_v10 = vmul.f32 %v166_v1, %v17_v7  ;;  %v20_v13 = vld [vmem:[%s298_s0 + $0x30] sm:$0xff]  ;;  %v21_v14 = vld [vmem:[%s298_s0 + $0x38] sm:$0xff] }
   0x4   :  { %v18_v8 = vld [vmem:[%s298_s0 + $0x20] sm:$0xff]  ;;  %v39_v17 = vmul.f32 %v166_v1, %v19_v12  ;;  %v40_v18 = vmul.f32 %v166_v1, %v20_v13  ;;  %v41_v22 = vmul.f32 %v166_v1, %v21_v14  ;;  %v23_v24 = vld [vmem:[%s298_s0 + $0x48] sm:$0xff]  ;;  %v24_v32 = vld [vmem:[%s298_s0 + $0x50] sm:$0xff] }
   0x5   :  { %v38_v11 = vmul.f32 %v166_v1, %v18_v8  ;;  %v54_v15 = vadd.f32 %v171_v2, %v34_v4  ;;  %v55_v16 = vadd.f32 %v171_v2, %v35_v5  ;;  %v56_v19 = vadd.f32 %v171_v2, %v36_v9  ;;  %v22_v23 = vld [vmem:[%s298_s0 + $0x40] sm:$0xff]  ;;  %v25_v41 = vld [vmem:[%s298_s0 + $0x58] sm:$0xff]  ;;  %v27_v52 = vld [vmem:[%s298_s0 + $0x68] sm:$0xff] }
   0x6   :  { %v57_v20 = vadd.f32 %v171_v2, %v37_v10  ;;  %v59_v35 = vadd.f32 %v171_v2, %v39_v17  ;;  %v60_v36 = vadd.f32 %v171_v2, %v40_v18  ;;  %v61_v38 = vadd.f32 %v171_v2, %v41_v22  ;;  %v26_v51 = vld [vmem:[%s298_s0 + $0x60] sm:$0xff]  ;;  %v28_v56 = vld [vmem:[%s298_s0 + $0x70] sm:$0xff]  ;;  %v29_v59 = vld [vmem:[%s298_s0 + $0x78] sm:$0xff] }
   0x7   :  { %v58_v21 = vadd.f32 %v171_v2, %v38_v11  ;;  %vm70_vm0 = vcmp.ge.f32.partialorder %v54_v15, 0.0  ;;  %v86_v25 = vmul.f32 0.01, %v54_v15  ;;  %vm71_vm1 = vcmp.ge.f32.partialorder %v55_v16, 0.0 }
   0x8   :  { %v87_v26 = vmul.f32 0.01, %v55_v16  ;;  %vm72_vm2 = vcmp.ge.f32.partialorder %v56_v19, 0.0  ;;  %v88_v27 = vmul.f32 0.01, %v56_v19  ;;  %vm73_vm3 = vcmp.ge.f32.partialorder %v57_v20, 0.0 }
   0x9   :  { %v89_v28 = vmul.f32 0.01, %v57_v20  ;;  %v102_v29 = vsel %vm70_vm0, %v54_v15, %v86_v25  ;;  %vm74_vm4 = vcmp.ge.f32.partialorder %v58_v21, 0.0  ;;  %v90_v31 = vmul.f32 0.01, %v58_v21 }
   0xa   :  { %v103_v30 = vsel %vm71_vm1, %v55_v16, %v87_v26  ;;  %118 = vst [vmem:[%s301_s3] sm:$0xff] %v102_v29  ;;  %v104_v33 = vsel %vm72_vm2, %v56_v19, %v88_v27  ;;  %v42_v39 = vmul.f32 %v166_v1, %v22_v23  ;;  %v43_v40 = vmul.f32 %v166_v1, %v23_v24 }
   0xb   :  { %v105_v34 = vsel %vm73_vm3, %v57_v20, %v89_v28  ;;  %119 = vst [vmem:[%s301_s3 + $0x8] sm:$0xff] %v103_v30  ;;  %v106_v37 = vsel %vm74_vm4, %v58_v21, %v90_v31  ;;  %vm75_vm5 = vcmp.ge.f32.partialorder %v59_v35, 0.0  ;;  %v91_v42 = vmul.f32 0.01, %v59_v35 }
   0xc   :  { %120 = vst [vmem:[%s301_s3 + $0x10] sm:$0xff] %v104_v33  ;;  %vm76_vm6 = vcmp.ge.f32.partialorder %v60_v36, 0.0  ;;  %v44_v43 = vmul.f32 %v166_v1, %v24_v32  ;;  %v92_v44 = vmul.f32 0.01, %v60_v36  ;;  %vm77_vm7 = vcmp.ge.f32.partialorder %v61_v38, 0.0 }
   0xd   :  { %121 = vst [vmem:[%s301_s3 + $0x18] sm:$0xff] %v105_v34  ;;  %v93_v45 = vmul.f32 0.01, %v61_v38  ;;  %v62_v46 = vadd.f32 %v171_v2, %v42_v39  ;;  %v107_v47 = vsel %vm75_vm5, %v59_v35, %v91_v42  ;;  %v63_v48 = vadd.f32 %v171_v2, %v43_v40 }
   0xe   :  { %122 = vst [vmem:[%s301_s3 + $0x20] sm:$0xff] %v106_v37  ;;  %v64_v49 = vadd.f32 %v171_v2, %v44_v43  ;;  %v45_v50 = vmul.f32 %v166_v1, %v25_v41  ;;  %v108_v53 = vsel %vm76_vm6, %v60_v36, %v92_v44  ;;  %v46_v62 = vmul.f32 %v166_v1, %v26_v51 }
   0xf   :  { %123 = vst [vmem:[%s301_s3 + $0x28] sm:$0xff] %v107_v47  ;;  %v109_v54 = vsel %vm77_vm7, %v61_v38, %v93_v45  ;;  %vm78_vm8 = vcmp.ge.f32.partialorder %v62_v46, 0.0  ;;  %v94_v55 = vmul.f32 0.01, %v62_v46  ;;  %vm79_vm9 = vcmp.ge.f32.partialorder %v63_v48, 0.0 }
  0x10   :  { %124 = vst [vmem:[%s301_s3 + $0x30] sm:$0xff] %v108_v53  ;;  %v95_v57 = vmul.f32 0.01, %v63_v48  ;;  %vm80_vm10 = vcmp.ge.f32.partialorder %v64_v49, 0.0  ;;  %v65_v58 = vadd.f32 %v171_v2, %v45_v50  ;;  %v96_v61 = vmul.f32 0.01, %v64_v49 }
  0x11   :  { %125 = vst [vmem:[%s301_s3 + $0x38] sm:$0xff] %v109_v54  ;;  %v110_v60 = vsel %vm78_vm8, %v62_v46, %v94_v55  ;;  %v47_v63 = vmul.f32 %v166_v1, %v27_v52  ;;  %v48_v4 = vmul.f32 %v166_v1, %v28_v56  ;;  %v66_v6 = vadd.f32 %v171_v2, %v46_v62 }
  0x12   :  { %126 = vst [vmem:[%s301_s3 + $0x40] sm:$0xff] %v110_v60  ;;  %v111_v0 = vsel %vm79_vm9, %v63_v48, %v95_v57  ;;  %vm81_vm11 = vcmp.ge.f32.partialorder %v65_v58, 0.0  ;;  %v97_v3 = vmul.f32 0.01, %v65_v58  ;;  %v112_v5 = vsel %vm80_vm10, %v64_v49, %v96_v61 }
  0x13   :  { %127 = vst [vmem:[%s301_s3 + $0x48] sm:$0xff] %v111_v0  ;;  %v67_v7 = vadd.f32 %v171_v2, %v47_v63  ;;  %v49_v8 = vmul.f32 %v166_v1, %v29_v59  ;;  %v68_v10 = vadd.f32 %v171_v2, %v48_v4  ;;  %vm82_vm12 = vcmp.ge.f32.partialorder %v66_v6, 0.0 }
  0x14   :  { %128 = vst [vmem:[%s301_s3 + $0x50] sm:$0xff] %v112_v5  ;;  %v113_v9 = vsel %vm81_vm11, %v65_v58, %v97_v3  ;;  %v98_v11 = vmul.f32 0.01, %v66_v6 }
  0x15   :  { %129 = vst [vmem:[%s301_s3 + $0x58] sm:$0xff] %v113_v9  ;;  %vm83_vm13 = vcmp.ge.f32.partialorder %v67_v7, 0.0  ;;  %v69_v12 = vadd.f32 %v171_v2, %v49_v8  ;;  %v99_v13 = vmul.f32 0.01, %v67_v7  ;;  %vm84_vm14 = vcmp.ge.f32.partialorder %v68_v10, 0.0 }
  0x16   :  { %v100_v14 = vmul.f32 0.01, %v68_v10  ;;  %v114_v1 = vsel %vm82_vm12, %v66_v6, %v98_v11 }
  0x17   :  { %vm85_vm15 = vcmp.ge.f32.partialorder %v69_v12, 0.0  ;;  %v101_v15 = vmul.f32 0.01, %v69_v12  ;;  %130 = vst [vmem:[%s301_s3 + $0x60] sm:$0xff] %v114_v1  ;;  %v115_v16 = vsel %vm83_vm13, %v67_v7, %v99_v13 }
  0x18   :  { %v116_v17 = vsel %vm84_vm14, %v68_v10, %v100_v14  ;;  %131 = vst [vmem:[%s301_s3 + $0x68] sm:$0xff] %v115_v16 }
  0x19   :  { %v117_v18 = vsel %vm85_vm15, %v69_v12, %v101_v15  ;;  %132 = vst [vmem:[%s301_s3 + $0x70] sm:$0xff] %v116_v17 }
  0x1a   :  { %133 = vst [vmem:[%s301_s3 + $0x78] sm:$0xff] %v117_v18 }

// kernel: pconv_net_forward.28
= control target key start
LH: loop header
LB: loop body
LE: loop exit
PB: predicated region body
PF: predicated region fallthrough
CT: control target
= control target key end

     0   :  { %vm246_vm0 = vcmask 1043456   ;;  %v825_v12 = vmov 0.0   ;;  %v826_v18 = vmov 0   ;;  %vm221_vm3 = vcmask 719872   ;;  %s1205_s2 = inlined_call_operand.vmem [shape: bf16[216,128], index: 2, kind: input, shape index: {}]   ;;  %s1206_s1 = inlined_call_operand.vmem [shape: f32[128,1], index: 1, kind: input, shape index: {}]   ;;  %s1207_s0 = inlined_call_operand.vmem [shape: bf16[128,216], index: 0, kind: input, shape index: {}]   ;;  %s1208_s3 = inlined_call_operand.vmem [shape: f32[1,128], index: 3, kind: input, shape index: {}]   ;;  %s1209_s4 = inlined_call_operand.vmem [shape: f32[128,128], index: 4, kind: output, shape index: {0}]   ;;  %s1210_s5 = inlined_call_operand.vmem [shape: f32[8,128], index: 5, kind: output, shape index: {1}]   ;;  %s1211_s6 = inlined_call_operand.vmem [shape: f32[8,128], index: 6, kind: output, shape index: {2}]  }
   0x1   :  { %v759_v0 = vld [vmem:[%s1205_s2 + $0x38] sm:$0xff]  ;;  %v63_v1 = vld [vmem:[%s1205_s2 + $0x68] sm:$0xf]  ;;  %v758_v3 = vld [vmem:[%s1205_s2 + $0x30] sm:$0xff]  ;;  %781 = vset.pattern.permute.xlu0 %v826_v18  ;;  %792 = vset.pattern.permute.xlu1 %v826_v18 }
   0x2   :  { %v193_v2 = vunpack.c.l.b16 %v63_v1  ;;  %250 = vmatpush.bf16.msra.mxu0 %v759_v0  ;;  %765 = vmatpush.bf16.msra.mxu2 %v759_v0  ;;  %v764_v6 = vld [vmem:[%s1205_s2 + $0x60] sm:$0xff]  ;;  %v757_v7 = vld [vmem:[%s1205_s2 + $0x28] sm:$0xff]  ;;  %v763_v8 = vld [vmem:[%s1205_s2 + $0x58] sm:$0xff] }
   0x3   :  { %v756_v9 = vld [vmem:[%s1205_s2 + $0x20] sm:$0xff]  ;;  %v349_v11 = vld [vmem:[%s1206_s1 + $0x8] sm:$0xff]  ;;  %v762_v16 = vld [vmem:[%s1205_s2 + $0x50] sm:$0xff]  ;;  %803 = vset.pattern.permute.xlu2 %v826_v18 }
   0x4   :  { %v207_v4 = vpack.c.b16 %v193_v2, %v193_v2  ;;  %v348_v10 = vld [vmem:[%s1206_s1] sm:$0xff]  ;;  %vm365_vm2 = vcmp.gt.f32.partialorder %v349_v11, 0.0  ;;  %v755_v17 = vld [vmem:[%s1205_s2 + $0x18] sm:$0xff]  ;;  %v761_v19 = vld [vmem:[%s1205_s2 + $0x48] sm:$0xff] }
   0x5   :  { %vm364_vm1 = vcmp.gt.f32.partialorder %v348_v10, 0.0  ;;  %v721_v14 = vsel %vm365_vm2, 1.0, %v825_v12  ;;  %v754_v20 = vld [vmem:[%s1205_s2 + $0x10] sm:$0xff]  ;;  %v760_v21 = vld [vmem:[%s1205_s2 + $0x40] sm:$0xff]  ;;  %v753_v22 = vld [vmem:[%s1205_s2 + $0x8] sm:$0xff] }
   0x6   :  { %v248_v5 = vsel %vm246_vm0, %v207_v4, 0  ;;  %251 = vmatpush.bf16.msra.mxu0 %v758_v3  ;;  %766 = vmatpush.bf16.msra.mxu2 %v758_v3  ;;  %v720_v13 = vsel %vm364_vm1, 1.0, %v825_v12  ;;  %v736_v23 = vld [vmem:[%s1207_s0 + $0x4] sm:$0xf]  ;;  %v600_v24 = vld [vmem:[%s1207_s0 + $0x8] sm:$0xf0] }
   0x7   :  { %301 = vmatpush.bf16.msra.mxu1 %v248_v5  ;;  %773 = vmatpush.bf16.msra.mxu3 %v248_v5  ;;  %v782_v15 = vpack.i.bf16 %v721_v14, %v720_v13  ;;  %v746_v25 = vld [vmem:[%s1207_s0 + $0x54] sm:$0xf]  ;;  %v640_v26 = vld [vmem:[%s1207_s0 + $0x58] sm:$0xf0]  ;;  %v603_v27 = vor.u32 %v736_v23, %v600_v24  ;;  %v752_v28 = vld [vmem:[%s1205_s2] sm:$0xff] }
   0x8   :  { %v598_v29 = vld [vmem:[%s1207_s0] sm:$0xf]  ;;  %v737_v30 = vld [vmem:[%s1207_s0 + $0x4] sm:$0xf0]  ;;  %v643_v32 = vor.u32 %v746_v25, %v640_v26  ;;  %v350_v33 = vld [vmem:[%s1206_s1 + $0x10] sm:$0xff] }
   0x9   :  { %783 = vperm.xlu0 %781, %v782_v15   ;;  %v630_v31 = vld [vmem:[%s1207_s0 + $0x40] sm:$0xf]  ;;  %v351_v34 = vld [vmem:[%s1206_s1 + $0x18] sm:$0xff]  ;;  %v745_v35 = vld [vmem:[%s1207_s0 + $0x44] sm:$0xf0]  ;;  %vm366_vm4 = vcmp.gt.f32.partialorder %v350_v33, 0.0  ;;  %v599_v38 = vor.u32 %v737_v30, %v598_v29 }
   0xa   :  { %252 = vmatpush.bf16.msra.mxu0 %v757_v7  ;;  %767 = vmatpush.bf16.msra.mxu2 %v757_v7  ;;  %vm367_vm5 = vcmp.gt.f32.partialorder %v351_v34, 0.0  ;;  %v722_v36 = vsel %vm366_vm4, 1.0, %v825_v12  ;;  %v631_v40 = vor.u32 %v745_v35, %v630_v31  ;;  %v738_v41 = vld [vmem:[%s1207_s0 + $0x14] sm:$0xf]  ;;  %v608_v42 = vld [vmem:[%s1207_s0 + $0x18] sm:$0xf0] }
   0xb   :  { %302 = vmatpush.bf16.msra.mxu1 %v764_v6  ;;  %774 = vmatpush.bf16.msra.mxu3 %v764_v6  ;;  %v723_v37 = vsel %vm367_vm5, 1.0, %v825_v12  ;;  %v748_v43 = vld [vmem:[%s1207_s0 + $0x64] sm:$0xf]  ;;  %v648_v44 = vld [vmem:[%s1207_s0 + $0x68] sm:$0xf0]  ;;  %v611_v45 = vor.u32 %v738_v41, %v608_v42  ;;  %v354_v58 = vld [vmem:[%s1206_s1 + $0x30] sm:$0xff] }
   0xc   :  { %v787_v39 = vpack.i.bf16 %v723_v37, %v722_v36  ;;  %v606_v46 = vld [vmem:[%s1207_s0 + $0x10] sm:$0xf]  ;;  %v739_v47 = vld [vmem:[%s1207_s0 + $0x14] sm:$0xf0]  ;;  %v651_v48 = vor.u32 %v748_v43, %v648_v44  ;;  %v352_v49 = vld [vmem:[%s1206_s1 + $0x20] sm:$0xff]  ;;  %vm370_vm8 = vcmp.gt.f32.partialorder %v354_v58, 0.0 }
   0xd   :  { %v353_v50 = vld [vmem:[%s1206_s1 + $0x28] sm:$0xff]  ;;  %v638_v51 = vld [vmem:[%s1207_s0 + $0x50] sm:$0xf]  ;;  %v747_v52 = vld [vmem:[%s1207_s0 + $0x54] sm:$0xf0]  ;;  %vm368_vm6 = vcmp.gt.f32.partialorder %v352_v49, 0.0  ;;  %v607_v55 = vor.u32 %v739_v47, %v606_v46 }
   0xe   :  { %253 = vmatpush.bf16.msra.mxu0 %v756_v9  ;;  %768 = vmatpush.bf16.msra.mxu2 %v756_v9  ;;  %vm369_vm7 = vcmp.gt.f32.partialorder %v353_v50, 0.0  ;;  %v724_v53 = vsel %vm368_vm6, 1.0, %v825_v12  ;;  %v639_v57 = vor.u32 %v747_v52, %v638_v51  ;;  %v355_v59 = vld [vmem:[%s1206_s1 + $0x38] sm:$0xff]  ;;  %v360_v60 = vld [vmem:[%s1206_s1 + $0x60] sm:$0xff]  ;;  %v361_v61 = vld [vmem:[%s1206_s1 + $0x68] sm:$0xff]  ;;  %v726_v62 = vsel %vm370_vm8, 1.0, %v825_v12 }
   0xf   :  { %303 = vmatpush.bf16.msra.mxu1 %v763_v8  ;;  %775 = vmatpush.bf16.msra.mxu3 %v763_v8  ;;  %v725_v54 = vsel %vm369_vm7, 1.0, %v825_v12  ;;  %vm371_vm9 = vcmp.gt.f32.partialorder %v355_v59, 0.0  ;;  %vm376_vm10 = vcmp.gt.f32.partialorder %v360_v60, 0.0  ;;  %vm377_vm11 = vcmp.gt.f32.partialorder %v361_v61, 0.0  ;;  %v740_v3 = vld [vmem:[%s1207_s0 + $0x24] sm:$0xf] }
  0x10   :  { %v793_v56 = vpack.i.bf16 %v725_v54, %v724_v53  ;;  %v727_v63 = vsel %vm371_vm9, 1.0, %v825_v12  ;;  %v732_v0 = vsel %vm376_vm10, 1.0, %v825_v12  ;;  %v733_v2 = vsel %vm377_vm11, 1.0, %v825_v12  ;;  %v616_v4 = vld [vmem:[%s1207_s0 + $0x28] sm:$0xf0]  ;;  %v356_v18 = vld [vmem:[%s1206_s1 + $0x40] sm:$0xff] }
  0x11   :  { %788 = vperm.xlu0 %781, %v787_v39   ;;  %v798_v1 = vpack.i.bf16 %v727_v63, %v726_v62  ;;  %v814_v5 = vpack.i.bf16 %v733_v2, %v732_v0  ;;  %v750_v6 = vld [vmem:[%s1207_s0 + $0x74] sm:$0xf]  ;;  %v656_v7 = vld [vmem:[%s1207_s0 + $0x78] sm:$0xf0]  ;;  %v619_v8 = vor.u32 %v740_v3, %v616_v4  ;;  %v614_v9 = vld [vmem:[%s1207_s0 + $0x20] sm:$0xf] }
  0x12   :  { %254 = vmatpush.bf16.msra.mxu0 %v755_v17  ;;  %769 = vmatpush.bf16.msra.mxu2 %v755_v17  ;;  %v741_v10 = vld [vmem:[%s1207_s0 + $0x24] sm:$0xf0]  ;;  %v659_v11 = vor.u32 %v750_v6, %v656_v7  ;;  %v646_v13 = vld [vmem:[%s1207_s0 + $0x60] sm:$0xf]  ;;  %v363_v17 = vld [vmem:[%s1206_s1 + $0x78] sm:$0xff]  ;;  %vm372_vm14 = vcmp.gt.f32.partialorder %v356_v18, 0.0 }
  0x13   :  { %304 = vmatpush.bf16.msra.mxu1 %v762_v16  ;;  %776 = vmatpush.bf16.msra.mxu3 %v762_v16  ;;  %v749_v14 = vld [vmem:[%s1207_s0 + $0x64] sm:$0xf0]  ;;  %v615_v15 = vor.u32 %v741_v10, %v614_v9  ;;  %v362_v16 = vld [vmem:[%s1206_s1 + $0x70] sm:$0xff]  ;;  %vm379_vm13 = vcmp.gt.f32.partialorder %v363_v17, 0.0  ;;  %v728_v25 = vsel %vm372_vm14, 1.0, %v825_v12 }
  0x14   :  { %794 = vperm.xlu1 %792, %v793_v56   ;;  %vm378_vm12 = vcmp.gt.f32.partialorder %v362_v16, 0.0  ;;  %v735_v24 = vsel %vm379_vm13, 1.0, %v825_v12  ;;  %v742_v31 = vld [vmem:[%s1207_s0 + $0x34] sm:$0xf]  ;;  %v622_v35 = vld [vmem:[%s1207_s0 + $0x30] sm:$0xf] }
  0x15   :  { %v734_v23 = vsel %vm378_vm12, 1.0, %v825_v12  ;;  %v743_v36 = vld [vmem:[%s1207_s0 + $0x34] sm:$0xf0]  ;;  %v632_v41 = vld [vmem:[%s1207_s0 + $0x48] sm:$0xf0] }
  0x16   :  { %255 = vmatpush.bf16.msra.mxu0 %v754_v20  ;;  %770 = vmatpush.bf16.msra.mxu2 %v754_v20  ;;  %v357_v20 = vld [vmem:[%s1206_s1 + $0x48] sm:$0xff]  ;;  %v819_v26 = vpack.i.bf16 %v735_v24, %v734_v23  ;;  %v751_v37 = vld [vmem:[%s1207_s0 + $0x74] sm:$0xf0]  ;;  %v1075_v44 = vld [vmem:[%s1208_s3] ss:$0 sm:$0xff] }
  0x17   :  { %305 = vmatpush.bf16.msra.mxu1 %v761_v19  ;;  %777 = vmatpush.bf16.msra.mxu3 %v761_v19  ;;  %v647_v19 = vor.u32 %v749_v14, %v646_v13  ;;  %vm373_vm15 = vcmp.gt.f32.partialorder %v357_v20, 0.0 }
  0x19   :  { %815 = vperm.xlu0 %781, %v814_v5  }
  0x1a   :  { %256 = vmatpush.bf16.msra.mxu0 %v753_v22  ;;  %771 = vmatpush.bf16.msra.mxu2 %v753_v22  ;;  %v359_v22 = vld [vmem:[%s1206_s1 + $0x58] sm:$0xff] }
  0x1b   :  { %306 = vmatpush.bf16.msra.mxu1 %v760_v21  ;;  %778 = vmatpush.bf16.msra.mxu3 %v760_v21  ;;  %v358_v21 = vld [vmem:[%s1206_s1 + $0x50] sm:$0xff]  ;;  %vm375_vm1 = vcmp.gt.f32.partialorder %v359_v22, 0.0 }
  0x1c   :  { %799 = vperm.xlu1 %792, %v798_v1   ;;  %vm374_vm0 = vcmp.gt.f32.partialorder %v358_v21, 0.0  ;;  %v731_v30 = vsel %vm375_vm1, 1.0, %v825_v12 }
  0x1d   :  { %v730_v29 = vsel %vm374_vm0, 1.0, %v825_v12 }
  0x1e   :  { %712 = vmatmul.msk.bf16.vlgmr.msra.gmra.mxu1 %vm221_vm3, %v603_v27  ;;  %257 = vmatpush.bf16.msra.mxu0 %v752_v28  ;;  %v729_v27 = vsel %vm373_vm15, 1.0, %v825_v12  ;;  %v809_v33 = vpack.i.bf16 %v731_v30, %v730_v29  ;;  %v654_v12 = vld [vmem:[%s1207_s0 + $0x70] sm:$0xf] }
  0x1f   :  { %717 = vmatmul.msk.bf16.vlgmr.msra.gmra.mxu3 %vm221_vm3, %v643_v32  ;;  %772 = vmatpush.bf16.msra.mxu2 %v752_v28  ;;  %v804_v28 = vpack.i.bf16 %v729_v27, %v728_v25  ;;  %v624_v32 = vld [vmem:[%s1207_s0 + $0x38] sm:$0xf0]  ;;  %v655_v39 = vor.u32 %v751_v37, %v654_v12 }
  0x20   :  { %v627_v34 = vor.u32 %v742_v31, %v624_v32 }
  0x21   :  { %258 = vmatmul.bf16.vlgmr.msra.gmra.mxu0 %v599_v38  ;;  %805 = vperm.xlu2 %803, %v804_v28   ;;  %v623_v38 = vor.u32 %v743_v36, %v622_v35 }
  0x22   :  { %278 = vmatmul.bf16.vlgmr.msra.gmra.mxu2 %v631_v40  ;;  %v744_v40 = vld [vmem:[%s1207_s0 + $0x44] sm:$0xf] }
  0x23   :  { %v635_v42 = vor.u32 %v744_v40, %v632_v41 }
  0x24   :  { %820 = vperm.xlu1 %792, %v819_v26  }
  0x29   :  { %810 = vperm.xlu2 %803, %v809_v33  }
  0x2e   :  { %713 = vmatmul.msk.bf16.gmra.mxu1 %vm221_vm3, %v611_v45 }
  0x2f   :  { %718 = vmatmul.msk.bf16.gmra.mxu3 %vm221_vm3, %v651_v48 }
  0x31   :  { %263 = vmatmul.bf16.gmra.mxu0 %v607_v55 }
  0x32   :  { %283 = vmatmul.bf16.gmra.mxu2 %v639_v57 }
  0x3e   :  { %714 = vmatmul.msk.bf16.gmra.mxu1 %vm221_vm3, %v619_v8 }
  0x3f   :  { %719 = vmatmul.msk.bf16.gmra.mxu3 %vm221_vm3, %v659_v11 }
  0x41   :  { %268 = vmatmul.bf16.gmra.mxu0 %v615_v15 }
  0x42   :  { %288 = vmatmul.bf16.gmra.mxu2 %v647_v19 }
  0x4e   :  { %715 = vmatmul.msk.bf16.gmra.mxu1 %vm221_vm3, %v627_v34 }
  0x51   :  { %273 = vmatmul.bf16.gmra.mxu0 %v623_v38 }
  0x52   :  { %293 = vmatmul.bf16.gmra.mxu2 %v655_v39 }
  0x5e   :  { %716 = vmatmul.msk.bf16.gmra.mxu1 %vm221_vm3, %v635_v42 }
  0x7b   :  { %v784_v45 = vpop.permute.xlu0 %783  ;;  %v1087_v57 = vpop.permute.xlu2 %805 }
  0x7c   :  { %v785_v48 = vunpack.i.l.bf16 %v784_v45  ;;  %v786_v54 = vunpack.i.h.bf16 %v784_v45 }
  0x83   :  { %v789_v61 = vpop.permute.xlu0 %788  ;;  %v811_v5 = vpop.permute.xlu2 %810 }
  0x84   :  { %v790_v1 = vunpack.i.l.bf16 %v789_v61  ;;  %v812_v10 = vunpack.i.l.bf16 %v811_v5  ;;  %v791_v11 = vunpack.i.h.bf16 %v789_v61  ;;  %v813_v23 = vunpack.i.h.bf16 %v811_v5 }
  0x86   :  { %v795_v19 = vpop.permute.xlu1 %794 }
  0x87   :  { %v796_v25 = vunpack.i.l.bf16 %v795_v19  ;;  %v797_v12 = vunpack.i.h.bf16 %v795_v19 }
  0x8b   :  { %v816_v32 = vpop.permute.xlu0 %815 }
  0x8c   :  { %v817_v36 = vunpack.i.l.bf16 %v816_v32 }
  0x8e   :  { %v800_v45 = vpop.permute.xlu1 %799 }
  0x9b   :  { %v308_v43 = vpop.f32.mrf.mxu1 }
  0x9e   :  { %v259_v46 = vpop.f32.mrf.mxu0 }
  0x9f   :  { %v260_v47 = vadd.f32 %v1075_v44, %v259_v46 }
  0xa1   :  { %v309_v49 = vadd.f32 %v308_v43, %v260_v47 }
  0xa2   :  { %v333_v60 = vpop.f32.mrf.mxu3 }
  0xa3   :  { %v310_v50 = vpop.f32.mrf.mxu1  ;;  %v1078_v51 = vmul.f32 %v785_v48, %v309_v49  ;;  %v801_v49 = vunpack.i.l.bf16 %v800_v45 }
  0xa5   :  { %508 = vst [vmem:[%s1209_s4] sm:$0xff] %v1078_v51  ;;  %v1084_v52 = vpop.f32.mrf.mxu2 }
  0xa6   :  { %v261_v53 = vpop.f32.mrf.mxu0 }
  0xa7   :  { %v262_v55 = vadd.f32 %v1075_v44, %v261_v53  ;;  %v818_v53 = vunpack.i.h.bf16 %v816_v32 }
  0xa9   :  { %v311_v56 = vadd.f32 %v310_v50, %v262_v55 }
  0xaa   :  { %v335_v7 = vpop.f32.mrf.mxu3 }
  0xab   :  { %v313_v58 = vpop.f32.mrf.mxu1  ;;  %v1089_v59 = vmul.f32 %v786_v54, %v311_v56 }
  0xad   :  { %509 = vst [vmem:[%s1209_s4 + $0x8] sm:$0xff] %v1089_v59  ;;  %v1095_v62 = vpop.f32.mrf.mxu2  ;;  %v547_v56 = vmul.f32 %v1089_v59, %v1089_v59 }
  0xae   :  { %v264_v63 = vpop.f32.mrf.mxu0 }
  0xaf   :  { %v265_v0 = vadd.f32 %v1075_v44, %v264_v63 }
  0xb1   :  { %v314_v2 = vadd.f32 %v313_v58, %v265_v0  ;;  %v546_v0 = vmul.f32 %v1078_v51, %v1078_v51 }
  0xb2   :  { %v338_v26 = vpop.f32.mrf.mxu3 }
  0xb3   :  { %v315_v3 = vpop.f32.mrf.mxu1  ;;  %v1098_v4 = vmul.f32 %v790_v1, %v314_v2  ;;  %v524_v2 = vadd.f32 %v1089_v59, %v1078_v51  ;;  %v280_v51 = vadd.f32 %v1075_v44, %v1084_v52 }
  0xb5   :  { %510 = vst [vmem:[%s1209_s4 + $0x10] sm:$0xff] %v1098_v4  ;;  %v284_v6 = vpop.f32.mrf.mxu2  ;;  %v548_v1 = vmul.f32 %v1098_v4, %v1098_v4 }
  0xb6   :  { %v285_v8 = vadd.f32 %v1075_v44, %v284_v6  ;;  %v266_v9 = vpop.f32.mrf.mxu0  ;;  %v562_v6 = vadd.f32 %v547_v56, %v546_v0 }
  0xb7   :  { %v267_v13 = vadd.f32 %v1075_v44, %v266_v9 }
  0xb8   :  { %v334_v14 = vadd.f32 %v333_v60, %v285_v8  ;;  %v563_v59 = vadd.f32 %v562_v6, %v548_v1 }
  0xb9   :  { %v316_v15 = vadd.f32 %v315_v3, %v267_v13  ;;  %v821_v3 = vpop.permute.xlu1 %820 }
  0xba   :  { %v1106_v17 = vmul.f32 %v812_v10, %v334_v14  ;;  %v340_v40 = vpop.f32.mrf.mxu3  ;;  %v525_v10 = vadd.f32 %v524_v2, %v1098_v4  ;;  %v822_v14 = vunpack.i.l.bf16 %v821_v3 }
  0xbb   :  { %v318_v16 = vpop.f32.mrf.mxu1  ;;  %v1108_v18 = vmul.f32 %v791_v11, %v316_v15  ;;  %v807_v11 = vunpack.i.l.bf16 %v1087_v57 }
  0xbc   :  { %518 = vst [vmem:[%s1209_s4 + $0x50] sm:$0xff] %v1106_v17 }
  0xbd   :  { %511 = vst [vmem:[%s1209_s4 + $0x18] sm:$0xff] %v1108_v18  ;;  %v286_v20 = vpop.f32.mrf.mxu2 }
  0xbe   :  { %v287_v21 = vadd.f32 %v1075_v44, %v286_v20  ;;  %v269_v22 = vpop.f32.mrf.mxu0  ;;  %v802_v20 = vunpack.i.h.bf16 %v800_v45  ;;  %v808_v45 = vunpack.i.h.bf16 %v1087_v57 }
  0xbf   :  { %v270_v24 = vadd.f32 %v1075_v44, %v269_v22 }
  0xc0   :  { %v336_v27 = vadd.f32 %v335_v7, %v287_v21  ;;  %v549_v7 = vmul.f32 %v1108_v18, %v1108_v18 }
  0xc1   :  { %v319_v28 = vadd.f32 %v318_v16, %v270_v24  ;;  %v526_v16 = vadd.f32 %v525_v10, %v1108_v18 }
  0xc2   :  { %v1120_v30 = vmul.f32 %v813_v23, %v336_v27  ;;  %v343_v63 = vpop.f32.mrf.mxu3  ;;  %v564_v22 = vadd.f32 %v563_v59, %v549_v7 }
  0xc3   :  { %v320_v29 = vpop.f32.mrf.mxu1  ;;  %v496_v31 = vmul.f32 %v796_v25, %v319_v28 }
  0xc4   :  { %519 = vst [vmem:[%s1209_s4 + $0x58] sm:$0xff] %v1120_v30  ;;  %v557_v56 = vmul.f32 %v1120_v30, %v1120_v30 }
  0xc5   :  { %512 = vst [vmem:[%s1209_s4 + $0x20] sm:$0xff] %v496_v31  ;;  %v289_v33 = vpop.f32.mrf.mxu2  ;;  %v550_v19 = vmul.f32 %v496_v31, %v496_v31  ;;  %v527_v25 = vadd.f32 %v526_v16, %v496_v31 }
  0xc6   :  { %v290_v34 = vadd.f32 %v1075_v44, %v289_v33  ;;  %v271_v35 = vpop.f32.mrf.mxu0 }
  0xc7   :  { %v272_v37 = vadd.f32 %v1075_v44, %v271_v35  ;;  %v565_v52 = vadd.f32 %v564_v22, %v550_v19 }
  0xc8   :  { %v339_v38 = vadd.f32 %v338_v26, %v290_v34 }
  0xc9   :  { %v321_v39 = vadd.f32 %v320_v29, %v272_v37 }
  0xca   :  { %v1131_v42 = vmul.f32 %v817_v36, %v339_v38  ;;  %v345_v33 = vpop.f32.mrf.mxu3  ;;  %v282_v38 = vadd.f32 %v1075_v44, %v1095_v62 }
  0xcb   :  { %v323_v41 = vpop.f32.mrf.mxu1  ;;  %v497_v43 = vmul.f32 %v797_v12, %v321_v39  ;;  %v823_v12 = vunpack.i.h.bf16 %v821_v3 }
  0xcc   :  { %520 = vst [vmem:[%s1209_s4 + $0x60] sm:$0xff] %v1131_v42 }
  0xcd   :  { %513 = vst [vmem:[%s1209_s4 + $0x28] sm:$0xff] %v497_v43  ;;  %v291_v46 = vpop.f32.mrf.mxu2  ;;  %v551_v4 = vmul.f32 %v497_v43, %v497_v43  ;;  %v528_v28 = vadd.f32 %v527_v25, %v497_v43 }
  0xce   :  { %v292_v47 = vadd.f32 %v1075_v44, %v291_v46  ;;  %v274_v48 = vpop.f32.mrf.mxu0 }
  0xcf   :  { %v275_v50 = vadd.f32 %v1075_v44, %v274_v48  ;;  %v566_v31 = vadd.f32 %v565_v52, %v551_v4 }
  0xd0   :  { %v341_v54 = vadd.f32 %v340_v40, %v292_v47 }
  0xd1   :  { %v324_v55 = vadd.f32 %v323_v41, %v275_v50 }
  0xd2   :  { %v1144_v58 = vmul.f32 %v818_v53, %v341_v54  ;;  %v556_v54 = vmul.f32 %v1106_v17, %v1106_v17 }
  0xd3   :  { %v325_v60 = vpop.f32.mrf.mxu1  ;;  %v498_v61 = vmul.f32 %v801_v49, %v324_v55 }
  0xd4   :  { %521 = vst [vmem:[%s1209_s4 + $0x68] sm:$0xff] %v1144_v58  ;;  %v559_v2 = vmul.f32 %v1144_v58, %v1144_v58 }
  0xd5   :  { %514 = vst [vmem:[%s1209_s4 + $0x30] sm:$0xff] %v498_v61  ;;  %v294_v5 = vpop.f32.mrf.mxu2  ;;  %v552_v29 = vmul.f32 %v498_v61, %v498_v61  ;;  %v529_v35 = vadd.f32 %v528_v28, %v498_v61 }
  0xd6   :  { %v295_v8 = vadd.f32 %v1075_v44, %v294_v5  ;;  %v276_v9 = vpop.f32.mrf.mxu0 }
  0xd7   :  { %v277_v13 = vadd.f32 %v1075_v44, %v276_v9  ;;  %v567_v39 = vadd.f32 %v566_v31, %v552_v29 }
  0xd8   :  { %v344_v15 = vadd.f32 %v343_v63, %v295_v8  ;;  %v558_v63 = vmul.f32 %v1131_v42, %v1131_v42 }
  0xd9   :  { %v326_v21 = vadd.f32 %v325_v60, %v277_v13 }
  0xda   :  { %v506_v23 = vmul.f32 %v822_v14, %v344_v15 }
  0xdb   :  { %v328_v24 = vpop.f32.mrf.mxu1  ;;  %v499_v26 = vmul.f32 %v802_v20, %v326_v21 }
  0xdc   :  { %v329_v27 = vadd.f32 %v328_v24, %v280_v51  ;;  %522 = vst [vmem:[%s1209_s4 + $0x70] sm:$0xff] %v506_v23 }
  0xdd   :  { %515 = vst [vmem:[%s1209_s4 + $0x38] sm:$0xff] %v499_v26  ;;  %v296_v32 = vpop.f32.mrf.mxu2  ;;  %v553_v36 = vmul.f32 %v499_v26, %v499_v26  ;;  %v530_v40 = vadd.f32 %v529_v35, %v499_v26 }
  0xde   :  { %v500_v18 = vmul.f32 %v807_v11, %v329_v27  ;;  %v297_v34 = vadd.f32 %v1075_v44, %v296_v32 }
  0xdf   :  { %v568_v47 = vadd.f32 %v567_v39, %v553_v36 }
  0xe0   :  { %516 = vst [vmem:[%s1209_s4 + $0x40] sm:$0xff] %v500_v18  ;;  %v346_v37 = vadd.f32 %v345_v33, %v297_v34  ;;  %v554_v46 = vmul.f32 %v500_v18, %v500_v18  ;;  %v531_v49 = vadd.f32 %v530_v40, %v500_v18 }
  0xe2   :  { %v507_v41 = vmul.f32 %v823_v12, %v346_v37  ;;  %v569_v53 = vadd.f32 %v568_v47, %v554_v46 }
  0xe3   :  { %v330_v43 = vpop.f32.mrf.mxu1 }
  0xe4   :  { %v331_v48 = vadd.f32 %v330_v43, %v282_v38  ;;  %523 = vst [vmem:[%s1209_s4 + $0x78] sm:$0xff] %v507_v41  ;;  %v561_v8 = vmul.f32 %v507_v41, %v507_v41 }
  0xe6   :  { %v501_v50 = vmul.f32 %v808_v45, %v331_v48 }
  0xe8   :  { %517 = vst [vmem:[%s1209_s4 + $0x48] sm:$0xff] %v501_v50  ;;  %v532_v44 = vadd.f32 %v531_v49, %v501_v50  ;;  %v555_v62 = vmul.f32 %v501_v50, %v501_v50 }
  0xea   :  { %v533_v57 = vadd.f32 %v532_v44, %v1106_v17  ;;  %v570_v55 = vadd.f32 %v569_v53, %v555_v62  ;;  %v560_v17 = vmul.f32 %v506_v23, %v506_v23 }
  0xec   :  { %v534_v60 = vadd.f32 %v533_v57, %v1120_v30  ;;  %v571_v61 = vadd.f32 %v570_v55, %v556_v54 }
  0xee   :  { %v535_v0 = vadd.f32 %v534_v60, %v1131_v42  ;;  %v572_v1 = vadd.f32 %v571_v61, %v557_v56 }
  0xf0   :  { %v536_v3 = vadd.f32 %v535_v0, %v1144_v58  ;;  %v573_v5 = vadd.f32 %v572_v1, %v558_v63 }
  0xf2   :  { %v537_v6 = vadd.f32 %v536_v3, %v506_v23  ;;  %v574_v7 = vadd.f32 %v573_v5, %v559_v2 }
  0xf4   :  { %v538_v9 = vadd.f32 %v537_v6, %v507_v41  ;;  %v575_v10 = vadd.f32 %v574_v7, %v560_v17 }
  0xf6   :  { %v539_v30 = vrot.slane %v538_v9, 4  ;;  %v576_v11 = vadd.f32 %v575_v10, %v561_v8 }
  0xf8   :  { %v540_v13 = vadd.f32 %v539_v30, %v538_v9  ;;  %v577_v51 = vrot.slane %v576_v11, 4 }
  0xfa   :  { %v541_v59 = vrot.slane %v540_v13, 2  ;;  %v578_v14 = vadd.f32 %v577_v51, %v576_v11 }
  0xfc   :  { %v542_v42 = vadd.f32 %v541_v59, %v540_v13  ;;  %v579_v15 = vrot.slane %v578_v14, 2 }
  0xfe   :  { %v543_v16 = vrot.slane %v542_v42, 1  ;;  %v580_v19 = vadd.f32 %v579_v15, %v578_v14 }
 0x100   :  { %v544_v20 = vadd.f32 %v543_v16, %v542_v42  ;;  %v581_v21 = vrot.slane %v580_v19, 1 }
 0x102   :  { %545 = vst [vmem:[%s1210_s5] sm:$0xff] %v544_v20  ;;  %v582_v58 = vadd.f32 %v581_v21, %v580_v19 }
 0x104   :  { %583 = vst [vmem:[%s1211_s6] sm:$0xff] %v582_v58 }

// kernel: pconv_net_forward.31
= control target key start
LH: loop header
LB: loop body
LE: loop exit
PB: predicated region body
PF: predicated region fallthrough
CT: control target
= control target key end

     0   :  { %s415_s12 = smov 0   ;;  %s574_s0 = inlined_call_operand.vmem [shape: f32[512,128], index: 0, kind: input, shape index: {}]   ;;  %s575_s1 = inlined_call_operand.vmem [shape: f32[1,128], index: 1, kind: input, shape index: {}]   ;;  %s576_s2 = inlined_call_operand.vmem [shape: f32[1,128], index: 2, kind: input, shape index: {}]   ;;  %s577_s3 = inlined_call_operand.vmem [shape: f32[512,128], index: 3, kind: output, shape index: {}]  }
   0x1 LB: > { %s366_s13 = sadd.s32 4294967295, %s393_s12   ;;  %p370_p0 = scmp.ge.s32.totalorder %s393_s12, 1  ;;  %s393_s12 = sphi %s415_s12, %s13_s12  }
   0x2   : > { %p138_p1 = scmp.lt.s32.totalorder %s393_s12, 3 }
   0x4   : > { %p139_p2 = pnand %p370_p0, %p138_p1 }
   0x5   : > { %s371_s14 = sshll.u32 (!%p139_p2), %s366_s13, 5 }
   0x6   : > { %142 = sbr.rel (%p139_p2) target bundleno = 51 (0x33), region = 32  ;;  %p163_p3 = scmp.lt.s32.totalorder (!%p139_p2), %s371_s14, 63 }
   0xb   : > { %s579_s14 = smov (!%p163_p3, %s371_s14), 63  ;;  %v426_v0 = vld [vmem:[%s575_s1] ss:$0 sm:$0xff] }
   0xc   : > { %s372_s17 = sshll.u32 %s579_s14, 3  ;;  %v436_v1 = vld [vmem:[%s576_s2] ss:$0 sm:$0xff] }
   0xd   : > { %s431_s20 = scalar_lea.vmem %s574_s0, %s372_s17  ;;  %s450_s25 = scalar_lea.vmem %s577_s3, %s372_s17 }
   0xe   : > { %v174_v2 = vld [vmem:[%s431_s20] sm:$0xff]  ;;  %v175_v3 = vld [vmem:[%s431_s20 + $0x8] sm:$0xff]  ;;  %v176_v4 = vld [vmem:[%s431_s20 + $0x10] sm:$0xff] }
   0xf   : > { %v210_v5 = vmul.f32 %v426_v0, %v174_v2  ;;  %v211_v6 = vmul.f32 %v426_v0, %v175_v3  ;;  %v212_v7 = vmul.f32 %v426_v0, %v176_v4  ;;  %v177_v8 = vld [vmem:[%s431_s20 + $0x18] sm:$0xff]  ;;  %v178_v9 = vld [vmem:[%s431_s20 + $0x20] sm:$0xff]  ;;  %v179_v10 = vld [vmem:[%s431_s20 + $0x28] sm:$0xff] }
  0x10   : > { %v213_v11 = vmul.f32 %v426_v0, %v177_v8  ;;  %v214_v12 = vmul.f32 %v426_v0, %v178_v9  ;;  %v215_v13 = vmul.f32 %v426_v0, %v179_v10  ;;  %v180_v14 = vld [vmem:[%s431_s20 + $0x30] sm:$0xff]  ;;  %v181_v15 = vld [vmem:[%s431_s20 + $0x38] sm:$0xff]  ;;  %v182_v16 = vld [vmem:[%s431_s20 + $0x40] sm:$0xff] }
  0x11   : > { %v246_v17 = vadd.f32 %v436_v1, %v210_v5  ;;  %v247_v18 = vadd.f32 %v436_v1, %v211_v6  ;;  %v248_v19 = vadd.f32 %v436_v1, %v212_v7  ;;  %v216_v20 = vmul.f32 %v426_v0, %v180_v14  ;;  %v183_v21 = vld [vmem:[%s431_s20 + $0x48] sm:$0xff]  ;;  %v184_v24 = vld [vmem:[%s431_s20 + $0x50] sm:$0xff]  ;;  %v185_v27 = vld [vmem:[%s431_s20 + $0x58] sm:$0xff] }
  0x12   : > { %v249_v22 = vadd.f32 %v436_v1, %v213_v11  ;;  %v217_v23 = vmul.f32 %v426_v0, %v181_v15  ;;  %v250_v25 = vadd.f32 %v436_v1, %v214_v12  ;;  %v218_v26 = vmul.f32 %v426_v0, %v182_v16  ;;  %v186_v30 = vld [vmem:[%s431_s20 + $0x60] sm:$0xff]  ;;  %v187_v33 = vld [vmem:[%s431_s20 + $0x68] sm:$0xff]  ;;  %v188_v36 = vld [vmem:[%s431_s20 + $0x70] sm:$0xff] }
  0x13   : > { %278 = vst [vmem:[%s450_s25] sm:$0xff] %v246_v17  ;;  %v251_v28 = vadd.f32 %v436_v1, %v215_v13  ;;  %v219_v29 = vmul.f32 %v426_v0, %v183_v21  ;;  %v252_v31 = vadd.f32 %v436_v1, %v216_v20  ;;  %v220_v32 = vmul.f32 %v426_v0, %v184_v24  ;;  %v189_v39 = vld [vmem:[%s431_s20 + $0x78] sm:$0xff]  ;;  %v190_v42 = vld [vmem:[%s431_s20 + $0x80] sm:$0xff]  ;;  %v191_v45 = vld [vmem:[%s431_s20 + $0x88] sm:$0xff] }
  0x14   : > { %279 = vst [vmem:[%s450_s25 + $0x8] sm:$0xff] %v247_v18  ;;  %v253_v34 = vadd.f32 %v436_v1, %v217_v23  ;;  %v221_v35 = vmul.f32 %v426_v0, %v185_v27  ;;  %v254_v37 = vadd.f32 %v436_v1, %v218_v26  ;;  %v222_v38 = vmul.f32 %v426_v0, %v186_v30  ;;  %v192_v48 = vld [vmem:[%s431_s20 + $0x90] sm:$0xff]  ;;  %v193_v51 = vld [vmem:[%s431_s20 + $0x98] sm:$0xff]  ;;  %v194_v54 = vld [vmem:[%s431_s20 + $0xa0] sm:$0xff] }
  0x15   : > { %280 = vst [vmem:[%s450_s25 + $0x10] sm:$0xff] %v248_v19  ;;  %v255_v40 = vadd.f32 %v436_v1, %v219_v29  ;;  %v223_v41 = vmul.f32 %v426_v0, %v187_v33  ;;  %v256_v43 = vadd.f32 %v436_v1, %v220_v32  ;;  %v224_v44 = vmul.f32 %v426_v0, %v188_v36  ;;  %v195_v57 = vld [vmem:[%s431_s20 + $0xa8] sm:$0xff]  ;;  %v196_v60 = vld [vmem:[%s431_s20 + $0xb0] sm:$0xff]  ;;  %v197_v63 = vld [vmem:[%s431_s20 + $0xb8] sm:$0xff] }
  0x16   : > { %281 = vst [vmem:[%s450_s25 + $0x18] sm:$0xff] %v249_v22  ;;  %v257_v46 = vadd.f32 %v436_v1, %v221_v35  ;;  %v225_v47 = vmul.f32 %v426_v0, %v189_v39  ;;  %v258_v49 = vadd.f32 %v436_v1, %v222_v38  ;;  %v226_v50 = vmul.f32 %v426_v0, %v190_v42  ;;  %v198_v4 = vld [vmem:[%s431_s20 + $0xc0] sm:$0xff]  ;;  %v199_v7 = vld [vmem:[%s431_s20 + $0xc8] sm:$0xff]  ;;  %v200_v10 = vld [vmem:[%s431_s20 + $0xd0] sm:$0xff] }
  0x17   : > { %282 = vst [vmem:[%s450_s25 + $0x20] sm:$0xff] %v250_v25  ;;  %v259_v52 = vadd.f32 %v436_v1, %v223_v41  ;;  %v227_v53 = vmul.f32 %v426_v0, %v191_v45  ;;  %v260_v55 = vadd.f32 %v436_v1, %v224_v44  ;;  %v228_v56 = vmul.f32 %v426_v0, %v192_v48  ;;  %v201_v13 = vld [vmem:[%s431_s20 + $0xd8] sm:$0xff]  ;;  %v202_v16 = vld [vmem:[%s431_s20 + $0xe0] sm:$0xff]  ;;  %v203_v19 = vld [vmem:[%s431_s20 + $0xe8] sm:$0xff] }
  0x18   : > { %283 = vst [vmem:[%s450_s25 + $0x28] sm:$0xff] %v251_v28  ;;  %v261_v58 = vadd.f32 %v436_v1, %v225_v47  ;;  %v229_v59 = vmul.f32 %v426_v0, %v193_v51  ;;  %v262_v61 = vadd.f32 %v436_v1, %v226_v50  ;;  %v230_v62 = vmul.f32 %v426_v0, %v194_v54  ;;  %v204_v22 = vld [vmem:[%s431_s20 + $0xf0] sm:$0xff]  ;;  %v205_v25 = vld [vmem:[%s431_s20 + $0xf8] sm:$0xff] }
  0x19   : > { %284 = vst [vmem:[%s450_s25 + $0x30] sm:$0xff] %v252_v31  ;;  %v263_v2 = vadd.f32 %v436_v1, %v227_v53  ;;  %v231_v3 = vmul.f32 %v426_v0, %v195_v57  ;;  %v264_v5 = vadd.f32 %v436_v1, %v228_v56  ;;  %v232_v6 = vmul.f32 %v426_v0, %v196_v60 }
  0x1a   : > { %285 = vst [vmem:[%s450_s25 + $0x38] sm:$0xff] %v253_v34  ;;  %v265_v8 = vadd.f32 %v436_v1, %v229_v59  ;;  %v233_v9 = vmul.f32 %v426_v0, %v197_v63  ;;  %v266_v11 = vadd.f32 %v436_v1, %v230_v62  ;;  %v234_v12 = vmul.f32 %v426_v0, %v198_v4 }
  0x1b   : > { %286 = vst [vmem:[%s450_s25 + $0x40] sm:$0xff] %v254_v37  ;;  %v267_v14 = vadd.f32 %v436_v1, %v231_v3  ;;  %v235_v15 = vmul.f32 %v426_v0, %v199_v7  ;;  %v268_v17 = vadd.f32 %v436_v1, %v232_v6  ;;  %v236_v18 = vmul.f32 %v426_v0, %v200_v10 }
  0x1c   : > { %287 = vst [vmem:[%s450_s25 + $0x48] sm:$0xff] %v255_v40  ;;  %v269_v20 = vadd.f32 %v436_v1, %v233_v9  ;;  %v237_v21 = vmul.f32 %v426_v0, %v201_v13  ;;  %v270_v23 = vadd.f32 %v436_v1, %v234_v12  ;;  %v238_v24 = vmul.f32 %v426_v0, %v202_v16 }
  0x1d   : > { %288 = vst [vmem:[%s450_s25 + $0x50] sm:$0xff] %v256_v43  ;;  %v271_v26 = vadd.f32 %v436_v1, %v235_v15  ;;  %v239_v27 = vmul.f32 %v426_v0, %v203_v19  ;;  %v272_v28 = vadd.f32 %v436_v1, %v236_v18  ;;  %v240_v29 = vmul.f32 %v426_v0, %v204_v22 }
  0x1e   : > { %289 = vst [vmem:[%s450_s25 + $0x58] sm:$0xff] %v257_v46  ;;  %v273_v30 = vadd.f32 %v436_v1, %v237_v21  ;;  %v241_v31 = vmul.f32 %v426_v0, %v205_v25  ;;  %v274_v32 = vadd.f32 %v436_v1, %v238_v24 }
  0x1f   : > { %290 = vst [vmem:[%s450_s25 + $0x60] sm:$0xff] %v258_v49  ;;  %v275_v33 = vadd.f32 %v436_v1, %v239_v27  ;;  %v276_v34 = vadd.f32 %v436_v1, %v240_v29 }
  0x20   : > { %291 = vst [vmem:[%s450_s25 + $0x68] sm:$0xff] %v259_v52  ;;  %v277_v35 = vadd.f32 %v436_v1, %v241_v31 }
  0x21   : > { %292 = vst [vmem:[%s450_s25 + $0x70] sm:$0xff] %v260_v55 }
  0x22   : > { %293 = vst [vmem:[%s450_s25 + $0x78] sm:$0xff] %v261_v58 }
  0x23   : > { %294 = vst [vmem:[%s450_s25 + $0x80] sm:$0xff] %v262_v61 }
  0x24   : > { %295 = vst [vmem:[%s450_s25 + $0x88] sm:$0xff] %v263_v2 }
  0x25   : > { %296 = vst [vmem:[%s450_s25 + $0x90] sm:$0xff] %v264_v5 }
  0x26   : > { %297 = vst [vmem:[%s450_s25 + $0x98] sm:$0xff] %v265_v8 }
  0x27   : > { %298 = vst [vmem:[%s450_s25 + $0xa0] sm:$0xff] %v266_v11 }
  0x28   : > { %299 = vst [vmem:[%s450_s25 + $0xa8] sm:$0xff] %v267_v14 }
  0x29   : > { %300 = vst [vmem:[%s450_s25 + $0xb0] sm:$0xff] %v268_v17 }
  0x2a   : > { %301 = vst [vmem:[%s450_s25 + $0xb8] sm:$0xff] %v269_v20 }
  0x2b   : > { %302 = vst [vmem:[%s450_s25 + $0xc0] sm:$0xff] %v270_v23 }
  0x2c   : > { %303 = vst [vmem:[%s450_s25 + $0xc8] sm:$0xff] %v271_v26 }
  0x2d   : > { %304 = vst [vmem:[%s450_s25 + $0xd0] sm:$0xff] %v272_v28 }
  0x2e   : > { %305 = vst [vmem:[%s450_s25 + $0xd8] sm:$0xff] %v273_v30 }
  0x2f   : > { %306 = vst [vmem:[%s450_s25 + $0xe0] sm:$0xff] %v274_v32 }
  0x30   : > { %307 = vst [vmem:[%s450_s25 + $0xe8] sm:$0xff] %v275_v33 }
  0x31   : > { %308 = vst [vmem:[%s450_s25 + $0xf0] sm:$0xff] %v276_v34 }
  0x32   : > { %309 = vst [vmem:[%s450_s25 + $0xf8] sm:$0xff] %v277_v35 }
  0x33 PF: > { %s13_s12 = sadd.s32 1, %s393_s12  }
  0x34   : > { %p10_p4 = scmp.ge.s32.totalorder %s13_s12, 4  }
  0x36   :  { %12 = sbr.rel (!%p10_p4) target bundleno = 1 (0x1), region = 62 }

// kernel: pconv_net_forward.30
= control target key start
LH: loop header
LB: loop body
LE: loop exit
PB: predicated region body
PF: predicated region fallthrough
CT: control target
= control target key end

     0   :  { %s1540_s21 = smov 0   ;;  %s1966_s0 = inlined_call_operand.vmem [shape: bf16[512,108], index: 0, kind: input, shape index: {}]   ;;  %s1967_s1 = inlined_call_operand.vmem [shape: f32[512,1], index: 1, kind: input, shape index: {}]   ;;  %s1968_s2 = inlined_call_operand.vmem [shape: bf16[108,128], index: 2, kind: input, shape index: {}]   ;;  %s1969_s3 = inlined_call_operand.vmem [shape: f32[1,128], index: 3, kind: input, shape index: {}]   ;;  %s1970_s4 = inlined_call_operand.vmem [shape: f32[512,128], index: 4, kind: output, shape index: {0}]   ;;  %s1971_s5 = inlined_call_operand.vmem [shape: f32[16,128], index: 5, kind: output, shape index: {1}]   ;;  %s1972_s6 = inlined_call_operand.vmem [shape: f32[16,128], index: 6, kind: output, shape index: {2}]  }
   0x1 LB: > { %s1546_s22 = sadd.s32 4294967295, %s1501_s21   ;;  %p1206_p0 = scmp.ge.s32.totalorder %s1501_s21, 1  ;;  %s1501_s21 = sphi %s1540_s21, %s17_s21  }
   0x2   : > { %p229_p1 = scmp.lt.s32.totalorder %s1501_s21, 3 }
   0x4   : > { %p230_p2 = pnand %p1206_p0, %p229_p1 }
   0x5   : > { %s1207_s27 = sshll.u32 (!%p230_p2), %s1546_s22, 5  ;;  %p290_p4 = scmp.lt.s32.totalorder (!%p230_p2), %s1546_s22, 1 }
   0x6   : > { %233 = sbr.rel (%p230_p2) target bundleno = 293 (0x125), region = 36  ;;  %p273_p3 = scmp.lt.s32.totalorder (!%p230_p2), %s1207_s27, 63 }
   0xb   : > { %v1305_v0 = vld [vmem:[%s1968_s2 + $0x30] sm:$0xf]  ;;  %v1379_v1 = vld [vmem:[%s1968_s2 + $0x30] sm:$0x30]  ;;  %vm519_vm0 = vcmask 1045504   ;;  %v1503_v3 = vmov 0  }
   0xc   : > { %v1306_v2 = vor.u32 %v1379_v1, %v1305_v0  ;;  %1411 = vset.pattern.permute.xlu0 %v1503_v3  ;;  %1422 = vset.pattern.permute.xlu1 %v1503_v3  ;;  %v1378_v5 = vld [vmem:[%s1968_s2 + $0x28] sm:$0xff]  ;;  %s1974_s27 = smov (!%p273_p3, %s1207_s27), 63  ;;  %v1377_v6 = vld [vmem:[%s1968_s2 + $0x20] sm:$0xff]  ;;  %v1504_v9 = vmov 0.0   ;;  %v1376_v12 = vld [vmem:[%s1968_s2 + $0x18] sm:$0xff]  ;;  %vm470_vm9 = vcmask 883712  }
   0xd   : > { %1433 = vset.pattern.permute.xlu2 %v1503_v3  ;;  %s1210_s30 = sshll.u32 %s1974_s27, 3  ;;  %v1375_v18 = vld [vmem:[%s1968_s2 + $0x10] sm:$0xff]  ;;  %v1374_v27 = vld [vmem:[%s1968_s2 + $0x8] sm:$0xff]  ;;  %s1208_s18 = sshll.u32 %s1974_s27, 2  ;;  %v1373_v30 = vld [vmem:[%s1968_s2] sm:$0xff] }
   0xe   : > { %v521_v4 = vsel %vm519_vm0, %v1306_v2, 0  ;;  %s1568_s9 = scalar_lea.vmem %s1967_s1, %s1210_s30  ;;  %s1600_s23 = scalar_lea.vmem %s1966_s0, %s1208_s18 }
   0xf   : > { %524 = vmatpush.bf16.msra.mxu0 %v521_v4  ;;  %1380 = vmatpush.bf16.msra.mxu1 %v521_v4  ;;  %v612_v7 = vld [vmem:[%s1568_s9] sm:$0xff]  ;;  %v613_v8 = vld [vmem:[%s1568_s9 + $0x8] sm:$0xff]  ;;  %v614_v14 = vld [vmem:[%s1568_s9 + $0x10] sm:$0xff]  ;;  %s1713_s8 = scalar_lea.vmem %s1970_s4, %s1210_s30  ;;  %s1976_s22 = smov (!%p290_p4, %s1546_s22), 1 }
  0x10   : > { %1381 = vmatpush.bf16.msra.mxu2 %v521_v4  ;;  %1382 = vmatpush.bf16.msra.mxu3 %v521_v4  ;;  %vm644_vm1 = vcmp.gt.f32.partialorder %v612_v7, 0.0  ;;  %vm645_vm2 = vcmp.gt.f32.partialorder %v613_v8, 0.0  ;;  %v615_v15 = vld [vmem:[%s1568_s9 + $0x18] sm:$0xff]  ;;  %vm646_vm3 = vcmp.gt.f32.partialorder %v614_v14, 0.0  ;;  %v616_v19 = vld [vmem:[%s1568_s9 + $0x20] sm:$0xff]  ;;  %v617_v20 = vld [vmem:[%s1568_s9 + $0x28] sm:$0xff] }
  0x11   : > { %v1323_v10 = vsel %vm644_vm1, 1.0, %v1504_v9  ;;  %v1324_v11 = vsel %vm645_vm2, 1.0, %v1504_v9  ;;  %vm647_vm4 = vcmp.gt.f32.partialorder %v615_v15, 0.0  ;;  %v1325_v16 = vsel %vm646_vm3, 1.0, %v1504_v9  ;;  %v624_v21 = vld [vmem:[%s1568_s9 + $0x60] sm:$0xff]  ;;  %v625_v22 = vld [vmem:[%s1568_s9 + $0x68] sm:$0xff] }
  0x12   : > { %v1412_v13 = vpack.i.bf16 %v1324_v11, %v1323_v10  ;;  %v1326_v17 = vsel %vm647_vm4, 1.0, %v1504_v9  ;;  %vm648_vm5 = vcmp.gt.f32.partialorder %v616_v19, 0.0  ;;  %vm649_vm6 = vcmp.gt.f32.partialorder %v617_v20, 0.0  ;;  %v1357_v31 = vld [vmem:[%s1600_s23] sm:$0xff]  ;;  %v618_v36 = vld [vmem:[%s1568_s9 + $0x30] sm:$0xff]  ;;  %v619_v37 = vld [vmem:[%s1568_s9 + $0x38] sm:$0xff] }
  0x13   : > { %525 = vmatpush.bf16.msra.mxu0 %v1378_v5  ;;  %1383 = vmatpush.bf16.msra.mxu1 %v1378_v5  ;;  %v1417_v23 = vpack.i.bf16 %v1326_v17, %v1325_v16  ;;  %v1327_v24 = vsel %vm648_vm5, 1.0, %v1504_v9  ;;  %v1328_v25 = vsel %vm649_vm6, 1.0, %v1504_v9  ;;  %vm656_vm7 = vcmp.gt.f32.partialorder %v624_v21, 0.0  ;;  %v1361_v33 = vld [vmem:[%s1600_s23 + $0x20] sm:$0xff]  ;;  %v630_v38 = vld [vmem:[%s1568_s9 + $0x90] sm:$0xff]  ;;  %v631_v39 = vld [vmem:[%s1568_s9 + $0x98] sm:$0xff] }
  0x14   : > { %1384 = vmatpush.bf16.msra.mxu2 %v1378_v5  ;;  %1385 = vmatpush.bf16.msra.mxu3 %v1378_v5  ;;  %v1423_v26 = vpack.i.bf16 %v1328_v25, %v1327_v24  ;;  %vm657_vm8 = vcmp.gt.f32.partialorder %v625_v22, 0.0  ;;  %v1335_v28 = vsel %vm656_vm7, 1.0, %v1504_v9  ;;  %v1365_v34 = vld [vmem:[%s1600_s23 + $0x40] sm:$0xff]  ;;  %vm650_vm10 = vcmp.gt.f32.partialorder %v618_v36, 0.0  ;;  %v626_v45 = vld [vmem:[%s1568_s9 + $0x70] sm:$0xff]  ;;  %v627_v46 = vld [vmem:[%s1568_s9 + $0x78] sm:$0xff] }
  0x15   : > { %1413 = vperm.xlu0 %1411, %v1412_v13   ;;  %v1336_v29 = vsel %vm657_vm8, 1.0, %v1504_v9  ;;  %v1369_v35 = vld [vmem:[%s1600_s23 + $0x60] sm:$0xff]  ;;  %vm651_vm11 = vcmp.gt.f32.partialorder %v619_v37, 0.0  ;;  %vm662_vm12 = vcmp.gt.f32.partialorder %v630_v38, 0.0  ;;  %v1329_v40 = vsel %vm650_vm10, 1.0, %v1504_v9  ;;  %v637_v48 = vld [vmem:[%s1568_s9 + $0xc8] sm:$0xff] }
  0x16   : > { %1424 = vperm.xlu1 %1422, %v1423_v26   ;;  %v1444_v32 = vpack.i.bf16 %v1336_v29, %v1335_v28  ;;  %v1330_v41 = vsel %vm651_vm11, 1.0, %v1504_v9  ;;  %vm663_vm13 = vcmp.gt.f32.partialorder %v631_v39, 0.0  ;;  %v1341_v43 = vsel %vm662_vm12, 1.0, %v1504_v9  ;;  %v636_v47 = vld [vmem:[%s1568_s9 + $0xc0] sm:$0xff]  ;;  %v1358_v55 = vld [vmem:[%s1600_s23 + $0x8] sm:$0xff]  ;;  %v642_v62 = vld [vmem:[%s1568_s9 + $0xf0] sm:$0xff] }
  0x17   : > { %526 = vmatpush.bf16.msra.mxu0 %v1377_v6  ;;  %1386 = vmatpush.bf16.msra.mxu1 %v1377_v6  ;;  %v1428_v42 = vpack.i.bf16 %v1330_v41, %v1329_v40  ;;  %v1342_v44 = vsel %vm663_vm13, 1.0, %v1504_v9  ;;  %vm658_vm14 = vcmp.gt.f32.partialorder %v626_v45, 0.0  ;;  %vm659_vm15 = vcmp.gt.f32.partialorder %v627_v46, 0.0  ;;  %v1362_v57 = vld [vmem:[%s1600_s23 + $0x28] sm:$0xff]  ;;  %v632_v60 = vld [vmem:[%s1568_s9 + $0xa0] sm:$0xff]  ;;  %v643_v63 = vld [vmem:[%s1568_s9 + $0xf8] sm:$0xff] }
  0x18   : > { %1387 = vmatpush.bf16.msra.mxu2 %v1377_v6  ;;  %1388 = vmatpush.bf16.msra.mxu3 %v1377_v6  ;;  %v1459_v49 = vpack.i.bf16 %v1342_v44, %v1341_v43  ;;  %v1337_v50 = vsel %vm658_vm14, 1.0, %v1504_v9  ;;  %v1338_v51 = vsel %vm659_vm15, 1.0, %v1504_v9  ;;  %vm668_vm0 = vcmp.gt.f32.partialorder %v636_v47, 0.0  ;;  %v1366_v58 = vld [vmem:[%s1600_s23 + $0x48] sm:$0xff]  ;;  %v620_v5 = vld [vmem:[%s1568_s9 + $0x40] sm:$0xff]  ;;  %v638_v8 = vld [vmem:[%s1568_s9 + $0xd0] sm:$0xff] }
  0x19   : > { %vm669_vm1 = vcmp.gt.f32.partialorder %v637_v48, 0.0  ;;  %v1449_v52 = vpack.i.bf16 %v1338_v51, %v1337_v50  ;;  %v1347_v53 = vsel %vm668_vm0, 1.0, %v1504_v9  ;;  %v1370_v59 = vld [vmem:[%s1600_s23 + $0x68] sm:$0xff]  ;;  %vm664_vm2 = vcmp.gt.f32.partialorder %v632_v60, 0.0  ;;  %v639_v10 = vld [vmem:[%s1568_s9 + $0xd8] sm:$0xff]  ;;  %v622_v11 = vld [vmem:[%s1568_s9 + $0x50] sm:$0xff] }
  0x1a   : > { %v1348_v54 = vsel %vm669_vm1, 1.0, %v1504_v9  ;;  %v633_v61 = vld [vmem:[%s1568_s9 + $0xa8] sm:$0xff]  ;;  %vm674_vm4 = vcmp.gt.f32.partialorder %v642_v62, 0.0  ;;  %v1343_v0 = vsel %vm664_vm2, 1.0, %v1504_v9  ;;  %vm675_vm5 = vcmp.gt.f32.partialorder %v643_v63, 0.0  ;;  %v623_v14 = vld [vmem:[%s1568_s9 + $0x58] sm:$0xff] }
  0x1b   : > { %527 = vmatpush.bf16.msra.mxu0 %v1376_v12  ;;  %1389 = vmatpush.bf16.msra.mxu1 %v1376_v12  ;;  %v1474_v56 = vpack.i.bf16 %v1348_v54, %v1347_v53  ;;  %vm665_vm3 = vcmp.gt.f32.partialorder %v633_v61, 0.0  ;;  %v1353_v3 = vsel %vm674_vm4, 1.0, %v1504_v9  ;;  %v1354_v4 = vsel %vm675_vm5, 1.0, %v1504_v9  ;;  %v621_v6 = vld [vmem:[%s1568_s9 + $0x48] sm:$0xff]  ;;  %v1359_v29 = vld [vmem:[%s1600_s23 + $0x10] sm:$0xff]  ;;  %v635_v36 = vld [vmem:[%s1568_s9 + $0xb8] sm:$0xff] }
  0x1c   : > { %1390 = vmatpush.bf16.msra.mxu2 %v1376_v12  ;;  %1391 = vmatpush.bf16.msra.mxu3 %v1376_v12  ;;  %v1344_v1 = vsel %vm665_vm3, 1.0, %v1504_v9  ;;  %v1489_v7 = vpack.i.bf16 %v1354_v4, %v1353_v3  ;;  %vm652_vm6 = vcmp.gt.f32.partialorder %v620_v5, 0.0  ;;  %vm653_vm7 = vcmp.gt.f32.partialorder %v621_v6, 0.0  ;;  %v641_v19 = vld [vmem:[%s1568_s9 + $0xe8] sm:$0xff]  ;;  %v1360_v41 = vld [vmem:[%s1600_s23 + $0x18] sm:$0xff]  ;;  %s1213_s27 = sshll.u32 %s1976_s22, 3 }
  0x1d   : > { %1418 = vperm.xlu0 %1411, %v1417_v23   ;;  %v1464_v2 = vpack.i.bf16 %v1344_v1, %v1343_v0  ;;  %v1331_v12 = vsel %vm652_vm6, 1.0, %v1504_v9  ;;  %v1332_v13 = vsel %vm653_vm7, 1.0, %v1504_v9  ;;  %vm670_vm8 = vcmp.gt.f32.partialorder %v638_v8, 0.0  ;;  %v628_v23 = vld [vmem:[%s1568_s9 + $0x80] sm:$0xff]  ;;  %v629_v24 = vld [vmem:[%s1568_s9 + $0x88] sm:$0xff]  ;;  %v1368_v43 = vld [vmem:[%s1600_s23 + $0x58] sm:$0xff]  ;;  %s293_s10 = scalar_lea.vmem %s1971_s5, %s1213_s27  ;;  %s297_s13 = scalar_lea.vmem %s1972_s6, %s1213_s27 }
  0x1e   : > { %1429 = vperm.xlu1 %1422, %v1428_v42   ;;  %vm671_vm10 = vcmp.gt.f32.partialorder %v639_v10, 0.0  ;;  %v1434_v15 = vpack.i.bf16 %v1332_v13, %v1331_v12  ;;  %v1349_v16 = vsel %vm670_vm8, 1.0, %v1504_v9  ;;  %vm654_vm11 = vcmp.gt.f32.partialorder %v622_v11, 0.0  ;;  %v1364_v42 = vld [vmem:[%s1600_s23 + $0x38] sm:$0xff] }
  0x1f   : > { %528 = vmatpush.bf16.msra.mxu0 %v1375_v18  ;;  %1392 = vmatpush.bf16.msra.mxu1 %v1375_v18  ;;  %v1350_v17 = vsel %vm671_vm10, 1.0, %v1504_v9  ;;  %vm655_vm12 = vcmp.gt.f32.partialorder %v623_v14, 0.0  ;;  %v1333_v21 = vsel %vm654_vm11, 1.0, %v1504_v9  ;;  %vm673_vm14 = vcmp.gt.f32.partialorder %v641_v19, 0.0  ;;  %v1372_v44 = vld [vmem:[%s1600_s23 + $0x78] sm:$0xff] }
  0x20   : > { %1393 = vmatpush.bf16.msra.mxu2 %v1375_v18  ;;  %1394 = vmatpush.bf16.msra.mxu3 %v1375_v18  ;;  %v640_v18 = vld [vmem:[%s1568_s9 + $0xe0] sm:$0xff]  ;;  %v1479_v20 = vpack.i.bf16 %v1350_v17, %v1349_v16  ;;  %v1334_v22 = vsel %vm655_vm12, 1.0, %v1504_v9  ;;  %v1352_v26 = vsel %vm673_vm14, 1.0, %v1504_v9  ;;  %vm660_vm15 = vcmp.gt.f32.partialorder %v628_v23, 0.0 }
  0x21   : > { %1435 = vperm.xlu2 %1433, %v1434_v15   ;;  %vm672_vm13 = vcmp.gt.f32.partialorder %v640_v18, 0.0  ;;  %vm661_vm0 = vcmp.gt.f32.partialorder %v629_v24, 0.0  ;;  %vm667_vm2 = vcmp.gt.f32.partialorder %v635_v36, 0.0 }
  0x22   : > { %v1351_v25 = vsel %vm672_vm13, 1.0, %v1504_v9  ;;  %v1346_v39 = vsel %vm667_vm2, 1.0, %v1504_v9 }
  0x23   : > { %529 = vmatpush.bf16.msra.mxu0 %v1374_v27  ;;  %1395 = vmatpush.bf16.msra.mxu1 %v1374_v27  ;;  %v1484_v28 = vpack.i.bf16 %v1352_v26, %v1351_v25 }
  0x24   : > { %1396 = vmatpush.bf16.msra.mxu2 %v1374_v27  ;;  %1397 = vmatpush.bf16.msra.mxu3 %v1374_v27  ;;  %v1439_v27 = vpack.i.bf16 %v1334_v22, %v1333_v21 }
  0x25   : > { %1445 = vperm.xlu0 %1411, %v1444_v32   ;;  %v1371_v32 = vld [vmem:[%s1600_s23 + $0x70] sm:$0xff] }
  0x26   : > { %1450 = vperm.xlu1 %1422, %v1449_v52   ;;  %v1702_v52 = vld [vmem:[%s1969_s3] ss:$0 sm:$0xff] }
  0x27   : > { %530 = vmatpush.bf16.msra.mxu0 %v1373_v30  ;;  %1398 = vmatpush.bf16.msra.mxu1 %v1373_v30 }
  0x28   : > { %1399 = vmatpush.bf16.msra.mxu2 %v1373_v30  ;;  %1400 = vmatpush.bf16.msra.mxu3 %v1373_v30  ;;  %v1363_v30 = vld [vmem:[%s1600_s23 + $0x30] sm:$0xff] }
  0x29   : > { %1440 = vperm.xlu2 %1433, %v1439_v27  }
  0x2a   : > { %1307 = vmatmul.msk.bf16.vlgmr.msra.gmra.mxu0 %vm470_vm9, %v1357_v31  ;;  %1311 = vmatmul.msk.bf16.vlgmr.msra.gmra.mxu1 %vm470_vm9, %v1361_v33  ;;  %v1367_v31 = vld [vmem:[%s1600_s23 + $0x50] sm:$0xff]  ;;  %v1339_v33 = vsel %vm660_vm15, 1.0, %v1504_v9 }
  0x2b   : > { %1315 = vmatmul.msk.bf16.vlgmr.msra.gmra.mxu2 %vm470_vm9, %v1365_v34  ;;  %1319 = vmatmul.msk.bf16.vlgmr.msra.gmra.mxu3 %vm470_vm9, %v1369_v35  ;;  %v1340_v34 = vsel %vm661_vm0, 1.0, %v1504_v9  ;;  %v634_v35 = vld [vmem:[%s1568_s9 + $0xb0] sm:$0xff] }
  0x2c   : > { %v1454_v37 = vpack.i.bf16 %v1340_v34, %v1339_v33  ;;  %vm666_vm1 = vcmp.gt.f32.partialorder %v634_v35, 0.0 }
  0x2d   : > { %1460 = vperm.xlu0 %1411, %v1459_v49   ;;  %v1345_v38 = vsel %vm666_vm1, 1.0, %v1504_v9 }
  0x2e   : > { %1465 = vperm.xlu1 %1422, %v1464_v2   ;;  %v1469_v40 = vpack.i.bf16 %v1346_v39, %v1345_v38 }
  0x31   : > { %1455 = vperm.xlu2 %1433, %v1454_v37  }
  0x35   : > { %1475 = vperm.xlu0 %1411, %v1474_v56  }
  0x36   : > { %1480 = vperm.xlu1 %1422, %v1479_v20  }
  0x39   : > { %1470 = vperm.xlu2 %1433, %v1469_v40  }
  0x3a   : > { %1308 = vmatmul.msk.bf16.gmra.mxu0 %vm470_vm9, %v1358_v55  ;;  %1312 = vmatmul.msk.bf16.gmra.mxu1 %vm470_vm9, %v1362_v57 }
  0x3b   : > { %1316 = vmatmul.msk.bf16.gmra.mxu2 %vm470_vm9, %v1366_v58  ;;  %1320 = vmatmul.msk.bf16.gmra.mxu3 %vm470_vm9, %v1370_v59 }
  0x3d   : > { %1490 = vperm.xlu0 %1411, %v1489_v7  }
  0x41   : > { %1485 = vperm.xlu2 %1433, %v1484_v28  }
  0x4a   : > { %1309 = vmatmul.msk.bf16.gmra.mxu0 %vm470_vm9, %v1359_v29  ;;  %1313 = vmatmul.msk.bf16.gmra.mxu1 %vm470_vm9, %v1363_v30 }
  0x4b   : > { %1317 = vmatmul.msk.bf16.gmra.mxu2 %vm470_vm9, %v1367_v31  ;;  %1321 = vmatmul.msk.bf16.gmra.mxu3 %vm470_vm9, %v1371_v32 }
  0x5a   : > { %1310 = vmatmul.msk.bf16.gmra.mxu0 %vm470_vm9, %v1360_v41  ;;  %1314 = vmatmul.msk.bf16.gmra.mxu1 %vm470_vm9, %v1364_v42 }
  0x5b   : > { %1318 = vmatmul.msk.bf16.gmra.mxu2 %vm470_vm9, %v1368_v43  ;;  %1322 = vmatmul.msk.bf16.gmra.mxu3 %vm470_vm9, %v1372_v44 }
  0x7b   : > { %v1436_v47 = vpop.permute.xlu2 %1435 }
  0x7c   : > { %v1437_v54 = vunpack.i.l.bf16 %v1436_v47  ;;  %v1438_v4 = vunpack.i.h.bf16 %v1436_v47 }
  0x83   : > { %v1695_v50 = vpop.permute.xlu2 %1440 }
  0x84   : > { %v1442_v22 = vunpack.i.l.bf16 %v1695_v50  ;;  %v1443_v39 = vunpack.i.h.bf16 %v1695_v50 }
  0x87   : > { %v1414_v45 = vpop.permute.xlu0 %1413 }
  0x88   : > { %v1689_v9 = vpop.permute.xlu1 %1424  ;;  %v1415_v53 = vunpack.i.l.bf16 %v1414_v45  ;;  %v1416_v1 = vunpack.i.h.bf16 %v1414_v45 }
  0x8b   : > { %v1456_v62 = vpop.permute.xlu2 %1455 }
  0x8c   : > { %v1457_v5 = vunpack.i.l.bf16 %v1456_v62  ;;  %v1458_v23 = vunpack.i.h.bf16 %v1456_v62 }
  0x8f   : > { %v1687_v46 = vpop.permute.xlu0 %1418 }
  0x90   : > { %v1693_v49 = vpop.permute.xlu1 %1429  ;;  %v1420_v19 = vunpack.i.l.bf16 %v1687_v46  ;;  %v1421_v36 = vunpack.i.h.bf16 %v1687_v46 }
  0x97   : > { %v1691_v48 = vpop.permute.xlu0 %1445 }
  0x98   : > { %v1704_v55 = vpop.permute.xlu1 %1450 }
  0x9f   : > { %v1697_v51 = vpop.permute.xlu0 %1460 }
  0xa0   : > { %v1729_v14 = vpop.permute.xlu1 %1465  ;;  %v1462_v35 = vunpack.i.l.bf16 %v1697_v51 }
  0xa7   : > { %v532_v56 = vpop.f32.mrf.mxu0  ;;  %v552_v57 = vpop.f32.mrf.mxu1 }
  0xa8   : > { %v533_v58 = vadd.f32 %v1702_v52, %v532_v56  ;;  %v553_v59 = vadd.f32 %v1702_v52, %v552_v57  ;;  %v1476_v63 = vpop.permute.xlu0 %1475  ;;  %v1481_v34 = vpop.permute.xlu1 %1480  ;;  %v1463_v57 = vunpack.i.h.bf16 %v1697_v51 }
  0xa9   : > { %v1477_v0 = vunpack.i.l.bf16 %v1476_v63  ;;  %v1478_v18 = vunpack.i.h.bf16 %v1476_v63  ;;  %v1482_v40 = vunpack.i.l.bf16 %v1481_v34 }
  0xaa   : > { %v1715_v60 = vmul.f32 %v1415_v53, %v533_v58  ;;  %v1717_v61 = vmul.f32 %v1437_v54, %v553_v59  ;;  %v1776_v53 = vpop.permute.xlu2 %1470  ;;  %v1426_v58 = vunpack.i.l.bf16 %v1689_v9  ;;  %v1447_v59 = vunpack.i.l.bf16 %v1691_v48 }
  0xac   : > { %932 = vst [vmem:[%s1713_s8] sm:$0xff] %v1715_v60 }
  0xad   : > { %940 = vst [vmem:[%s1713_s8 + $0x40] sm:$0xff] %v1717_v61 }
  0xae   : > { %v572_v2 = vpop.f32.mrf.mxu2  ;;  %v592_v3 = vpop.f32.mrf.mxu3 }
  0xaf   : > { %v573_v6 = vadd.f32 %v1702_v52, %v572_v2  ;;  %v593_v7 = vadd.f32 %v1702_v52, %v592_v3  ;;  %v534_v8 = vpop.f32.mrf.mxu0  ;;  %v554_v10 = vpop.f32.mrf.mxu1 }
  0xb0   : > { %v535_v11 = vadd.f32 %v1702_v52, %v534_v8  ;;  %v555_v12 = vadd.f32 %v1702_v52, %v554_v10 }
  0xb1   : > { %v1727_v13 = vmul.f32 %v1477_v0, %v593_v7  ;;  %v1735_v17 = vmul.f32 %v1457_v5, %v573_v6  ;;  %v1483_v0 = vunpack.i.h.bf16 %v1481_v34 }
  0xb2   : > { %v1731_v15 = vmul.f32 %v1416_v1, %v535_v11  ;;  %v1733_v16 = vmul.f32 %v1438_v4, %v555_v12  ;;  %v1486_v11 = vpop.permute.xlu2 %1485  ;;  %v1467_v12 = vunpack.i.l.bf16 %v1729_v14 }
  0xb3   : > { %956 = vst [vmem:[%s1713_s8 + $0xc0] sm:$0xff] %v1727_v13 }
  0xb4   : > { %933 = vst [vmem:[%s1713_s8 + $0x8] sm:$0xff] %v1731_v15 }
  0xb5   : > { %941 = vst [vmem:[%s1713_s8 + $0x48] sm:$0xff] %v1733_v16 }
  0xb6   : > { %v574_v20 = vpop.f32.mrf.mxu2  ;;  %v594_v21 = vpop.f32.mrf.mxu3  ;;  %948 = vst [vmem:[%s1713_s8 + $0x80] sm:$0xff] %v1735_v17 }
  0xb7   : > { %v575_v24 = vadd.f32 %v1702_v52, %v574_v20  ;;  %v595_v25 = vadd.f32 %v1702_v52, %v594_v21  ;;  %v537_v26 = vpop.f32.mrf.mxu0  ;;  %v557_v27 = vpop.f32.mrf.mxu1  ;;  %v1487_v21 = vunpack.i.l.bf16 %v1486_v11 }
  0xb8   : > { %v538_v28 = vadd.f32 %v1702_v52, %v537_v26  ;;  %v558_v29 = vadd.f32 %v1702_v52, %v557_v27  ;;  %v1448_v26 = vunpack.i.h.bf16 %v1691_v48  ;;  %v1468_v48 = vunpack.i.h.bf16 %v1729_v14 }
  0xb9   : > { %v1751_v30 = vmul.f32 %v1478_v18, %v595_v25  ;;  %v1757_v33 = vmul.f32 %v1458_v23, %v575_v24  ;;  %v1427_v18 = vunpack.i.h.bf16 %v1689_v9 }
  0xba   : > { %v1753_v31 = vmul.f32 %v1420_v19, %v538_v28  ;;  %v1755_v32 = vmul.f32 %v1442_v22, %v558_v29 }
  0xbb   : > { %957 = vst [vmem:[%s1713_s8 + $0xc8] sm:$0xff] %v1751_v30 }
  0xbc   : > { %934 = vst [vmem:[%s1713_s8 + $0x10] sm:$0xff] %v1753_v31 }
  0xbd   : > { %942 = vst [vmem:[%s1713_s8 + $0x50] sm:$0xff] %v1755_v32 }
  0xbe   : > { %v577_v37 = vpop.f32.mrf.mxu2  ;;  %v597_v38 = vpop.f32.mrf.mxu3  ;;  %949 = vst [vmem:[%s1713_s8 + $0x88] sm:$0xff] %v1757_v33 }
  0xbf   : > { %v578_v41 = vadd.f32 %v1702_v52, %v577_v37  ;;  %v598_v42 = vadd.f32 %v1702_v52, %v597_v38  ;;  %v539_v43 = vpop.f32.mrf.mxu0  ;;  %v559_v44 = vpop.f32.mrf.mxu1  ;;  %v1431_v37 = vunpack.i.l.bf16 %v1693_v49 }
  0xc0   : > { %v540_v45 = vadd.f32 %v1702_v52, %v539_v43  ;;  %v560_v46 = vadd.f32 %v1702_v52, %v559_v44 }
  0xc1   : > { %v1774_v47 = vmul.f32 %v1462_v35, %v578_v41  ;;  %v1782_v56 = vmul.f32 %v1482_v40, %v598_v42  ;;  %v1488_v40 = vunpack.i.h.bf16 %v1486_v11  ;;  %v1002_v41 = vmul.f32 %v1715_v60, %v1715_v60 }
  0xc2   : > { %v1778_v50 = vmul.f32 %v1421_v36, %v540_v45  ;;  %v1780_v54 = vmul.f32 %v1443_v39, %v560_v46  ;;  %v1003_v36 = vmul.f32 %v1731_v15, %v1731_v15  ;;  %v1004_v42 = vmul.f32 %v1753_v31, %v1753_v31 }
  0xc3   : > { %950 = vst [vmem:[%s1713_s8 + $0x90] sm:$0xff] %v1774_v47  ;;  %v964_v46 = vadd.f32 %v1731_v15, %v1715_v60 }
  0xc4   : > { %935 = vst [vmem:[%s1713_s8 + $0x18] sm:$0xff] %v1778_v50 }
  0xc5   : > { %943 = vst [vmem:[%s1713_s8 + $0x58] sm:$0xff] %v1780_v54 }
  0xc6   : > { %v579_v62 = vpop.f32.mrf.mxu2  ;;  %v599_v63 = vpop.f32.mrf.mxu3  ;;  %958 = vst [vmem:[%s1713_s8 + $0xd0] sm:$0xff] %v1782_v56 }
  0xc7   : > { %v580_v1 = vadd.f32 %v1702_v52, %v579_v62  ;;  %v600_v2 = vadd.f32 %v1702_v52, %v599_v63  ;;  %v542_v3 = vpop.f32.mrf.mxu0  ;;  %v562_v51 = vpop.f32.mrf.mxu1  ;;  %v1034_v62 = vadd.f32 %v1003_v36, %v1002_v41  ;;  %v1005_v63 = vmul.f32 %v1778_v50, %v1778_v50 }
  0xc8   : > { %v543_v4 = vadd.f32 %v1702_v52, %v542_v3  ;;  %v563_v5 = vadd.f32 %v1702_v52, %v562_v51 }
  0xc9   : > { %v1799_v6 = vmul.f32 %v1463_v57, %v580_v1  ;;  %v1803_v10 = vmul.f32 %v1483_v0, %v600_v2  ;;  %v1452_v57 = vunpack.i.l.bf16 %v1704_v55  ;;  %v965_v1 = vadd.f32 %v964_v46, %v1753_v31 }
  0xca   : > { %v904_v7 = vmul.f32 %v1426_v58, %v543_v4  ;;  %v1801_v8 = vmul.f32 %v1447_v59, %v563_v5  ;;  %v1035_v15 = vadd.f32 %v1034_v62, %v1004_v42  ;;  %v1491_v5 = vpop.permute.xlu0 %1490  ;;  %v1432_v31 = vunpack.i.h.bf16 %v1693_v49 }
  0xcb   : > { %951 = vst [vmem:[%s1713_s8 + $0x98] sm:$0xff] %v1799_v6  ;;  %v966_v4 = vadd.f32 %v965_v1, %v1778_v50  ;;  %v1492_v50 = vunpack.i.l.bf16 %v1491_v5 }
  0xcc   : > { %936 = vst [vmem:[%s1713_s8 + $0x20] sm:$0xff] %v904_v7  ;;  %v1006_v51 = vmul.f32 %v904_v7, %v904_v7  ;;  %v1036_v11 = vadd.f32 %v1035_v15, %v1005_v63  ;;  %v1011_v63 = vmul.f32 %v1733_v16, %v1733_v16 }
  0xcd   : > { %944 = vst [vmem:[%s1713_s8 + $0x60] sm:$0xff] %v1801_v8 }
  0xce   : > { %v582_v19 = vpop.f32.mrf.mxu2  ;;  %v602_v20 = vpop.f32.mrf.mxu3  ;;  %959 = vst [vmem:[%s1713_s8 + $0xd8] sm:$0xff] %v1803_v10 }
  0xcf   : > { %v583_v22 = vadd.f32 %v1702_v52, %v582_v19  ;;  %v603_v23 = vadd.f32 %v1702_v52, %v602_v20  ;;  %v544_v24 = vpop.f32.mrf.mxu0  ;;  %v564_v25 = vpop.f32.mrf.mxu1  ;;  %v967_v19 = vadd.f32 %v966_v4, %v904_v7 }
  0xd0   : > { %v545_v27 = vadd.f32 %v1702_v52, %v544_v24  ;;  %v565_v9 = vadd.f32 %v1702_v52, %v564_v25 }
  0xd1   : > { %v1819_v28 = vmul.f32 %v1467_v12, %v583_v22  ;;  %v1823_v35 = vmul.f32 %v1487_v21, %v603_v23  ;;  %v1472_v12 = vunpack.i.l.bf16 %v1776_v53  ;;  %v1037_v23 = vadd.f32 %v1036_v11, %v1006_v51 }
  0xd2   : > { %v905_v29 = vmul.f32 %v1427_v18, %v545_v27  ;;  %v1821_v34 = vmul.f32 %v1448_v26, %v565_v9  ;;  %v1453_v18 = vunpack.i.h.bf16 %v1704_v55  ;;  %v1012_v51 = vmul.f32 %v1755_v32, %v1755_v32 }
  0xd3   : > { %952 = vst [vmem:[%s1713_s8 + $0xa0] sm:$0xff] %v1819_v28 }
  0xd4   : > { %937 = vst [vmem:[%s1713_s8 + $0x28] sm:$0xff] %v905_v29  ;;  %v1007_v20 = vmul.f32 %v905_v29, %v905_v29  ;;  %v968_v49 = vadd.f32 %v967_v19, %v905_v29 }
  0xd5   : > { %945 = vst [vmem:[%s1713_s8 + $0x68] sm:$0xff] %v1821_v34 }
  0xd6   : > { %v584_v38 = vpop.f32.mrf.mxu2  ;;  %v604_v39 = vpop.f32.mrf.mxu3  ;;  %960 = vst [vmem:[%s1713_s8 + $0xe0] sm:$0xff] %v1823_v35 }
  0xd7   : > { %v585_v43 = vadd.f32 %v1702_v52, %v584_v38  ;;  %v605_v44 = vadd.f32 %v1702_v52, %v604_v39  ;;  %v547_v14 = vpop.f32.mrf.mxu0  ;;  %v567_v45 = vpop.f32.mrf.mxu1 }
  0xd8   : > { %v548_v58 = vadd.f32 %v1702_v52, %v547_v14  ;;  %v568_v59 = vadd.f32 %v1702_v52, %v567_v45 }
  0xd9   : > { %v1849_v0 = vmul.f32 %v1468_v48, %v585_v43  ;;  %v1854_v60 = vmul.f32 %v1488_v40, %v605_v44  ;;  %v1010_v43 = vmul.f32 %v1717_v61, %v1717_v61 }
  0xda   : > { %v906_v2 = vmul.f32 %v1431_v37, %v548_v58  ;;  %v1852_v3 = vmul.f32 %v1452_v57, %v568_v59  ;;  %v1038_v37 = vadd.f32 %v1037_v23, %v1007_v20  ;;  %v1493_v57 = vunpack.i.h.bf16 %v1491_v5 }
  0xdb   : > { %953 = vst [vmem:[%s1713_s8 + $0xa8] sm:$0xff] %v1849_v0  ;;  %v1473_v58 = vunpack.i.h.bf16 %v1776_v53  ;;  %v1013_v53 = vmul.f32 %v1780_v54, %v1780_v54 }
  0xdc   : > { %938 = vst [vmem:[%s1713_s8 + $0x30] sm:$0xff] %v906_v2  ;;  %v1008_v9 = vmul.f32 %v906_v2, %v906_v2  ;;  %v969_v38 = vadd.f32 %v968_v49, %v906_v2  ;;  %v1016_v20 = vmul.f32 %v1852_v3, %v1852_v3  ;;  %v1020_v49 = vmul.f32 %v1774_v47, %v1774_v47 }
  0xdd   : > { %946 = vst [vmem:[%s1713_s8 + $0x70] sm:$0xff] %v1852_v3 }
  0xde   : > { %961 = vst [vmem:[%s1713_s8 + $0xe8] sm:$0xff] %v1854_v60  ;;  %v587_v21 = vpop.f32.mrf.mxu2  ;;  %v607_v22 = vpop.f32.mrf.mxu3  ;;  %v1039_v41 = vadd.f32 %v1038_v37, %v1008_v9 }
  0xdf   : > { %v588_v24 = vadd.f32 %v1702_v52, %v587_v21  ;;  %v608_v25 = vadd.f32 %v1702_v52, %v607_v22  ;;  %v549_v26 = vpop.f32.mrf.mxu0  ;;  %v569_v27 = vpop.f32.mrf.mxu1 }
  0xe0   : > { %v550_v55 = vadd.f32 %v1702_v52, %v549_v26  ;;  %v570_v7 = vadd.f32 %v1702_v52, %v569_v27  ;;  %v1019_v26 = vmul.f32 %v1757_v33, %v1757_v33 }
  0xe1   : > { %v1871_v36 = vmul.f32 %v1472_v12, %v588_v24  ;;  %v1873_v48 = vmul.f32 %v1492_v50, %v608_v25  ;;  %v1018_v24 = vmul.f32 %v1735_v17, %v1735_v17 }
  0xe2   : > { %v907_v39 = vmul.f32 %v1432_v31, %v550_v55  ;;  %v915_v40 = vmul.f32 %v1453_v18, %v570_v7  ;;  %v1015_v18 = vmul.f32 %v1821_v34, %v1821_v34  ;;  %v1021_v55 = vmul.f32 %v1799_v6, %v1799_v6 }
  0xe3   : > { %954 = vst [vmem:[%s1713_s8 + $0xb0] sm:$0xff] %v1871_v36 }
  0xe4   : > { %962 = vst [vmem:[%s1713_s8 + $0xf0] sm:$0xff] %v1873_v48  ;;  %v970_v29 = vadd.f32 %v969_v38, %v907_v39  ;;  %v1009_v42 = vmul.f32 %v907_v39, %v907_v39  ;;  %v1017_v23 = vmul.f32 %v915_v40, %v915_v40 }
  0xe5   : > { %939 = vst [vmem:[%s1713_s8 + $0x38] sm:$0xff] %v907_v39 }
  0xe6   : > { %v971_v44 = vadd.f32 %v970_v29, %v1717_v61  ;;  %v1040_v14 = vadd.f32 %v1039_v41, %v1009_v42  ;;  %947 = vst [vmem:[%s1713_s8 + $0x78] sm:$0xff] %v915_v40  ;;  %v589_v45 = vpop.f32.mrf.mxu2  ;;  %v609_v46 = vpop.f32.mrf.mxu3 }
  0xe7   : > { %v590_v59 = vadd.f32 %v1702_v52, %v589_v45  ;;  %v610_v62 = vadd.f32 %v1702_v52, %v609_v46  ;;  %v1027_v46 = vmul.f32 %v1751_v30, %v1751_v30 }
  0xe8   : > { %v972_v1 = vadd.f32 %v971_v44, %v1733_v16  ;;  %v1041_v2 = vadd.f32 %v1040_v14, %v1010_v43  ;;  %v1014_v16 = vmul.f32 %v1801_v8, %v1801_v8  ;;  %v1026_v14 = vmul.f32 %v1727_v13, %v1727_v13 }
  0xe9   : > { %v923_v61 = vmul.f32 %v1473_v58, %v590_v59  ;;  %v1890_v15 = vmul.f32 %v1493_v57, %v610_v62  ;;  %v1029_v62 = vmul.f32 %v1803_v10, %v1803_v10 }
  0xea   : > { %v973_v4 = vadd.f32 %v972_v1, %v1755_v32  ;;  %v1042_v5 = vadd.f32 %v1041_v2, %v1011_v63  ;;  %v1030_v1 = vmul.f32 %v1823_v35, %v1823_v35 }
  0xeb   : > { %955 = vst [vmem:[%s1713_s8 + $0xb8] sm:$0xff] %v923_v61 }
  0xec   : > { %v1043_v52 = vadd.f32 %v1042_v5, %v1012_v51  ;;  %v974_v11 = vadd.f32 %v973_v4, %v1780_v54  ;;  %963 = vst [vmem:[%s1713_s8 + $0xf8] sm:$0xff] %v1890_v15  ;;  %v1032_v4 = vmul.f32 %v1873_v48, %v1873_v48 }
  0xee   : > { %v975_v12 = vadd.f32 %v974_v11, %v1801_v8  ;;  %v1044_v31 = vadd.f32 %v1043_v52, %v1013_v53  ;;  %v1033_v52 = vmul.f32 %v1890_v15, %v1890_v15 }
  0xf0   : > { %v976_v32 = vadd.f32 %v975_v12, %v1821_v34  ;;  %v1045_v19 = vadd.f32 %v1044_v31, %v1014_v16 }
  0xf2   : > { %v977_v21 = vadd.f32 %v976_v32, %v1852_v3  ;;  %v1046_v54 = vadd.f32 %v1045_v19, %v1015_v18 }
  0xf4   : > { %v978_v22 = vadd.f32 %v977_v21, %v915_v40  ;;  %v1047_v50 = vadd.f32 %v1046_v54, %v1016_v20 }
  0xf6   : > { %v979_v8 = vadd.f32 %v978_v22, %v1735_v17  ;;  %v1048_v25 = vadd.f32 %v1047_v50, %v1017_v23  ;;  %v1022_v17 = vmul.f32 %v1819_v28, %v1819_v28 }
  0xf8   : > { %v980_v34 = vadd.f32 %v979_v8, %v1757_v33  ;;  %v1049_v27 = vadd.f32 %v1048_v25, %v1018_v24  ;;  %v1023_v33 = vmul.f32 %v1849_v0, %v1849_v0 }
  0xfa   : > { %v981_v3 = vadd.f32 %v980_v34, %v1774_v47  ;;  %v1050_v9 = vadd.f32 %v1049_v27, %v1019_v26  ;;  %v1024_v47 = vmul.f32 %v1871_v36, %v1871_v36 }
  0xfc   : > { %v1051_v7 = vadd.f32 %v1050_v9, %v1020_v49  ;;  %v982_v37 = vadd.f32 %v981_v3, %v1799_v6  ;;  %v1025_v6 = vmul.f32 %v923_v61, %v923_v61 }
  0xfe   : > { %v983_v38 = vadd.f32 %v982_v37, %v1819_v28  ;;  %v1052_v39 = vadd.f32 %v1051_v7, %v1021_v55 }
 0x100   : > { %v984_v40 = vadd.f32 %v983_v38, %v1849_v0  ;;  %v1053_v41 = vadd.f32 %v1052_v39, %v1022_v17 }
 0x102   : > { %v985_v29 = vadd.f32 %v984_v40, %v1871_v36  ;;  %v1054_v42 = vadd.f32 %v1053_v41, %v1023_v33  ;;  %v1028_v36 = vmul.f32 %v1782_v56, %v1782_v56 }
 0x104   : > { %v986_v43 = vadd.f32 %v985_v29, %v923_v61  ;;  %v1055_v44 = vadd.f32 %v1054_v42, %v1024_v47  ;;  %v1031_v61 = vmul.f32 %v1854_v60, %v1854_v60 }
 0x106   : > { %v987_v28 = vadd.f32 %v986_v43, %v1727_v13  ;;  %v1056_v45 = vadd.f32 %v1055_v44, %v1025_v6 }
 0x108   : > { %v988_v0 = vadd.f32 %v987_v28, %v1751_v30  ;;  %v1057_v57 = vadd.f32 %v1056_v45, %v1026_v14 }
 0x10a   : > { %v989_v58 = vadd.f32 %v988_v0, %v1782_v56  ;;  %v1058_v59 = vadd.f32 %v1057_v57, %v1027_v46 }
 0x10c   : > { %v1059_v63 = vadd.f32 %v1058_v59, %v1028_v36  ;;  %v990_v13 = vadd.f32 %v989_v58, %v1803_v10 }
 0x10e   : > { %v991_v30 = vadd.f32 %v990_v13, %v1823_v35  ;;  %v1060_v2 = vadd.f32 %v1059_v63, %v1029_v62 }
 0x110   : > { %v992_v51 = vadd.f32 %v991_v30, %v1854_v60  ;;  %v1061_v56 = vadd.f32 %v1060_v2, %v1030_v1 }
 0x112   : > { %v993_v5 = vadd.f32 %v992_v51, %v1873_v48  ;;  %v1062_v53 = vadd.f32 %v1061_v56, %v1031_v61 }
 0x114   : > { %v994_v10 = vadd.f32 %v993_v5, %v1890_v15  ;;  %v1063_v35 = vadd.f32 %v1062_v53, %v1032_v4 }
 0x116   : > { %v995_v11 = vrot.slane %v994_v10, 4  ;;  %v1064_v16 = vadd.f32 %v1063_v35, %v1033_v52 }
 0x118   : > { %v996_v12 = vadd.f32 %v995_v11, %v994_v10  ;;  %v1065_v31 = vrot.slane %v1064_v16, 4 }
 0x11a   : > { %v997_v60 = vrot.slane %v996_v12, 2  ;;  %v1066_v18 = vadd.f32 %v1065_v31, %v1064_v16 }
 0x11c   : > { %v998_v32 = vadd.f32 %v997_v60, %v996_v12  ;;  %v1067_v19 = vrot.slane %v1066_v18, 2 }
 0x11e   : > { %v999_v20 = vrot.slane %v998_v32, 1  ;;  %v1068_v48 = vadd.f32 %v1067_v19, %v1066_v18 }
 0x120   : > { %v1000_v21 = vadd.f32 %v999_v20, %v998_v32  ;;  %v1069_v54 = vrot.slane %v1068_v48, 1 }
 0x122   : > { %1001 = vst [vmem:[%s293_s10] sm:$0xff] %v1000_v21  ;;  %v1070_v15 = vadd.f32 %v1069_v54, %v1068_v48 }
 0x124   : > { %1071 = vst [vmem:[%s297_s13] sm:$0xff] %v1070_v15 }
 0x125 PF: > { %s17_s21 = sadd.s32 1, %s1501_s21  }
 0x126   : > { %p14_p5 = scmp.ge.s32.totalorder %s17_s21, 4  }
 0x128   :  { %16 = sbr.rel (!%p14_p5) target bundleno = 1 (0x1), region = 93 }

</bundles_post_ra>
